<compile_context>
chip_gen: v7x
topology: tpu7x:2x2x1
jax: 0.10.0
libtpu: 0.0.40
codegen_flags: <defaults>
</compile_context>

<pallas_src>
import jax
import jax.numpy as jnp
import numpy as np
from jax.experimental import pallas as pl
from jax.experimental.pallas import tpu as pltpu


# ---------------------------------------------------------------------------
# Fused Pallas kernel: embedding gather + all GRU layers + full time recurrence.
# ---------------------------------------------------------------------------
def make_encoder_kernel(T, B, Hp, L):
    TB = T * B
    three = 3 * Hp

    def kernel(tok_ref, emb_ref, *refs):
        layer_refs = refs[:4 * L]          # per layer: wih, whh, bi, bn
        out_ref = refs[4 * L]              # (B, T, Hp) last-layer outputs
        hn_ref = refs[4 * L + 1]           # (L, B, Hp) final hidden per layer

        # ---- In-kernel embedding lookup (exact): token ids come from SMEM,
        # each row is a dynamic-slice load from the VMEM embedding table.
        rows = []
        for i in range(TB):                        # time-major row order
            tok = tok_ref[i]                       # scalar int32 from SMEM
            rows.append(emb_ref[pl.ds(tok, 1), :]) # (1, E) exact row copy
        x_all = jnp.concatenate(rows, axis=0)      # (T*B, E), lives in registers

        for l in range(L):                         # layers fused (Python-unrolled)
            wih = layer_refs[4 * l + 0][...]       # (in_l, 3Hp)
            whh = layer_refs[4 * l + 1][...]       # (Hp, 3Hp)
            bi = layer_refs[4 * l + 2][...]        # (1, 3Hp): b_ih (+ b_hh for r,z)
            bn = layer_refs[4 * l + 3][...]        # (1, Hp):  b_hh for n-gate only

            # Hoisted input projection: ALL timesteps in one MXU matmul (M = T*B).
            # Kept live as a value -> no VMEM store/reload on the serial path.
            gi_all = jnp.dot(x_all, wih, preferred_element_type=jnp.float32) + bi

            # Hoist the n-gate recurrent-bias broadcast out of the time loop.
            bn_b = jnp.broadcast_to(bn, (B, Hp))

            h = jnp.zeros((B, Hp), jnp.float32)    # zero initial state (nn.GRU default)
            hs = []
            # TODO(synk): for T >> 16 switch to lax.fori_loop(..., unroll=True)
            # with ref[pl.ds(pl.multiple_of(t*B, B), B)] indexing to bound live ranges.
            # TODO(synk): weight-stationary W_hh via pltpu.matmul_push_rhs /
            # matmul_acc_lhs / matmul_pop once the bundle dump confirms the RHS
            # is being re-pushed every step.
            for t in range(T):
                gi_t = gi_all[t * B:(t + 1) * B, :]          # static value slice
                gh = jnp.dot(h, whh, preferred_element_type=jnp.float32)
                r = jax.nn.sigmoid(gi_t[:, 0:Hp] + gh[:, 0:Hp])
                z = jax.nn.sigmoid(gi_t[:, Hp:2 * Hp] + gh[:, Hp:2 * Hp])
                n = jnp.tanh(gi_t[:, 2 * Hp:three] + r * (gh[:, 2 * Hp:three] + bn_b))
                h = (1.0 - z) * n + z * h
                hs.append(h)

            hn_ref[l] = h                          # final hidden: written once

            if l == L - 1:
                # Batch-first output assembled in registers; one lane- and
                # sublane-dense (T, Hp) store per batch row.
                for b in range(B):
                    out_ref[b] = jnp.concatenate([ht[b:b + 1, :] for ht in hs], axis=0)
            else:
                x_all = jnp.concatenate(hs, axis=0)  # next-layer input, stays in regs

    return kernel


# ---------------------------------------------------------------------------
# Wrapper: build lane-padded / bias-folded weights and issue one pallas_call.
# ---------------------------------------------------------------------------
def seq2seq_encoder_forward(tokens, params):
    """tokens: (batch, num_steps) int32.
    Returns (outputs (B, T, H), hidden_state (num_layers, B, H))."""
    embed = params["embedding"].astype(jnp.float32)        # (V, E)
    B, T = tokens.shape
    V, E = embed.shape
    layers = params["gru_layers"]
    L = len(layers)
    H = layers[0]["w_hh"].shape[1]
    Hp = ((H + 127) // 128) * 128                          # lane-aligned hidden width

    # Only the tiny int32 token grid is rearranged (time-major flatten); the
    # activations never leave the kernel.
    tok_flat = jnp.transpose(tokens).reshape(T * B).astype(jnp.int32)

    ins = [tok_flat, embed]
    in_specs = [
        pl.BlockSpec(memory_space=pltpu.MemorySpace.SMEM),   # token ids -> SMEM
        pl.BlockSpec((V, E), lambda i: (0, 0)),              # embedding table -> VMEM
    ]

    # Lane-padded, pre-transposed, bias-folded weights (trace-time constants).
    for l, lp in enumerate(layers):
        in_dim = E if l == 0 else H
        in_p = E if l == 0 else Hp
        wih_t = lp["w_ih"].T.astype(jnp.float32)             # (in_dim, 3H)
        whh_t = lp["w_hh"].T.astype(jnp.float32)             # (H, 3H)
        b_ih = lp["b_ih"].astype(jnp.float32)
        b_hh = lp["b_hh"].astype(jnp.float32)

        wih_p = jnp.zeros((in_p, 3 * Hp), jnp.float32)
        whh_p = jnp.zeros((Hp, 3 * Hp), jnp.float32)
        bi_p = jnp.zeros((1, 3 * Hp), jnp.float32)
        bn_p = jnp.zeros((1, Hp), jnp.float32)
        for g in range(3):                                   # gate order r, z, n
            wih_p = wih_p.at[:in_dim, g * Hp:g * Hp + H].set(wih_t[:, g * H:(g + 1) * H])
            whh_p = whh_p.at[:H, g * Hp:g * Hp + H].set(whh_t[:, g * H:(g + 1) * H])
            if g < 2:  # r, z: fold b_ih + b_hh into the hoisted gi
                bi_p = bi_p.at[0, g * Hp:g * Hp + H].set(
                    b_ih[g * H:(g + 1) * H] + b_hh[g * H:(g + 1) * H])
            else:      # n: b_ih in gi; b_hh_n must stay inside r*(...) -> per-step bn
                bi_p = bi_p.at[0, g * Hp:g * Hp + H].set(b_ih[g * H:(g + 1) * H])
                bn_p = bn_p.at[0, :H].set(b_hh[g * H:(g + 1) * H])

        ins += [wih_p, whh_p, bi_p, bn_p]
        in_specs += [
            pl.BlockSpec((in_p, 3 * Hp), lambda i: (0, 0)),
            pl.BlockSpec((Hp, 3 * Hp), lambda i: (0, 0)),
            pl.BlockSpec((1, 3 * Hp), lambda i: (0, 0)),
            pl.BlockSpec((1, Hp), lambda i: (0, 0)),
        ]

    out, hn = pl.pallas_call(
        make_encoder_kernel(T, B, Hp, L),
        out_shape=(jax.ShapeDtypeStruct((B, T, Hp), jnp.float32),
                   jax.ShapeDtypeStruct((L, B, Hp), jnp.float32)),
        grid=(1,),
        in_specs=in_specs,
        out_specs=(
            pl.BlockSpec((B, T, Hp), lambda i: (0, 0, 0)),
            pl.BlockSpec((L, B, Hp), lambda i: (0, 0, 0)),
        ),
        compiler_params=pltpu.CompilerParams(
            dimension_semantics=("arbitrary",)),
    )(*ins)

    outputs = out[:, :, :H]          # drop lane padding only
    hidden_state = hn[:, :, :H]
    return outputs, hidden_state


# ---------------------------------------------------------------------------
# Deterministic parameter init (shapes match nn.Embedding + nn.GRU).
# ---------------------------------------------------------------------------
def xavier_uniform(key, shape):
    fan_out, fan_in = shape[0], shape[1]
    limit = float(np.sqrt(6.0 / (fan_in + fan_out)))
    return jax.random.uniform(key, shape, jnp.float32, -limit, limit)


def init_params(key, vocab_size, embed_size, hidden_size, num_layers):
    keys = jax.random.split(key, 1 + 4 * num_layers)
    params = {"embedding": jax.random.normal(keys[0], (vocab_size, embed_size),
                                             jnp.float32)}
    layers = []
    k = 1
    bound = 1.0 / float(np.sqrt(hidden_size))
    for l in range(num_layers):
        in_dim = embed_size if l == 0 else hidden_size
        layers.append({
            "w_ih": xavier_uniform(keys[k + 0], (3 * hidden_size, in_dim)),
            "w_hh": xavier_uniform(keys[k + 1], (3 * hidden_size, hidden_size)),
            "b_ih": jax.random.uniform(keys[k + 2], (3 * hidden_size,),
                                       jnp.float32, -bound, bound),
            "b_hh": jax.random.uniform(keys[k + 3], (3 * hidden_size,),
                                       jnp.float32, -bound, bound),
        })
        k += 4
    params["gru_layers"] = layers
    return params


# ---------------------------------------------------------------------------
# Pure-JAX reference (PyTorch GRU semantics) for a correctness check.
# ---------------------------------------------------------------------------
def reference_forward(tokens, params):
    x = jnp.take(params["embedding"], tokens, axis=0)   # (B, T, E)
    B, T, _ = x.shape
    layer_in = x
    hs = []
    for lp in params["gru_layers"]:
        H = lp["w_hh"].shape[1]
        h = jnp.zeros((B, H), jnp.float32)
        outs = []
        for t in range(T):
            xt = layer_in[:, t, :]
            gi = xt @ lp["w_ih"].T + lp["b_ih"]
            gh = h @ lp["w_hh"].T + lp["b_hh"]
            gi_r, gi_z, gi_n = jnp.split(gi, 3, axis=-1)
            gh_r, gh_z, gh_n = jnp.split(gh, 3, axis=-1)
            r = jax.nn.sigmoid(gi_r + gh_r)
            z = jax.nn.sigmoid(gi_z + gh_z)
            n = jnp.tanh(gi_n + r * gh_n)
            h = (1.0 - z) * n + z * h
            outs.append(h)
        layer_in = jnp.stack(outs, axis=1)
        hs.append(h)
    return layer_in, jnp.stack(hs, axis=0)


if __name__ == "__main__":
    vocab_size, embed_size, hidden_size, num_layers = 50, 16, 32, 2
    batch, num_steps = 2, 8

    key = jax.random.PRNGKey(0)
    pkey, tkey = jax.random.split(key)
    params = init_params(pkey, vocab_size, embed_size, hidden_size, num_layers)
    tokens = jax.random.randint(tkey, (batch, num_steps), 0, vocab_size, jnp.int32)

    outputs, hidden_state = seq2seq_encoder_forward(tokens, params)
    outputs = jax.block_until_ready(outputs)
    hidden_state = jax.block_until_ready(hidden_state)

    assert outputs.shape == (batch, num_steps, hidden_size)
    assert hidden_state.shape == (num_layers, batch, hidden_size)

    ref_out, ref_h = reference_forward(tokens, params)
    np.testing.assert_allclose(np.asarray(outputs), np.asarray(ref_out),
                               rtol=1e-5, atol=1e-5)
    np.testing.assert_allclose(np.asarray(hidden_state), np.asarray(ref_h),
                               rtol=1e-5, atol=1e-5)

    print("KERNEL_OK")
</pallas_src>

<mosaic_0001>
module attributes {stable_mosaic.version = 11 : i64} {
  func.func @kernel(%arg0: i32, %arg1: memref<16xi32, #tpu.memory_space<smem>>, %arg2: memref<50x16xf32, #tpu.memory_space<vmem>>, %arg3: memref<16x384xf32, #tpu.memory_space<vmem>>, %arg4: memref<128x384xf32, #tpu.memory_space<vmem>>, %arg5: memref<1x384xf32, #tpu.memory_space<vmem>>, %arg6: memref<1x128xf32, #tpu.memory_space<vmem>>, %arg7: memref<128x384xf32, #tpu.memory_space<vmem>>, %arg8: memref<128x384xf32, #tpu.memory_space<vmem>>, %arg9: memref<1x384xf32, #tpu.memory_space<vmem>>, %arg10: memref<1x128xf32, #tpu.memory_space<vmem>>, %arg11: memref<2x8x128xf32, #tpu.memory_space<vmem>>, %arg12: memref<2x2x128xf32, #tpu.memory_space<vmem>>) attributes {dimension_semantics = [#tpu.dimension_semantics<arbitrary>], iteration_bounds = array<i64: 1>, scalar_prefetch = 0 : i64, scratch_operands = 0 : i64, tpu.core_type = #tpu.core_type<tc>, window_params = [{transform_indices = @transform_0, window_bounds = array<i64: 16>}, {pipeline_mode = #tpu.pipeline_mode<synchronous>, transform_indices = @transform_1, window_bounds = array<i64: 50, 16>}, {pipeline_mode = #tpu.pipeline_mode<synchronous>, transform_indices = @transform_2, window_bounds = array<i64: 16, 384>}, {pipeline_mode = #tpu.pipeline_mode<synchronous>, transform_indices = @transform_3, window_bounds = array<i64: 128, 384>}, {pipeline_mode = #tpu.pipeline_mode<synchronous>, transform_indices = @transform_4, window_bounds = array<i64: 1, 384>}, {pipeline_mode = #tpu.pipeline_mode<synchronous>, transform_indices = @transform_5, window_bounds = array<i64: 1, 128>}, {pipeline_mode = #tpu.pipeline_mode<synchronous>, transform_indices = @transform_6, window_bounds = array<i64: 128, 384>}, {pipeline_mode = #tpu.pipeline_mode<synchronous>, transform_indices = @transform_7, window_bounds = array<i64: 128, 384>}, {pipeline_mode = #tpu.pipeline_mode<synchronous>, transform_indices = @transform_8, window_bounds = array<i64: 1, 384>}, {pipeline_mode = #tpu.pipeline_mode<synchronous>, transform_indices = @transform_9, window_bounds = array<i64: 1, 128>}, {pipeline_mode = #tpu.pipeline_mode<synchronous>, transform_indices = @transform_10, window_bounds = array<i64: 2, 8, 128>}, {pipeline_mode = #tpu.pipeline_mode<synchronous>, transform_indices = @transform_11, window_bounds = array<i64: 2, 2, 128>}]} {
    %c0 = arith.constant 0 : index
    %0 = memref.load %arg1[%c0] : memref<16xi32, #tpu.memory_space<smem>>
    %1 = arith.index_cast %0 : i32 to index
    %c0_0 = arith.constant 0 : index
    %2 = vector.load %arg2[%1, %c0_0] : memref<50x16xf32, #tpu.memory_space<vmem>>, vector<1x16xf32>
    %c1 = arith.constant 1 : index
    %3 = memref.load %arg1[%c1] : memref<16xi32, #tpu.memory_space<smem>>
    %4 = arith.index_cast %3 : i32 to index
    %c0_1 = arith.constant 0 : index
    %5 = vector.load %arg2[%4, %c0_1] : memref<50x16xf32, #tpu.memory_space<vmem>>, vector<1x16xf32>
    %c2 = arith.constant 2 : index
    %6 = memref.load %arg1[%c2] : memref<16xi32, #tpu.memory_space<smem>>
    %7 = arith.index_cast %6 : i32 to index
    %c0_2 = arith.constant 0 : index
    %8 = vector.load %arg2[%7, %c0_2] : memref<50x16xf32, #tpu.memory_space<vmem>>, vector<1x16xf32>
    %c3 = arith.constant 3 : index
    %9 = memref.load %arg1[%c3] : memref<16xi32, #tpu.memory_space<smem>>
    %10 = arith.index_cast %9 : i32 to index
    %c0_3 = arith.constant 0 : index
    %11 = vector.load %arg2[%10, %c0_3] : memref<50x16xf32, #tpu.memory_space<vmem>>, vector<1x16xf32>
    %c4 = arith.constant 4 : index
    %12 = memref.load %arg1[%c4] : memref<16xi32, #tpu.memory_space<smem>>
    %13 = arith.index_cast %12 : i32 to index
    %c0_4 = arith.constant 0 : index
    %14 = vector.load %arg2[%13, %c0_4] : memref<50x16xf32, #tpu.memory_space<vmem>>, vector<1x16xf32>
    %c5 = arith.constant 5 : index
    %15 = memref.load %arg1[%c5] : memref<16xi32, #tpu.memory_space<smem>>
    %16 = arith.index_cast %15 : i32 to index
    %c0_5 = arith.constant 0 : index
    %17 = vector.load %arg2[%16, %c0_5] : memref<50x16xf32, #tpu.memory_space<vmem>>, vector<1x16xf32>
    %c6 = arith.constant 6 : index
    %18 = memref.load %arg1[%c6] : memref<16xi32, #tpu.memory_space<smem>>
    %19 = arith.index_cast %18 : i32 to index
    %c0_6 = arith.constant 0 : index
    %20 = vector.load %arg2[%19, %c0_6] : memref<50x16xf32, #tpu.memory_space<vmem>>, vector<1x16xf32>
    %c7 = arith.constant 7 : index
    %21 = memref.load %arg1[%c7] : memref<16xi32, #tpu.memory_space<smem>>
    %22 = arith.index_cast %21 : i32 to index
    %c0_7 = arith.constant 0 : index
    %23 = vector.load %arg2[%22, %c0_7] : memref<50x16xf32, #tpu.memory_space<vmem>>, vector<1x16xf32>
    %c8 = arith.constant 8 : index
    %24 = memref.load %arg1[%c8] : memref<16xi32, #tpu.memory_space<smem>>
    %25 = arith.index_cast %24 : i32 to index
    %c0_8 = arith.constant 0 : index
    %26 = vector.load %arg2[%25, %c0_8] : memref<50x16xf32, #tpu.memory_space<vmem>>, vector<1x16xf32>
    %c9 = arith.constant 9 : index
    %27 = memref.load %arg1[%c9] : memref<16xi32, #tpu.memory_space<smem>>
    %28 = arith.index_cast %27 : i32 to index
    %c0_9 = arith.constant 0 : index
    %29 = vector.load %arg2[%28, %c0_9] : memref<50x16xf32, #tpu.memory_space<vmem>>, vector<1x16xf32>
    %c10 = arith.constant 10 : index
    %30 = memref.load %arg1[%c10] : memref<16xi32, #tpu.memory_space<smem>>
    %31 = arith.index_cast %30 : i32 to index
    %c0_10 = arith.constant 0 : index
    %32 = vector.load %arg2[%31, %c0_10] : memref<50x16xf32, #tpu.memory_space<vmem>>, vector<1x16xf32>
    %c11 = arith.constant 11 : index
    %33 = memref.load %arg1[%c11] : memref<16xi32, #tpu.memory_space<smem>>
    %34 = arith.index_cast %33 : i32 to index
    %c0_11 = arith.constant 0 : index
    %35 = vector.load %arg2[%34, %c0_11] : memref<50x16xf32, #tpu.memory_space<vmem>>, vector<1x16xf32>
    %c12 = arith.constant 12 : index
    %36 = memref.load %arg1[%c12] : memref<16xi32, #tpu.memory_space<smem>>
    %37 = arith.index_cast %36 : i32 to index
    %c0_12 = arith.constant 0 : index
    %38 = vector.load %arg2[%37, %c0_12] : memref<50x16xf32, #tpu.memory_space<vmem>>, vector<1x16xf32>
    %c13 = arith.constant 13 : index
    %39 = memref.load %arg1[%c13] : memref<16xi32, #tpu.memory_space<smem>>
    %40 = arith.index_cast %39 : i32 to index
    %c0_13 = arith.constant 0 : index
    %41 = vector.load %arg2[%40, %c0_13] : memref<50x16xf32, #tpu.memory_space<vmem>>, vector<1x16xf32>
    %c14 = arith.constant 14 : index
    %42 = memref.load %arg1[%c14] : memref<16xi32, #tpu.memory_space<smem>>
    %43 = arith.index_cast %42 : i32 to index
    %c0_14 = arith.constant 0 : index
    %44 = vector.load %arg2[%43, %c0_14] : memref<50x16xf32, #tpu.memory_space<vmem>>, vector<1x16xf32>
    %c15 = arith.constant 15 : index
    %45 = memref.load %arg1[%c15] : memref<16xi32, #tpu.memory_space<smem>>
    %46 = arith.index_cast %45 : i32 to index
    %c0_15 = arith.constant 0 : index
    %47 = vector.load %arg2[%46, %c0_15] : memref<50x16xf32, #tpu.memory_space<vmem>>, vector<1x16xf32>
    %48 = tpu.concatenate %2, %5, %8, %11, %14, %17, %20, %23, %26, %29, %32, %35, %38, %41, %44, %47 in 0 : vector<1x16xf32>, vector<1x16xf32>, vector<1x16xf32>, vector<1x16xf32>, vector<1x16xf32>, vector<1x16xf32>, vector<1x16xf32>, vector<1x16xf32>, vector<1x16xf32>, vector<1x16xf32>, vector<1x16xf32>, vector<1x16xf32>, vector<1x16xf32>, vector<1x16xf32>, vector<1x16xf32>, vector<1x16xf32> -> vector<16x16xf32>
    %c0_16 = arith.constant 0 : index
    %c0_17 = arith.constant 0 : index
    %49 = vector.load %arg3[%c0_16, %c0_17] : memref<16x384xf32, #tpu.memory_space<vmem>>, vector<16x384xf32>
    %c0_18 = arith.constant 0 : index
    %c0_19 = arith.constant 0 : index
    %50 = vector.load %arg4[%c0_18, %c0_19] : memref<128x384xf32, #tpu.memory_space<vmem>>, vector<128x384xf32>
    %c0_20 = arith.constant 0 : index
    %c0_21 = arith.constant 0 : index
    %51 = vector.load %arg5[%c0_20, %c0_21] : memref<1x384xf32, #tpu.memory_space<vmem>>, vector<1x384xf32>
    %c0_22 = arith.constant 0 : index
    %c0_23 = arith.constant 0 : index
    %52 = vector.load %arg6[%c0_22, %c0_23] : memref<1x128xf32, #tpu.memory_space<vmem>>, vector<1x128xf32>
    %cst = arith.constant dense<0.000000e+00> : vector<16x384xf32>
    %53 = tpu.matmul %48, %49, %cst {dimension_numbers = #tpu.dot_dimension_numbers<[1], [0], [0], [1], [0, 0, 1, 1], [], []>} : vector<16x16xf32>, vector<16x384xf32>, vector<16x384xf32> -> vector<16x384xf32>
    %54 = vector.broadcast %51 : vector<1x384xf32> to vector<16x384xf32>
    %55 = arith.addf %53, %54 : vector<16x384xf32>
    %56 = vector.shape_cast %52 : vector<1x128xf32> to vector<1x128xf32>
    %57 = vector.broadcast %56 : vector<1x128xf32> to vector<2x128xf32>
    %cst_24 = arith.constant 0.000000e+00 : f32
    %58 = vector.broadcast %cst_24 : f32 to vector<2x128xf32>
    %59 = vector.extract_strided_slice %55 {offsets = [0, 0], sizes = [2, 384], strides = [1, 1]} : vector<16x384xf32> to vector<2x384xf32>
    %cst_25 = arith.constant dense<0.000000e+00> : vector<2x384xf32>
    %60 = tpu.matmul %58, %50, %cst_25 {dimension_numbers = #tpu.dot_dimension_numbers<[1], [0], [0], [1], [0, 0, 1, 1], [], []>} : vector<2x128xf32>, vector<128x384xf32>, vector<2x384xf32> -> vector<2x384xf32>
    %61 = vector.extract_strided_slice %59 {offsets = [0, 0], sizes = [2, 128], strides = [1, 1]} : vector<2x384xf32> to vector<2x128xf32>
    %62 = vector.extract_strided_slice %60 {offsets = [0, 0], sizes = [2, 128], strides = [1, 1]} : vector<2x384xf32> to vector<2x128xf32>
    %63 = arith.addf %61, %62 : vector<2x128xf32>
    %64 = arith.negf %63 : vector<2x128xf32>
    %65 = math.exp %64 : vector<2x128xf32>
    %cst_26 = arith.constant 1.000000e+00 : f32
    %66 = vector.broadcast %cst_26 : f32 to vector<2x128xf32>
    %67 = arith.addf %66, %65 : vector<2x128xf32>
    %68 = arith.divf %66, %67 : vector<2x128xf32>
    %69 = vector.extract_strided_slice %59 {offsets = [0, 128], sizes = [2, 128], strides = [1, 1]} : vector<2x384xf32> to vector<2x128xf32>
    %70 = vector.extract_strided_slice %60 {offsets = [0, 128], sizes = [2, 128], strides = [1, 1]} : vector<2x384xf32> to vector<2x128xf32>
    %71 = arith.addf %69, %70 : vector<2x128xf32>
    %72 = arith.negf %71 : vector<2x128xf32>
    %73 = math.exp %72 : vector<2x128xf32>
    %cst_27 = arith.constant 1.000000e+00 : f32
    %74 = vector.broadcast %cst_27 : f32 to vector<2x128xf32>
    %75 = arith.addf %74, %73 : vector<2x128xf32>
    %76 = arith.divf %74, %75 : vector<2x128xf32>
    %77 = vector.extract_strided_slice %59 {offsets = [0, 256], sizes = [2, 128], strides = [1, 1]} : vector<2x384xf32> to vector<2x128xf32>
    %78 = vector.extract_strided_slice %60 {offsets = [0, 256], sizes = [2, 128], strides = [1, 1]} : vector<2x384xf32> to vector<2x128xf32>
    %79 = arith.addf %78, %57 : vector<2x128xf32>
    %80 = arith.mulf %68, %79 : vector<2x128xf32>
    %81 = arith.addf %77, %80 : vector<2x128xf32>
    %82 = math.tanh %81 : vector<2x128xf32>
    %cst_28 = arith.constant 1.000000e+00 : f32
    %83 = vector.broadcast %cst_28 : f32 to vector<2x128xf32>
    %84 = arith.subf %83, %76 : vector<2x128xf32>
    %85 = arith.mulf %84, %82 : vector<2x128xf32>
    %86 = arith.mulf %76, %58 : vector<2x128xf32>
    %87 = arith.addf %85, %86 : vector<2x128xf32>
    %88 = vector.extract_strided_slice %55 {offsets = [2, 0], sizes = [2, 384], strides = [1, 1]} : vector<16x384xf32> to vector<2x384xf32>
    %cst_29 = arith.constant dense<0.000000e+00> : vector<2x384xf32>
    %89 = tpu.matmul %87, %50, %cst_29 {dimension_numbers = #tpu.dot_dimension_numbers<[1], [0], [0], [1], [0, 0, 1, 1], [], []>} : vector<2x128xf32>, vector<128x384xf32>, vector<2x384xf32> -> vector<2x384xf32>
    %90 = vector.extract_strided_slice %88 {offsets = [0, 0], sizes = [2, 128], strides = [1, 1]} : vector<2x384xf32> to vector<2x128xf32>
    %91 = vector.extract_strided_slice %89 {offsets = [0, 0], sizes = [2, 128], strides = [1, 1]} : vector<2x384xf32> to vector<2x128xf32>
    %92 = arith.addf %90, %91 : vector<2x128xf32>
    %93 = arith.negf %92 : vector<2x128xf32>
    %94 = math.exp %93 : vector<2x128xf32>
    %cst_30 = arith.constant 1.000000e+00 : f32
    %95 = vector.broadcast %cst_30 : f32 to vector<2x128xf32>
    %96 = arith.addf %95, %94 : vector<2x128xf32>
    %97 = arith.divf %95, %96 : vector<2x128xf32>
    %98 = vector.extract_strided_slice %88 {offsets = [0, 128], sizes = [2, 128], strides = [1, 1]} : vector<2x384xf32> to vector<2x128xf32>
    %99 = vector.extract_strided_slice %89 {offsets = [0, 128], sizes = [2, 128], strides = [1, 1]} : vector<2x384xf32> to vector<2x128xf32>
    %100 = arith.addf %98, %99 : vector<2x128xf32>
    %101 = arith.negf %100 : vector<2x128xf32>
    %102 = math.exp %101 : vector<2x128xf32>
    %cst_31 = arith.constant 1.000000e+00 : f32
    %103 = vector.broadcast %cst_31 : f32 to vector<2x128xf32>
    %104 = arith.addf %103, %102 : vector<2x128xf32>
    %105 = arith.divf %103, %104 : vector<2x128xf32>
    %106 = vector.extract_strided_slice %88 {offsets = [0, 256], sizes = [2, 128], strides = [1, 1]} : vector<2x384xf32> to vector<2x128xf32>
    %107 = vector.extract_strided_slice %89 {offsets = [0, 256], sizes = [2, 128], strides = [1, 1]} : vector<2x384xf32> to vector<2x128xf32>
    %108 = arith.addf %107, %57 : vector<2x128xf32>
    %109 = arith.mulf %97, %108 : vector<2x128xf32>
    %110 = arith.addf %106, %109 : vector<2x128xf32>
    %111 = math.tanh %110 : vector<2x128xf32>
    %cst_32 = arith.constant 1.000000e+00 : f32
    %112 = vector.broadcast %cst_32 : f32 to vector<2x128xf32>
    %113 = arith.subf %112, %105 : vector<2x128xf32>
    %114 = arith.mulf %113, %111 : vector<2x128xf32>
    %115 = arith.mulf %105, %87 : vector<2x128xf32>
    %116 = arith.addf %114, %115 : vector<2x128xf32>
    %117 = vector.extract_strided_slice %55 {offsets = [4, 0], sizes = [2, 384], strides = [1, 1]} : vector<16x384xf32> to vector<2x384xf32>
    %cst_33 = arith.constant dense<0.000000e+00> : vector<2x384xf32>
    %118 = tpu.matmul %116, %50, %cst_33 {dimension_numbers = #tpu.dot_dimension_numbers<[1], [0], [0], [1], [0, 0, 1, 1], [], []>} : vector<2x128xf32>, vector<128x384xf32>, vector<2x384xf32> -> vector<2x384xf32>
    %119 = vector.extract_strided_slice %117 {offsets = [0, 0], sizes = [2, 128], strides = [1, 1]} : vector<2x384xf32> to vector<2x128xf32>
    %120 = vector.extract_strided_slice %118 {offsets = [0, 0], sizes = [2, 128], strides = [1, 1]} : vector<2x384xf32> to vector<2x128xf32>
    %121 = arith.addf %119, %120 : vector<2x128xf32>
    %122 = arith.negf %121 : vector<2x128xf32>
    %123 = math.exp %122 : vector<2x128xf32>
    %cst_34 = arith.constant 1.000000e+00 : f32
    %124 = vector.broadcast %cst_34 : f32 to vector<2x128xf32>
    %125 = arith.addf %124, %123 : vector<2x128xf32>
    %126 = arith.divf %124, %125 : vector<2x128xf32>
    %127 = vector.extract_strided_slice %117 {offsets = [0, 128], sizes = [2, 128], strides = [1, 1]} : vector<2x384xf32> to vector<2x128xf32>
    %128 = vector.extract_strided_slice %118 {offsets = [0, 128], sizes = [2, 128], strides = [1, 1]} : vector<2x384xf32> to vector<2x128xf32>
    %129 = arith.addf %127, %128 : vector<2x128xf32>
    %130 = arith.negf %129 : vector<2x128xf32>
    %131 = math.exp %130 : vector<2x128xf32>
    %cst_35 = arith.constant 1.000000e+00 : f32
    %132 = vector.broadcast %cst_35 : f32 to vector<2x128xf32>
    %133 = arith.addf %132, %131 : vector<2x128xf32>
    %134 = arith.divf %132, %133 : vector<2x128xf32>
    %135 = vector.extract_strided_slice %117 {offsets = [0, 256], sizes = [2, 128], strides = [1, 1]} : vector<2x384xf32> to vector<2x128xf32>
    %136 = vector.extract_strided_slice %118 {offsets = [0, 256], sizes = [2, 128], strides = [1, 1]} : vector<2x384xf32> to vector<2x128xf32>
    %137 = arith.addf %136, %57 : vector<2x128xf32>
    %138 = arith.mulf %126, %137 : vector<2x128xf32>
    %139 = arith.addf %135, %138 : vector<2x128xf32>
    %140 = math.tanh %139 : vector<2x128xf32>
    %cst_36 = arith.constant 1.000000e+00 : f32
    %141 = vector.broadcast %cst_36 : f32 to vector<2x128xf32>
    %142 = arith.subf %141, %134 : vector<2x128xf32>
    %143 = arith.mulf %142, %140 : vector<2x128xf32>
    %144 = arith.mulf %134, %116 : vector<2x128xf32>
    %145 = arith.addf %143, %144 : vector<2x128xf32>
    %146 = vector.extract_strided_slice %55 {offsets = [6, 0], sizes = [2, 384], strides = [1, 1]} : vector<16x384xf32> to vector<2x384xf32>
    %cst_37 = arith.constant dense<0.000000e+00> : vector<2x384xf32>
    %147 = tpu.matmul %145, %50, %cst_37 {dimension_numbers = #tpu.dot_dimension_numbers<[1], [0], [0], [1], [0, 0, 1, 1], [], []>} : vector<2x128xf32>, vector<128x384xf32>, vector<2x384xf32> -> vector<2x384xf32>
    %148 = vector.extract_strided_slice %146 {offsets = [0, 0], sizes = [2, 128], strides = [1, 1]} : vector<2x384xf32> to vector<2x128xf32>
    %149 = vector.extract_strided_slice %147 {offsets = [0, 0], sizes = [2, 128], strides = [1, 1]} : vector<2x384xf32> to vector<2x128xf32>
    %150 = arith.addf %148, %149 : vector<2x128xf32>
    %151 = arith.negf %150 : vector<2x128xf32>
    %152 = math.exp %151 : vector<2x128xf32>
    %cst_38 = arith.constant 1.000000e+00 : f32
    %153 = vector.broadcast %cst_38 : f32 to vector<2x128xf32>
    %154 = arith.addf %153, %152 : vector<2x128xf32>
    %155 = arith.divf %153, %154 : vector<2x128xf32>
    %156 = vector.extract_strided_slice %146 {offsets = [0, 128], sizes = [2, 128], strides = [1, 1]} : vector<2x384xf32> to vector<2x128xf32>
    %157 = vector.extract_strided_slice %147 {offsets = [0, 128], sizes = [2, 128], strides = [1, 1]} : vector<2x384xf32> to vector<2x128xf32>
    %158 = arith.addf %156, %157 : vector<2x128xf32>
    %159 = arith.negf %158 : vector<2x128xf32>
    %160 = math.exp %159 : vector<2x128xf32>
    %cst_39 = arith.constant 1.000000e+00 : f32
    %161 = vector.broadcast %cst_39 : f32 to vector<2x128xf32>
    %162 = arith.addf %161, %160 : vector<2x128xf32>
    %163 = arith.divf %161, %162 : vector<2x128xf32>
    %164 = vector.extract_strided_slice %146 {offsets = [0, 256], sizes = [2, 128], strides = [1, 1]} : vector<2x384xf32> to vector<2x128xf32>
    %165 = vector.extract_strided_slice %147 {offsets = [0, 256], sizes = [2, 128], strides = [1, 1]} : vector<2x384xf32> to vector<2x128xf32>
    %166 = arith.addf %165, %57 : vector<2x128xf32>
    %167 = arith.mulf %155, %166 : vector<2x128xf32>
    %168 = arith.addf %164, %167 : vector<2x128xf32>
    %169 = math.tanh %168 : vector<2x128xf32>
    %cst_40 = arith.constant 1.000000e+00 : f32
    %170 = vector.broadcast %cst_40 : f32 to vector<2x128xf32>
    %171 = arith.subf %170, %163 : vector<2x128xf32>
    %172 = arith.mulf %171, %169 : vector<2x128xf32>
    %173 = arith.mulf %163, %145 : vector<2x128xf32>
    %174 = arith.addf %172, %173 : vector<2x128xf32>
    %175 = vector.extract_strided_slice %55 {offsets = [8, 0], sizes = [2, 384], strides = [1, 1]} : vector<16x384xf32> to vector<2x384xf32>
    %cst_41 = arith.constant dense<0.000000e+00> : vector<2x384xf32>
    %176 = tpu.matmul %174, %50, %cst_41 {dimension_numbers = #tpu.dot_dimension_numbers<[1], [0], [0], [1], [0, 0, 1, 1], [], []>} : vector<2x128xf32>, vector<128x384xf32>, vector<2x384xf32> -> vector<2x384xf32>
    %177 = vector.extract_strided_slice %175 {offsets = [0, 0], sizes = [2, 128], strides = [1, 1]} : vector<2x384xf32> to vector<2x128xf32>
    %178 = vector.extract_strided_slice %176 {offsets = [0, 0], sizes = [2, 128], strides = [1, 1]} : vector<2x384xf32> to vector<2x128xf32>
    %179 = arith.addf %177, %178 : vector<2x128xf32>
    %180 = arith.negf %179 : vector<2x128xf32>
    %181 = math.exp %180 : vector<2x128xf32>
    %cst_42 = arith.constant 1.000000e+00 : f32
    %182 = vector.broadcast %cst_42 : f32 to vector<2x128xf32>
    %183 = arith.addf %182, %181 : vector<2x128xf32>
    %184 = arith.divf %182, %183 : vector<2x128xf32>
    %185 = vector.extract_strided_slice %175 {offsets = [0, 128], sizes = [2, 128], strides = [1, 1]} : vector<2x384xf32> to vector<2x128xf32>
    %186 = vector.extract_strided_slice %176 {offsets = [0, 128], sizes = [2, 128], strides = [1, 1]} : vector<2x384xf32> to vector<2x128xf32>
    %187 = arith.addf %185, %186 : vector<2x128xf32>
    %188 = arith.negf %187 : vector<2x128xf32>
    %189 = math.exp %188 : vector<2x128xf32>
    %cst_43 = arith.constant 1.000000e+00 : f32
    %190 = vector.broadcast %cst_43 : f32 to vector<2x128xf32>
    %191 = arith.addf %190, %189 : vector<2x128xf32>
    %192 = arith.divf %190, %191 : vector<2x128xf32>
    %193 = vector.extract_strided_slice %175 {offsets = [0, 256], sizes = [2, 128], strides = [1, 1]} : vector<2x384xf32> to vector<2x128xf32>
    %194 = vector.extract_strided_slice %176 {offsets = [0, 256], sizes = [2, 128], strides = [1, 1]} : vector<2x384xf32> to vector<2x128xf32>
    %195 = arith.addf %194, %57 : vector<2x128xf32>
    %196 = arith.mulf %184, %195 : vector<2x128xf32>
    %197 = arith.addf %193, %196 : vector<2x128xf32>
    %198 = math.tanh %197 : vector<2x128xf32>
    %cst_44 = arith.constant 1.000000e+00 : f32
    %199 = vector.broadcast %cst_44 : f32 to vector<2x128xf32>
    %200 = arith.subf %199, %192 : vector<2x128xf32>
    %201 = arith.mulf %200, %198 : vector<2x128xf32>
    %202 = arith.mulf %192, %174 : vector<2x128xf32>
    %203 = arith.addf %201, %202 : vector<2x128xf32>
    %204 = vector.extract_strided_slice %55 {offsets = [10, 0], sizes = [2, 384], strides = [1, 1]} : vector<16x384xf32> to vector<2x384xf32>
    %cst_45 = arith.constant dense<0.000000e+00> : vector<2x384xf32>
    %205 = tpu.matmul %203, %50, %cst_45 {dimension_numbers = #tpu.dot_dimension_numbers<[1], [0], [0], [1], [0, 0, 1, 1], [], []>} : vector<2x128xf32>, vector<128x384xf32>, vector<2x384xf32> -> vector<2x384xf32>
    %206 = vector.extract_strided_slice %204 {offsets = [0, 0], sizes = [2, 128], strides = [1, 1]} : vector<2x384xf32> to vector<2x128xf32>
    %207 = vector.extract_strided_slice %205 {offsets = [0, 0], sizes = [2, 128], strides = [1, 1]} : vector<2x384xf32> to vector<2x128xf32>
    %208 = arith.addf %206, %207 : vector<2x128xf32>
    %209 = arith.negf %208 : vector<2x128xf32>
    %210 = math.exp %209 : vector<2x128xf32>
    %cst_46 = arith.constant 1.000000e+00 : f32
    %211 = vector.broadcast %cst_46 : f32 to vector<2x128xf32>
    %212 = arith.addf %211, %210 : vector<2x128xf32>
    %213 = arith.divf %211, %212 : vector<2x128xf32>
    %214 = vector.extract_strided_slice %204 {offsets = [0, 128], sizes = [2, 128], strides = [1, 1]} : vector<2x384xf32> to vector<2x128xf32>
    %215 = vector.extract_strided_slice %205 {offsets = [0, 128], sizes = [2, 128], strides = [1, 1]} : vector<2x384xf32> to vector<2x128xf32>
    %216 = arith.addf %214, %215 : vector<2x128xf32>
    %217 = arith.negf %216 : vector<2x128xf32>
    %218 = math.exp %217 : vector<2x128xf32>
    %cst_47 = arith.constant 1.000000e+00 : f32
    %219 = vector.broadcast %cst_47 : f32 to vector<2x128xf32>
    %220 = arith.addf %219, %218 : vector<2x128xf32>
    %221 = arith.divf %219, %220 : vector<2x128xf32>
    %222 = vector.extract_strided_slice %204 {offsets = [0, 256], sizes = [2, 128], strides = [1, 1]} : vector<2x384xf32> to vector<2x128xf32>
    %223 = vector.extract_strided_slice %205 {offsets = [0, 256], sizes = [2, 128], strides = [1, 1]} : vector<2x384xf32> to vector<2x128xf32>
    %224 = arith.addf %223, %57 : vector<2x128xf32>
    %225 = arith.mulf %213, %224 : vector<2x128xf32>
    %226 = arith.addf %222, %225 : vector<2x128xf32>
    %227 = math.tanh %226 : vector<2x128xf32>
    %cst_48 = arith.constant 1.000000e+00 : f32
    %228 = vector.broadcast %cst_48 : f32 to vector<2x128xf32>
    %229 = arith.subf %228, %221 : vector<2x128xf32>
    %230 = arith.mulf %229, %227 : vector<2x128xf32>
    %231 = arith.mulf %221, %203 : vector<2x128xf32>
    %232 = arith.addf %230, %231 : vector<2x128xf32>
    %233 = vector.extract_strided_slice %55 {offsets = [12, 0], sizes = [2, 384], strides = [1, 1]} : vector<16x384xf32> to vector<2x384xf32>
    %cst_49 = arith.constant dense<0.000000e+00> : vector<2x384xf32>
    %234 = tpu.matmul %232, %50, %cst_49 {dimension_numbers = #tpu.dot_dimension_numbers<[1], [0], [0], [1], [0, 0, 1, 1], [], []>} : vector<2x128xf32>, vector<128x384xf32>, vector<2x384xf32> -> vector<2x384xf32>
    %235 = vector.extract_strided_slice %233 {offsets = [0, 0], sizes = [2, 128], strides = [1, 1]} : vector<2x384xf32> to vector<2x128xf32>
    %236 = vector.extract_strided_slice %234 {offsets = [0, 0], sizes = [2, 128], strides = [1, 1]} : vector<2x384xf32> to vector<2x128xf32>
    %237 = arith.addf %235, %236 : vector<2x128xf32>
    %238 = arith.negf %237 : vector<2x128xf32>
    %239 = math.exp %238 : vector<2x128xf32>
    %cst_50 = arith.constant 1.000000e+00 : f32
    %240 = vector.broadcast %cst_50 : f32 to vector<2x128xf32>
    %241 = arith.addf %240, %239 : vector<2x128xf32>
    %242 = arith.divf %240, %241 : vector<2x128xf32>
    %243 = vector.extract_strided_slice %233 {offsets = [0, 128], sizes = [2, 128], strides = [1, 1]} : vector<2x384xf32> to vector<2x128xf32>
    %244 = vector.extract_strided_slice %234 {offsets = [0, 128], sizes = [2, 128], strides = [1, 1]} : vector<2x384xf32> to vector<2x128xf32>
    %245 = arith.addf %243, %244 : vector<2x128xf32>
    %246 = arith.negf %245 : vector<2x128xf32>
    %247 = math.exp %246 : vector<2x128xf32>
    %cst_51 = arith.constant 1.000000e+00 : f32
    %248 = vector.broadcast %cst_51 : f32 to vector<2x128xf32>
    %249 = arith.addf %248, %247 : vector<2x128xf32>
    %250 = arith.divf %248, %249 : vector<2x128xf32>
    %251 = vector.extract_strided_slice %233 {offsets = [0, 256], sizes = [2, 128], strides = [1, 1]} : vector<2x384xf32> to vector<2x128xf32>
    %252 = vector.extract_strided_slice %234 {offsets = [0, 256], sizes = [2, 128], strides = [1, 1]} : vector<2x384xf32> to vector<2x128xf32>
    %253 = arith.addf %252, %57 : vector<2x128xf32>
    %254 = arith.mulf %242, %253 : vector<2x128xf32>
    %255 = arith.addf %251, %254 : vector<2x128xf32>
    %256 = math.tanh %255 : vector<2x128xf32>
    %cst_52 = arith.constant 1.000000e+00 : f32
    %257 = vector.broadcast %cst_52 : f32 to vector<2x128xf32>
    %258 = arith.subf %257, %250 : vector<2x128xf32>
    %259 = arith.mulf %258, %256 : vector<2x128xf32>
    %260 = arith.mulf %250, %232 : vector<2x128xf32>
    %261 = arith.addf %259, %260 : vector<2x128xf32>
    %262 = vector.extract_strided_slice %55 {offsets = [14, 0], sizes = [2, 384], strides = [1, 1]} : vector<16x384xf32> to vector<2x384xf32>
    %cst_53 = arith.constant dense<0.000000e+00> : vector<2x384xf32>
    %263 = tpu.matmul %261, %50, %cst_53 {dimension_numbers = #tpu.dot_dimension_numbers<[1], [0], [0], [1], [0, 0, 1, 1], [], []>} : vector<2x128xf32>, vector<128x384xf32>, vector<2x384xf32> -> vector<2x384xf32>
    %264 = vector.extract_strided_slice %262 {offsets = [0, 0], sizes = [2, 128], strides = [1, 1]} : vector<2x384xf32> to vector<2x128xf32>
    %265 = vector.extract_strided_slice %263 {offsets = [0, 0], sizes = [2, 128], strides = [1, 1]} : vector<2x384xf32> to vector<2x128xf32>
    %266 = arith.addf %264, %265 : vector<2x128xf32>
    %267 = arith.negf %266 : vector<2x128xf32>
    %268 = math.exp %267 : vector<2x128xf32>
    %cst_54 = arith.constant 1.000000e+00 : f32
    %269 = vector.broadcast %cst_54 : f32 to vector<2x128xf32>
    %270 = arith.addf %269, %268 : vector<2x128xf32>
    %271 = arith.divf %269, %270 : vector<2x128xf32>
    %272 = vector.extract_strided_slice %262 {offsets = [0, 128], sizes = [2, 128], strides = [1, 1]} : vector<2x384xf32> to vector<2x128xf32>
    %273 = vector.extract_strided_slice %263 {offsets = [0, 128], sizes = [2, 128], strides = [1, 1]} : vector<2x384xf32> to vector<2x128xf32>
    %274 = arith.addf %272, %273 : vector<2x128xf32>
    %275 = arith.negf %274 : vector<2x128xf32>
    %276 = math.exp %275 : vector<2x128xf32>
    %cst_55 = arith.constant 1.000000e+00 : f32
    %277 = vector.broadcast %cst_55 : f32 to vector<2x128xf32>
    %278 = arith.addf %277, %276 : vector<2x128xf32>
    %279 = arith.divf %277, %278 : vector<2x128xf32>
    %280 = vector.extract_strided_slice %262 {offsets = [0, 256], sizes = [2, 128], strides = [1, 1]} : vector<2x384xf32> to vector<2x128xf32>
    %281 = vector.extract_strided_slice %263 {offsets = [0, 256], sizes = [2, 128], strides = [1, 1]} : vector<2x384xf32> to vector<2x128xf32>
    %282 = arith.addf %281, %57 : vector<2x128xf32>
    %283 = arith.mulf %271, %282 : vector<2x128xf32>
    %284 = arith.addf %280, %283 : vector<2x128xf32>
    %285 = math.tanh %284 : vector<2x128xf32>
    %cst_56 = arith.constant 1.000000e+00 : f32
    %286 = vector.broadcast %cst_56 : f32 to vector<2x128xf32>
    %287 = arith.subf %286, %279 : vector<2x128xf32>
    %288 = arith.mulf %287, %285 : vector<2x128xf32>
    %289 = arith.mulf %279, %261 : vector<2x128xf32>
    %290 = arith.addf %288, %289 : vector<2x128xf32>
    %c0_57 = arith.constant 0 : index
    %c0_58 = arith.constant 0 : index
    %c0_59 = arith.constant 0 : index
    %291 = vector.load %arg12[%c0_57, %c0_58, %c0_59] : memref<2x2x128xf32, #tpu.memory_space<vmem>>, vector<1x2x128xf32>
    %292 = vector.shape_cast %291 : vector<1x2x128xf32> to vector<2x128xf32>
    %293 = vector.shape_cast %290 : vector<2x128xf32> to vector<1x2x128xf32>
    tpu.vector_store %arg12[%c0_57, %c0_58, %c0_59], %293 {strides = array<i32>} : memref<2x2x128xf32, #tpu.memory_space<vmem>>, vector<1x2x128xf32>,
    %294 = tpu.concatenate %87, %116, %145, %174, %203, %232, %261, %290 in 0 : vector<2x128xf32>, vector<2x128xf32>, vector<2x128xf32>, vector<2x128xf32>, vector<2x128xf32>, vector<2x128xf32>, vector<2x128xf32>, vector<2x128xf32> -> vector<16x128xf32>
    %c0_60 = arith.constant 0 : index
    %c0_61 = arith.constant 0 : index
    %295 = vector.load %arg7[%c0_60, %c0_61] : memref<128x384xf32, #tpu.memory_space<vmem>>, vector<128x384xf32>
    %c0_62 = arith.constant 0 : index
    %c0_63 = arith.constant 0 : index
    %296 = vector.load %arg8[%c0_62, %c0_63] : memref<128x384xf32, #tpu.memory_space<vmem>>, vector<128x384xf32>
    %c0_64 = arith.constant 0 : index
    %c0_65 = arith.constant 0 : index
    %297 = vector.load %arg9[%c0_64, %c0_65] : memref<1x384xf32, #tpu.memory_space<vmem>>, vector<1x384xf32>
    %c0_66 = arith.constant 0 : index
    %c0_67 = arith.constant 0 : index
    %298 = vector.load %arg10[%c0_66, %c0_67] : memref<1x128xf32, #tpu.memory_space<vmem>>, vector<1x128xf32>
    %cst_68 = arith.constant dense<0.000000e+00> : vector<16x384xf32>
    %299 = tpu.matmul %294, %295, %cst_68 {dimension_numbers = #tpu.dot_dimension_numbers<[1], [0], [0], [1], [0, 0, 1, 1], [], []>} : vector<16x128xf32>, vector<128x384xf32>, vector<16x384xf32> -> vector<16x384xf32>
    %300 = vector.broadcast %297 : vector<1x384xf32> to vector<16x384xf32>
    %301 = arith.addf %299, %300 : vector<16x384xf32>
    %302 = vector.shape_cast %298 : vector<1x128xf32> to vector<1x128xf32>
    %303 = vector.broadcast %302 : vector<1x128xf32> to vector<2x128xf32>
    %cst_69 = arith.constant 0.000000e+00 : f32
    %304 = vector.broadcast %cst_69 : f32 to vector<2x128xf32>
    %305 = vector.extract_strided_slice %301 {offsets = [0, 0], sizes = [2, 384], strides = [1, 1]} : vector<16x384xf32> to vector<2x384xf32>
    %cst_70 = arith.constant dense<0.000000e+00> : vector<2x384xf32>
    %306 = tpu.matmul %304, %296, %cst_70 {dimension_numbers = #tpu.dot_dimension_numbers<[1], [0], [0], [1], [0, 0, 1, 1], [], []>} : vector<2x128xf32>, vector<128x384xf32>, vector<2x384xf32> -> vector<2x384xf32>
    %307 = vector.extract_strided_slice %305 {offsets = [0, 0], sizes = [2, 128], strides = [1, 1]} : vector<2x384xf32> to vector<2x128xf32>
    %308 = vector.extract_strided_slice %306 {offsets = [0, 0], sizes = [2, 128], strides = [1, 1]} : vector<2x384xf32> to vector<2x128xf32>
    %309 = arith.addf %307, %308 : vector<2x128xf32>
    %310 = arith.negf %309 : vector<2x128xf32>
    %311 = math.exp %310 : vector<2x128xf32>
    %cst_71 = arith.constant 1.000000e+00 : f32
    %312 = vector.broadcast %cst_71 : f32 to vector<2x128xf32>
    %313 = arith.addf %312, %311 : vector<2x128xf32>
    %314 = arith.divf %312, %313 : vector<2x128xf32>
    %315 = vector.extract_strided_slice %305 {offsets = [0, 128], sizes = [2, 128], strides = [1, 1]} : vector<2x384xf32> to vector<2x128xf32>
    %316 = vector.extract_strided_slice %306 {offsets = [0, 128], sizes = [2, 128], strides = [1, 1]} : vector<2x384xf32> to vector<2x128xf32>
    %317 = arith.addf %315, %316 : vector<2x128xf32>
    %318 = arith.negf %317 : vector<2x128xf32>
    %319 = math.exp %318 : vector<2x128xf32>
    %cst_72 = arith.constant 1.000000e+00 : f32
    %320 = vector.broadcast %cst_72 : f32 to vector<2x128xf32>
    %321 = arith.addf %320, %319 : vector<2x128xf32>
    %322 = arith.divf %320, %321 : vector<2x128xf32>
    %323 = vector.extract_strided_slice %305 {offsets = [0, 256], sizes = [2, 128], strides = [1, 1]} : vector<2x384xf32> to vector<2x128xf32>
    %324 = vector.extract_strided_slice %306 {offsets = [0, 256], sizes = [2, 128], strides = [1, 1]} : vector<2x384xf32> to vector<2x128xf32>
    %325 = arith.addf %324, %303 : vector<2x128xf32>
    %326 = arith.mulf %314, %325 : vector<2x128xf32>
    %327 = arith.addf %323, %326 : vector<2x128xf32>
    %328 = math.tanh %327 : vector<2x128xf32>
    %cst_73 = arith.constant 1.000000e+00 : f32
    %329 = vector.broadcast %cst_73 : f32 to vector<2x128xf32>
    %330 = arith.subf %329, %322 : vector<2x128xf32>
    %331 = arith.mulf %330, %328 : vector<2x128xf32>
    %332 = arith.mulf %322, %304 : vector<2x128xf32>
    %333 = arith.addf %331, %332 : vector<2x128xf32>
    %334 = vector.extract_strided_slice %301 {offsets = [2, 0], sizes = [2, 384], strides = [1, 1]} : vector<16x384xf32> to vector<2x384xf32>
    %cst_74 = arith.constant dense<0.000000e+00> : vector<2x384xf32>
    %335 = tpu.matmul %333, %296, %cst_74 {dimension_numbers = #tpu.dot_dimension_numbers<[1], [0], [0], [1], [0, 0, 1, 1], [], []>} : vector<2x128xf32>, vector<128x384xf32>, vector<2x384xf32> -> vector<2x384xf32>
    %336 = vector.extract_strided_slice %334 {offsets = [0, 0], sizes = [2, 128], strides = [1, 1]} : vector<2x384xf32> to vector<2x128xf32>
    %337 = vector.extract_strided_slice %335 {offsets = [0, 0], sizes = [2, 128], strides = [1, 1]} : vector<2x384xf32> to vector<2x128xf32>
    %338 = arith.addf %336, %337 : vector<2x128xf32>
    %339 = arith.negf %338 : vector<2x128xf32>
    %340 = math.exp %339 : vector<2x128xf32>
    %cst_75 = arith.constant 1.000000e+00 : f32
    %341 = vector.broadcast %cst_75 : f32 to vector<2x128xf32>
    %342 = arith.addf %341, %340 : vector<2x128xf32>
    %343 = arith.divf %341, %342 : vector<2x128xf32>
    %344 = vector.extract_strided_slice %334 {offsets = [0, 128], sizes = [2, 128], strides = [1, 1]} : vector<2x384xf32> to vector<2x128xf32>
    %345 = vector.extract_strided_slice %335 {offsets = [0, 128], sizes = [2, 128], strides = [1, 1]} : vector<2x384xf32> to vector<2x128xf32>
    %346 = arith.addf %344, %345 : vector<2x128xf32>
    %347 = arith.negf %346 : vector<2x128xf32>
    %348 = math.exp %347 : vector<2x128xf32>
    %cst_76 = arith.constant 1.000000e+00 : f32
    %349 = vector.broadcast %cst_76 : f32 to vector<2x128xf32>
    %350 = arith.addf %349, %348 : vector<2x128xf32>
    %351 = arith.divf %349, %350 : vector<2x128xf32>
    %352 = vector.extract_strided_slice %334 {offsets = [0, 256], sizes = [2, 128], strides = [1, 1]} : vector<2x384xf32> to vector<2x128xf32>
    %353 = vector.extract_strided_slice %335 {offsets = [0, 256], sizes = [2, 128], strides = [1, 1]} : vector<2x384xf32> to vector<2x128xf32>
    %354 = arith.addf %353, %303 : vector<2x128xf32>
    %355 = arith.mulf %343, %354 : vector<2x128xf32>
    %356 = arith.addf %352, %355 : vector<2x128xf32>
    %357 = math.tanh %356 : vector<2x128xf32>
    %cst_77 = arith.constant 1.000000e+00 : f32
    %358 = vector.broadcast %cst_77 : f32 to vector<2x128xf32>
    %359 = arith.subf %358, %351 : vector<2x128xf32>
    %360 = arith.mulf %359, %357 : vector<2x128xf32>
    %361 = arith.mulf %351, %333 : vector<2x128xf32>
    %362 = arith.addf %360, %361 : vector<2x128xf32>
    %363 = vector.extract_strided_slice %301 {offsets = [4, 0], sizes = [2, 384], strides = [1, 1]} : vector<16x384xf32> to vector<2x384xf32>
    %cst_78 = arith.constant dense<0.000000e+00> : vector<2x384xf32>
    %364 = tpu.matmul %362, %296, %cst_78 {dimension_numbers = #tpu.dot_dimension_numbers<[1], [0], [0], [1], [0, 0, 1, 1], [], []>} : vector<2x128xf32>, vector<128x384xf32>, vector<2x384xf32> -> vector<2x384xf32>
    %365 = vector.extract_strided_slice %363 {offsets = [0, 0], sizes = [2, 128], strides = [1, 1]} : vector<2x384xf32> to vector<2x128xf32>
    %366 = vector.extract_strided_slice %364 {offsets = [0, 0], sizes = [2, 128], strides = [1, 1]} : vector<2x384xf32> to vector<2x128xf32>
    %367 = arith.addf %365, %366 : vector<2x128xf32>
    %368 = arith.negf %367 : vector<2x128xf32>
    %369 = math.exp %368 : vector<2x128xf32>
    %cst_79 = arith.constant 1.000000e+00 : f32
    %370 = vector.broadcast %cst_79 : f32 to vector<2x128xf32>
    %371 = arith.addf %370, %369 : vector<2x128xf32>
    %372 = arith.divf %370, %371 : vector<2x128xf32>
    %373 = vector.extract_strided_slice %363 {offsets = [0, 128], sizes = [2, 128], strides = [1, 1]} : vector<2x384xf32> to vector<2x128xf32>
    %374 = vector.extract_strided_slice %364 {offsets = [0, 128], sizes = [2, 128], strides = [1, 1]} : vector<2x384xf32> to vector<2x128xf32>
    %375 = arith.addf %373, %374 : vector<2x128xf32>
    %376 = arith.negf %375 : vector<2x128xf32>
    %377 = math.exp %376 : vector<2x128xf32>
    %cst_80 = arith.constant 1.000000e+00 : f32
    %378 = vector.broadcast %cst_80 : f32 to vector<2x128xf32>
    %379 = arith.addf %378, %377 : vector<2x128xf32>
    %380 = arith.divf %378, %379 : vector<2x128xf32>
    %381 = vector.extract_strided_slice %363 {offsets = [0, 256], sizes = [2, 128], strides = [1, 1]} : vector<2x384xf32> to vector<2x128xf32>
    %382 = vector.extract_strided_slice %364 {offsets = [0, 256], sizes = [2, 128], strides = [1, 1]} : vector<2x384xf32> to vector<2x128xf32>
    %383 = arith.addf %382, %303 : vector<2x128xf32>
    %384 = arith.mulf %372, %383 : vector<2x128xf32>
    %385 = arith.addf %381, %384 : vector<2x128xf32>
    %386 = math.tanh %385 : vector<2x128xf32>
    %cst_81 = arith.constant 1.000000e+00 : f32
    %387 = vector.broadcast %cst_81 : f32 to vector<2x128xf32>
    %388 = arith.subf %387, %380 : vector<2x128xf32>
    %389 = arith.mulf %388, %386 : vector<2x128xf32>
    %390 = arith.mulf %380, %362 : vector<2x128xf32>
    %391 = arith.addf %389, %390 : vector<2x128xf32>
    %392 = vector.extract_strided_slice %301 {offsets = [6, 0], sizes = [2, 384], strides = [1, 1]} : vector<16x384xf32> to vector<2x384xf32>
    %cst_82 = arith.constant dense<0.000000e+00> : vector<2x384xf32>
    %393 = tpu.matmul %391, %296, %cst_82 {dimension_numbers = #tpu.dot_dimension_numbers<[1], [0], [0], [1], [0, 0, 1, 1], [], []>} : vector<2x128xf32>, vector<128x384xf32>, vector<2x384xf32> -> vector<2x384xf32>
    %394 = vector.extract_strided_slice %392 {offsets = [0, 0], sizes = [2, 128], strides = [1, 1]} : vector<2x384xf32> to vector<2x128xf32>
    %395 = vector.extract_strided_slice %393 {offsets = [0, 0], sizes = [2, 128], strides = [1, 1]} : vector<2x384xf32> to vector<2x128xf32>
    %396 = arith.addf %394, %395 : vector<2x128xf32>
    %397 = arith.negf %396 : vector<2x128xf32>
    %398 = math.exp %397 : vector<2x128xf32>
    %cst_83 = arith.constant 1.000000e+00 : f32
    %399 = vector.broadcast %cst_83 : f32 to vector<2x128xf32>
    %400 = arith.addf %399, %398 : vector<2x128xf32>
    %401 = arith.divf %399, %400 : vector<2x128xf32>
    %402 = vector.extract_strided_slice %392 {offsets = [0, 128], sizes = [2, 128], strides = [1, 1]} : vector<2x384xf32> to vector<2x128xf32>
    %403 = vector.extract_strided_slice %393 {offsets = [0, 128], sizes = [2, 128], strides = [1, 1]} : vector<2x384xf32> to vector<2x128xf32>
    %404 = arith.addf %402, %403 : vector<2x128xf32>
    %405 = arith.negf %404 : vector<2x128xf32>
    %406 = math.exp %405 : vector<2x128xf32>
    %cst_84 = arith.constant 1.000000e+00 : f32
    %407 = vector.broadcast %cst_84 : f32 to vector<2x128xf32>
    %408 = arith.addf %407, %406 : vector<2x128xf32>
    %409 = arith.divf %407, %408 : vector<2x128xf32>
    %410 = vector.extract_strided_slice %392 {offsets = [0, 256], sizes = [2, 128], strides = [1, 1]} : vector<2x384xf32> to vector<2x128xf32>
    %411 = vector.extract_strided_slice %393 {offsets = [0, 256], sizes = [2, 128], strides = [1, 1]} : vector<2x384xf32> to vector<2x128xf32>
    %412 = arith.addf %411, %303 : vector<2x128xf32>
    %413 = arith.mulf %401, %412 : vector<2x128xf32>
    %414 = arith.addf %410, %413 : vector<2x128xf32>
    %415 = math.tanh %414 : vector<2x128xf32>
    %cst_85 = arith.constant 1.000000e+00 : f32
    %416 = vector.broadcast %cst_85 : f32 to vector<2x128xf32>
    %417 = arith.subf %416, %409 : vector<2x128xf32>
    %418 = arith.mulf %417, %415 : vector<2x128xf32>
    %419 = arith.mulf %409, %391 : vector<2x128xf32>
    %420 = arith.addf %418, %419 : vector<2x128xf32>
    %421 = vector.extract_strided_slice %301 {offsets = [8, 0], sizes = [2, 384], strides = [1, 1]} : vector<16x384xf32> to vector<2x384xf32>
    %cst_86 = arith.constant dense<0.000000e+00> : vector<2x384xf32>
    %422 = tpu.matmul %420, %296, %cst_86 {dimension_numbers = #tpu.dot_dimension_numbers<[1], [0], [0], [1], [0, 0, 1, 1], [], []>} : vector<2x128xf32>, vector<128x384xf32>, vector<2x384xf32> -> vector<2x384xf32>
    %423 = vector.extract_strided_slice %421 {offsets = [0, 0], sizes = [2, 128], strides = [1, 1]} : vector<2x384xf32> to vector<2x128xf32>
    %424 = vector.extract_strided_slice %422 {offsets = [0, 0], sizes = [2, 128], strides = [1, 1]} : vector<2x384xf32> to vector<2x128xf32>
    %425 = arith.addf %423, %424 : vector<2x128xf32>
    %426 = arith.negf %425 : vector<2x128xf32>
    %427 = math.exp %426 : vector<2x128xf32>
    %cst_87 = arith.constant 1.000000e+00 : f32
    %428 = vector.broadcast %cst_87 : f32 to vector<2x128xf32>
    %429 = arith.addf %428, %427 : vector<2x128xf32>
    %430 = arith.divf %428, %429 : vector<2x128xf32>
    %431 = vector.extract_strided_slice %421 {offsets = [0, 128], sizes = [2, 128], strides = [1, 1]} : vector<2x384xf32> to vector<2x128xf32>
    %432 = vector.extract_strided_slice %422 {offsets = [0, 128], sizes = [2, 128], strides = [1, 1]} : vector<2x384xf32> to vector<2x128xf32>
    %433 = arith.addf %431, %432 : vector<2x128xf32>
    %434 = arith.negf %433 : vector<2x128xf32>
    %435 = math.exp %434 : vector<2x128xf32>
    %cst_88 = arith.constant 1.000000e+00 : f32
    %436 = vector.broadcast %cst_88 : f32 to vector<2x128xf32>
    %437 = arith.addf %436, %435 : vector<2x128xf32>
    %438 = arith.divf %436, %437 : vector<2x128xf32>
    %439 = vector.extract_strided_slice %421 {offsets = [0, 256], sizes = [2, 128], strides = [1, 1]} : vector<2x384xf32> to vector<2x128xf32>
    %440 = vector.extract_strided_slice %422 {offsets = [0, 256], sizes = [2, 128], strides = [1, 1]} : vector<2x384xf32> to vector<2x128xf32>
    %441 = arith.addf %440, %303 : vector<2x128xf32>
    %442 = arith.mulf %430, %441 : vector<2x128xf32>
    %443 = arith.addf %439, %442 : vector<2x128xf32>
    %444 = math.tanh %443 : vector<2x128xf32>
    %cst_89 = arith.constant 1.000000e+00 : f32
    %445 = vector.broadcast %cst_89 : f32 to vector<2x128xf32>
    %446 = arith.subf %445, %438 : vector<2x128xf32>
    %447 = arith.mulf %446, %444 : vector<2x128xf32>
    %448 = arith.mulf %438, %420 : vector<2x128xf32>
    %449 = arith.addf %447, %448 : vector<2x128xf32>
    %450 = vector.extract_strided_slice %301 {offsets = [10, 0], sizes = [2, 384], strides = [1, 1]} : vector<16x384xf32> to vector<2x384xf32>
    %cst_90 = arith.constant dense<0.000000e+00> : vector<2x384xf32>
    %451 = tpu.matmul %449, %296, %cst_90 {dimension_numbers = #tpu.dot_dimension_numbers<[1], [0], [0], [1], [0, 0, 1, 1], [], []>} : vector<2x128xf32>, vector<128x384xf32>, vector<2x384xf32> -> vector<2x384xf32>
    %452 = vector.extract_strided_slice %450 {offsets = [0, 0], sizes = [2, 128], strides = [1, 1]} : vector<2x384xf32> to vector<2x128xf32>
    %453 = vector.extract_strided_slice %451 {offsets = [0, 0], sizes = [2, 128], strides = [1, 1]} : vector<2x384xf32> to vector<2x128xf32>
    %454 = arith.addf %452, %453 : vector<2x128xf32>
    %455 = arith.negf %454 : vector<2x128xf32>
    %456 = math.exp %455 : vector<2x128xf32>
    %cst_91 = arith.constant 1.000000e+00 : f32
    %457 = vector.broadcast %cst_91 : f32 to vector<2x128xf32>
    %458 = arith.addf %457, %456 : vector<2x128xf32>
    %459 = arith.divf %457, %458 : vector<2x128xf32>
    %460 = vector.extract_strided_slice %450 {offsets = [0, 128], sizes = [2, 128], strides = [1, 1]} : vector<2x384xf32> to vector<2x128xf32>
    %461 = vector.extract_strided_slice %451 {offsets = [0, 128], sizes = [2, 128], strides = [1, 1]} : vector<2x384xf32> to vector<2x128xf32>
    %462 = arith.addf %460, %461 : vector<2x128xf32>
    %463 = arith.negf %462 : vector<2x128xf32>
    %464 = math.exp %463 : vector<2x128xf32>
    %cst_92 = arith.constant 1.000000e+00 : f32
    %465 = vector.broadcast %cst_92 : f32 to vector<2x128xf32>
    %466 = arith.addf %465, %464 : vector<2x128xf32>
    %467 = arith.divf %465, %466 : vector<2x128xf32>
    %468 = vector.extract_strided_slice %450 {offsets = [0, 256], sizes = [2, 128], strides = [1, 1]} : vector<2x384xf32> to vector<2x128xf32>
    %469 = vector.extract_strided_slice %451 {offsets = [0, 256], sizes = [2, 128], strides = [1, 1]} : vector<2x384xf32> to vector<2x128xf32>
    %470 = arith.addf %469, %303 : vector<2x128xf32>
    %471 = arith.mulf %459, %470 : vector<2x128xf32>
    %472 = arith.addf %468, %471 : vector<2x128xf32>
    %473 = math.tanh %472 : vector<2x128xf32>
    %cst_93 = arith.constant 1.000000e+00 : f32
    %474 = vector.broadcast %cst_93 : f32 to vector<2x128xf32>
    %475 = arith.subf %474, %467 : vector<2x128xf32>
    %476 = arith.mulf %475, %473 : vector<2x128xf32>
    %477 = arith.mulf %467, %449 : vector<2x128xf32>
    %478 = arith.addf %476, %477 : vector<2x128xf32>
    %479 = vector.extract_strided_slice %301 {offsets = [12, 0], sizes = [2, 384], strides = [1, 1]} : vector<16x384xf32> to vector<2x384xf32>
    %cst_94 = arith.constant dense<0.000000e+00> : vector<2x384xf32>
    %480 = tpu.matmul %478, %296, %cst_94 {dimension_numbers = #tpu.dot_dimension_numbers<[1], [0], [0], [1], [0, 0, 1, 1], [], []>} : vector<2x128xf32>, vector<128x384xf32>, vector<2x384xf32> -> vector<2x384xf32>
    %481 = vector.extract_strided_slice %479 {offsets = [0, 0], sizes = [2, 128], strides = [1, 1]} : vector<2x384xf32> to vector<2x128xf32>
    %482 = vector.extract_strided_slice %480 {offsets = [0, 0], sizes = [2, 128], strides = [1, 1]} : vector<2x384xf32> to vector<2x128xf32>
    %483 = arith.addf %481, %482 : vector<2x128xf32>
    %484 = arith.negf %483 : vector<2x128xf32>
    %485 = math.exp %484 : vector<2x128xf32>
    %cst_95 = arith.constant 1.000000e+00 : f32
    %486 = vector.broadcast %cst_95 : f32 to vector<2x128xf32>
    %487 = arith.addf %486, %485 : vector<2x128xf32>
    %488 = arith.divf %486, %487 : vector<2x128xf32>
    %489 = vector.extract_strided_slice %479 {offsets = [0, 128], sizes = [2, 128], strides = [1, 1]} : vector<2x384xf32> to vector<2x128xf32>
    %490 = vector.extract_strided_slice %480 {offsets = [0, 128], sizes = [2, 128], strides = [1, 1]} : vector<2x384xf32> to vector<2x128xf32>
    %491 = arith.addf %489, %490 : vector<2x128xf32>
    %492 = arith.negf %491 : vector<2x128xf32>
    %493 = math.exp %492 : vector<2x128xf32>
    %cst_96 = arith.constant 1.000000e+00 : f32
    %494 = vector.broadcast %cst_96 : f32 to vector<2x128xf32>
    %495 = arith.addf %494, %493 : vector<2x128xf32>
    %496 = arith.divf %494, %495 : vector<2x128xf32>
    %497 = vector.extract_strided_slice %479 {offsets = [0, 256], sizes = [2, 128], strides = [1, 1]} : vector<2x384xf32> to vector<2x128xf32>
    %498 = vector.extract_strided_slice %480 {offsets = [0, 256], sizes = [2, 128], strides = [1, 1]} : vector<2x384xf32> to vector<2x128xf32>
    %499 = arith.addf %498, %303 : vector<2x128xf32>
    %500 = arith.mulf %488, %499 : vector<2x128xf32>
    %501 = arith.addf %497, %500 : vector<2x128xf32>
    %502 = math.tanh %501 : vector<2x128xf32>
    %cst_97 = arith.constant 1.000000e+00 : f32
    %503 = vector.broadcast %cst_97 : f32 to vector<2x128xf32>
    %504 = arith.subf %503, %496 : vector<2x128xf32>
    %505 = arith.mulf %504, %502 : vector<2x128xf32>
    %506 = arith.mulf %496, %478 : vector<2x128xf32>
    %507 = arith.addf %505, %506 : vector<2x128xf32>
    %508 = vector.extract_strided_slice %301 {offsets = [14, 0], sizes = [2, 384], strides = [1, 1]} : vector<16x384xf32> to vector<2x384xf32>
    %cst_98 = arith.constant dense<0.000000e+00> : vector<2x384xf32>
    %509 = tpu.matmul %507, %296, %cst_98 {dimension_numbers = #tpu.dot_dimension_numbers<[1], [0], [0], [1], [0, 0, 1, 1], [], []>} : vector<2x128xf32>, vector<128x384xf32>, vector<2x384xf32> -> vector<2x384xf32>
    %510 = vector.extract_strided_slice %508 {offsets = [0, 0], sizes = [2, 128], strides = [1, 1]} : vector<2x384xf32> to vector<2x128xf32>
    %511 = vector.extract_strided_slice %509 {offsets = [0, 0], sizes = [2, 128], strides = [1, 1]} : vector<2x384xf32> to vector<2x128xf32>
    %512 = arith.addf %510, %511 : vector<2x128xf32>
    %513 = arith.negf %512 : vector<2x128xf32>
    %514 = math.exp %513 : vector<2x128xf32>
    %cst_99 = arith.constant 1.000000e+00 : f32
    %515 = vector.broadcast %cst_99 : f32 to vector<2x128xf32>
    %516 = arith.addf %515, %514 : vector<2x128xf32>
    %517 = arith.divf %515, %516 : vector<2x128xf32>
    %518 = vector.extract_strided_slice %508 {offsets = [0, 128], sizes = [2, 128], strides = [1, 1]} : vector<2x384xf32> to vector<2x128xf32>
    %519 = vector.extract_strided_slice %509 {offsets = [0, 128], sizes = [2, 128], strides = [1, 1]} : vector<2x384xf32> to vector<2x128xf32>
    %520 = arith.addf %518, %519 : vector<2x128xf32>
    %521 = arith.negf %520 : vector<2x128xf32>
    %522 = math.exp %521 : vector<2x128xf32>
    %cst_100 = arith.constant 1.000000e+00 : f32
    %523 = vector.broadcast %cst_100 : f32 to vector<2x128xf32>
    %524 = arith.addf %523, %522 : vector<2x128xf32>
    %525 = arith.divf %523, %524 : vector<2x128xf32>
    %526 = vector.extract_strided_slice %508 {offsets = [0, 256], sizes = [2, 128], strides = [1, 1]} : vector<2x384xf32> to vector<2x128xf32>
    %527 = vector.extract_strided_slice %509 {offsets = [0, 256], sizes = [2, 128], strides = [1, 1]} : vector<2x384xf32> to vector<2x128xf32>
    %528 = arith.addf %527, %303 : vector<2x128xf32>
    %529 = arith.mulf %517, %528 : vector<2x128xf32>
    %530 = arith.addf %526, %529 : vector<2x128xf32>
    %531 = math.tanh %530 : vector<2x128xf32>
    %cst_101 = arith.constant 1.000000e+00 : f32
    %532 = vector.broadcast %cst_101 : f32 to vector<2x128xf32>
    %533 = arith.subf %532, %525 : vector<2x128xf32>
    %534 = arith.mulf %533, %531 : vector<2x128xf32>
    %535 = arith.mulf %525, %507 : vector<2x128xf32>
    %536 = arith.addf %534, %535 : vector<2x128xf32>
    %c1_102 = arith.constant 1 : index
    %c0_103 = arith.constant 0 : index
    %c0_104 = arith.constant 0 : index
    %537 = vector.load %arg12[%c1_102, %c0_103, %c0_104] : memref<2x2x128xf32, #tpu.memory_space<vmem>>, vector<1x2x128xf32>
    %538 = vector.shape_cast %537 : vector<1x2x128xf32> to vector<2x128xf32>
    %539 = vector.shape_cast %536 : vector<2x128xf32> to vector<1x2x128xf32>
    tpu.vector_store %arg12[%c1_102, %c0_103, %c0_104], %539 {strides = array<i32>} : memref<2x2x128xf32, #tpu.memory_space<vmem>>, vector<1x2x128xf32>,
    %540 = vector.extract_strided_slice %333 {offsets = [0, 0], sizes = [1, 128], strides = [1, 1]} : vector<2x128xf32> to vector<1x128xf32>
    %541 = vector.extract_strided_slice %362 {offsets = [0, 0], sizes = [1, 128], strides = [1, 1]} : vector<2x128xf32> to vector<1x128xf32>
    %542 = vector.extract_strided_slice %391 {offsets = [0, 0], sizes = [1, 128], strides = [1, 1]} : vector<2x128xf32> to vector<1x128xf32>
    %543 = vector.extract_strided_slice %420 {offsets = [0, 0], sizes = [1, 128], strides = [1, 1]} : vector<2x128xf32> to vector<1x128xf32>
    %544 = vector.extract_strided_slice %449 {offsets = [0, 0], sizes = [1, 128], strides = [1, 1]} : vector<2x128xf32> to vector<1x128xf32>
    %545 = vector.extract_strided_slice %478 {offsets = [0, 0], sizes = [1, 128], strides = [1, 1]} : vector<2x128xf32> to vector<1x128xf32>
    %546 = vector.extract_strided_slice %507 {offsets = [0, 0], sizes = [1, 128], strides = [1, 1]} : vector<2x128xf32> to vector<1x128xf32>
    %547 = vector.extract_strided_slice %536 {offsets = [0, 0], sizes = [1, 128], strides = [1, 1]} : vector<2x128xf32> to vector<1x128xf32>
    %548 = tpu.concatenate %540, %541, %542, %543, %544, %545, %546, %547 in 0 : vector<1x128xf32>, vector<1x128xf32>, vector<1x128xf32>, vector<1x128xf32>, vector<1x128xf32>, vector<1x128xf32>, vector<1x128xf32>, vector<1x128xf32> -> vector<8x128xf32>
    %c0_105 = arith.constant 0 : index
    %c0_106 = arith.constant 0 : index
    %c0_107 = arith.constant 0 : index
    %549 = vector.load %arg11[%c0_105, %c0_106, %c0_107] : memref<2x8x128xf32, #tpu.memory_space<vmem>>, vector<1x8x128xf32>
    %550 = vector.shape_cast %549 : vector<1x8x128xf32> to vector<8x128xf32>
    %551 = vector.shape_cast %548 : vector<8x128xf32> to vector<1x8x128xf32>
    tpu.vector_store %arg11[%c0_105, %c0_106, %c0_107], %551 {strides = array<i32>} : memref<2x8x128xf32, #tpu.memory_space<vmem>>, vector<1x8x128xf32>,
    %552 = vector.extract_strided_slice %333 {offsets = [1, 0], sizes = [1, 128], strides = [1, 1]} : vector<2x128xf32> to vector<1x128xf32>
    %553 = vector.extract_strided_slice %362 {offsets = [1, 0], sizes = [1, 128], strides = [1, 1]} : vector<2x128xf32> to vector<1x128xf32>
    %554 = vector.extract_strided_slice %391 {offsets = [1, 0], sizes = [1, 128], strides = [1, 1]} : vector<2x128xf32> to vector<1x128xf32>
    %555 = vector.extract_strided_slice %420 {offsets = [1, 0], sizes = [1, 128], strides = [1, 1]} : vector<2x128xf32> to vector<1x128xf32>
    %556 = vector.extract_strided_slice %449 {offsets = [1, 0], sizes = [1, 128], strides = [1, 1]} : vector<2x128xf32> to vector<1x128xf32>
    %557 = vector.extract_strided_slice %478 {offsets = [1, 0], sizes = [1, 128], strides = [1, 1]} : vector<2x128xf32> to vector<1x128xf32>
    %558 = vector.extract_strided_slice %507 {offsets = [1, 0], sizes = [1, 128], strides = [1, 1]} : vector<2x128xf32> to vector<1x128xf32>
    %559 = vector.extract_strided_slice %536 {offsets = [1, 0], sizes = [1, 128], strides = [1, 1]} : vector<2x128xf32> to vector<1x128xf32>
    %560 = tpu.concatenate %552, %553, %554, %555, %556, %557, %558, %559 in 0 : vector<1x128xf32>, vector<1x128xf32>, vector<1x128xf32>, vector<1x128xf32>, vector<1x128xf32>, vector<1x128xf32>, vector<1x128xf32>, vector<1x128xf32> -> vector<8x128xf32>
    %c1_108 = arith.constant 1 : index
    %c0_109 = arith.constant 0 : index
    %c0_110 = arith.constant 0 : index
    %561 = vector.load %arg11[%c1_108, %c0_109, %c0_110] : memref<2x8x128xf32, #tpu.memory_space<vmem>>, vector<1x8x128xf32>
    %562 = vector.shape_cast %561 : vector<1x8x128xf32> to vector<8x128xf32>
    %563 = vector.shape_cast %560 : vector<8x128xf32> to vector<1x8x128xf32>
    tpu.vector_store %arg11[%c1_108, %c0_109, %c0_110], %563 {strides = array<i32>} : memref<2x8x128xf32, #tpu.memory_space<vmem>>, vector<1x8x128xf32>,
    return
  }
  func.func @transform_0(%arg0: i32) -> i32 {
    %c0_i32 = arith.constant 0 : i32
    %c0_i32_0 = arith.constant 0 : i32
    return %c0_i32 : i32
  }
  func.func @transform_1(%arg0: i32) -> (i32, i32) {
    %c0_i32 = arith.constant 0 : i32
    %c0_i32_0 = arith.constant 0 : i32
    %c0_i32_1 = arith.constant 0 : i32
    return %c0_i32, %c0_i32_0 : i32, i32
  }
  func.func @transform_2(%arg0: i32) -> (i32, i32) {
    %c0_i32 = arith.constant 0 : i32
    %c0_i32_0 = arith.constant 0 : i32
    %c0_i32_1 = arith.constant 0 : i32
    return %c0_i32, %c0_i32_0 : i32, i32
  }
  func.func @transform_3(%arg0: i32) -> (i32, i32) {
    %c0_i32 = arith.constant 0 : i32
    %c0_i32_0 = arith.constant 0 : i32
    %c0_i32_1 = arith.constant 0 : i32
    return %c0_i32, %c0_i32_0 : i32, i32
  }
  func.func @transform_4(%arg0: i32) -> (i32, i32) {
    %c0_i32 = arith.constant 0 : i32
    %c0_i32_0 = arith.constant 0 : i32
    %c0_i32_1 = arith.constant 0 : i32
    return %c0_i32, %c0_i32_0 : i32, i32
  }
  func.func @transform_5(%arg0: i32) -> (i32, i32) {
    %c0_i32 = arith.constant 0 : i32
    %c0_i32_0 = arith.constant 0 : i32
    %c0_i32_1 = arith.constant 0 : i32
    return %c0_i32, %c0_i32_0 : i32, i32
  }
  func.func @transform_6(%arg0: i32) -> (i32, i32) {
    %c0_i32 = arith.constant 0 : i32
    %c0_i32_0 = arith.constant 0 : i32
    %c0_i32_1 = arith.constant 0 : i32
    return %c0_i32, %c0_i32_0 : i32, i32
  }
  func.func @transform_7(%arg0: i32) -> (i32, i32) {
    %c0_i32 = arith.constant 0 : i32
    %c0_i32_0 = arith.constant 0 : i32
    %c0_i32_1 = arith.constant 0 : i32
    return %c0_i32, %c0_i32_0 : i32, i32
  }
  func.func @transform_8(%arg0: i32) -> (i32, i32) {
    %c0_i32 = arith.constant 0 : i32
    %c0_i32_0 = arith.constant 0 : i32
    %c0_i32_1 = arith.constant 0 : i32
    return %c0_i32, %c0_i32_0 : i32, i32
  }
  func.func @transform_9(%arg0: i32) -> (i32, i32) {
    %c0_i32 = arith.constant 0 : i32
    %c0_i32_0 = arith.constant 0 : i32
    %c0_i32_1 = arith.constant 0 : i32
    return %c0_i32, %c0_i32_0 : i32, i32
  }
  func.func @transform_10(%arg0: i32) -> (i32, i32, i32) {
    %c0_i32 = arith.constant 0 : i32
    %c0_i32_0 = arith.constant 0 : i32
    %c0_i32_1 = arith.constant 0 : i32
    %c0_i32_2 = arith.constant 0 : i32
    return %c0_i32, %c0_i32_0, %c0_i32_1 : i32, i32, i32
  }
  func.func @transform_11(%arg0: i32) -> (i32, i32, i32) {
    %c0_i32 = arith.constant 0 : i32
    %c0_i32_0 = arith.constant 0 : i32
    %c0_i32_1 = arith.constant 0 : i32
    %c0_i32_2 = arith.constant 0 : i32
    return %c0_i32, %c0_i32_0, %c0_i32_1 : i32, i32, i32
  }
}

</mosaic_0001>

<bundles_post_ra>
// kernel: tpu_custom_call.1
= control target key start
LH: loop header
LB: loop body
LE: loop exit
PB: predicated region body
PF: predicated region fallthrough
CT: control target
= control target key end

     0   :  { %17 = vsyncpa [#allocation5], 0  ;;  %s7016_s0 = inlined_call_operand.vmem [shape: s32[16], index: 0, kind: input, shape index: {}]   ;;  %s7017_s1 = inlined_call_operand.vmem [shape: f32[50,16], index: 1, kind: input, shape index: {}]   ;;  %s7018_s2 = inlined_call_operand.vmem [shape: f32[16,384], index: 2, kind: input, shape index: {}]   ;;  %s7019_s3 = inlined_call_operand.hbm [shape: f32[128,384], index: 3, kind: input, shape index: {}]   ;;  %s7020_s4 = inlined_call_operand.vmem [shape: f32[1,384], index: 4, kind: input, shape index: {}]   ;;  %s7021_s5 = inlined_call_operand.vmem [shape: f32[1,128], index: 5, kind: input, shape index: {}]   ;;  %s7022_s6 = inlined_call_operand.hbm [shape: f32[128,384], index: 6, kind: input, shape index: {}]   ;;  %s7023_s7 = inlined_call_operand.hbm [shape: f32[128,384], index: 7, kind: input, shape index: {}]   ;;  %s7024_s8 = inlined_call_operand.vmem [shape: f32[1,384], index: 8, kind: input, shape index: {}]   ;;  %s7025_s9 = inlined_call_operand.vmem [shape: f32[1,128], index: 9, kind: input, shape index: {}]   ;;  %s7026_s10 = inlined_call_operand.hbm [shape: f32[2,8,128], index: 10, kind: output, shape index: {0}]   ;;  %s7027_s11 = inlined_call_operand.hbm [shape: f32[2,2,128], index: 11, kind: output, shape index: {1}]  }
   0x1   :  { %18 = vsyncpa [#allocation3], 0 }
   0x2   :  { %19 = vsyncpa [#allocation8], 0 }
   0x3   :  { %20 = vsyncpa [#allocation4], 0 }
   0x4   :  { %21 = vsyncpa [#allocation12], 0  ;;  %s28_s19 = sshll.u32 %s7016_s0, 4  ;;  %s5812_s20 = smov [#allocation7]   ;;  %s29_s19 = int_to_ptr.vmem [resolvable:$true] %s28_s19 }
   0x5   :  { %s57_s21 = sshll.u32 %s5812_s20, 4  ;;  %s5680_s24 = scalar_lea.hbm %s7022_s6, 6144  ;;  %s58_s21 = int_to_ptr.vmem [resolvable:$true] %s57_s21 }
   0x6   :  { %p5681_p0 = scmp.ne.s32.totalorder %s7022_s6, %s5680_s24  ;;  %p5684_p1 = scmp.lt.u32.totalorder %s5680_s24, %s7022_s6 }
   0x8   :  { %p5686_p2 = pnand %p5684_p1, %p5681_p0 }
   0xa   :  { %5689 = shalt.err (!%p5686_p2)
}
   0xb   :  { %s5690_s29 = scalar_lea.vmem %s58_s21, 6144  ;;  %p5695_p4 = scmp.lt.s32.totalorder %s58_s21, %s58_s21 }
   0xc   :  { %p5691_p3 = scmp.ne.s32.totalorder %s58_s21, %s5690_s29  ;;  %p5696_p5 = scmp.lt.s32.totalorder %s5690_s29, %s5690_s29 }
   0xe   :  { %p5697_p6 = por %p5696_p5, %p5695_p4 }
  0x10   :  { %p5698_p7 = pnand %p5697_p6, %p5691_p3 }
  0x12   :  { %5701 = shalt.err (!%p5698_p7)
}
  0x13   :  { %s5813_s0 = smov 384   ;;  %s5814_s30 = smov 24  }
  0x14   :  { %63 = dma.hbm_to_vmem [thread:$0]  %s7022_s6, 6144, %s58_s21, [#allocation8], %s5813_s0, %s5813_s0, %s5814_s30  }
  0x15   :  { %s5702_s14 = scalar_lea.vmem %s29_s19, 16  ;;  %p5707_p9 = scmp.lt.s32.totalorder %s29_s19, %s29_s19 }
  0x16   :  { %p5703_p8 = scmp.ne.s32.totalorder %s29_s19, %s5702_s14  ;;  %p5708_p10 = scmp.lt.s32.totalorder %s5702_s14, %s5702_s14 }
  0x18   :  { %p5709_p11 = por %p5708_p10, %p5707_p9 }
  0x1a   :  { %p5710_p12 = pnand %p5709_p11, %p5703_p8 }
  0x1c   :  { %5713 = shalt.err (!%p5710_p12)
}
  0x1d   :  { %s5815_s15 = smov [#allocation2]   ;;  %s5816_s16 = smov [#allocation6]  }
  0x1e   :  { %31 = dma.vmem_to_smem %s29_s19, 16, %s5815_s15, [#allocation5]  }
  0x1f   :  { %s41_s17 = sshll.u32 %s5816_s16, 4  ;;  %s5817_s18 = smov [#allocation9]   ;;  %s42_s17 = int_to_ptr.vmem [resolvable:$true] %s41_s17 }
  0x20   :  { %s69_s20 = sshll.u32 %s5817_s18, 4  ;;  %s5714_s6 = scalar_lea.hbm %s7019_s3, 6144  ;;  %s5905_s20 = int_to_ptr.vmem [resolvable:$true] %s69_s20 }
  0x21   :  { %p5715_p13 = scmp.ne.s32.totalorder %s7019_s3, %s5714_s6  ;;  %p5718_p0 = scmp.lt.u32.totalorder %s5714_s6, %s7019_s3 }
  0x23   :  { %p5720_p1 = pnand %p5718_p0, %p5715_p13 }
  0x25   :  { %5723 = shalt.err (!%p5720_p1)
}
  0x26   :  { %s5724_s19 = scalar_lea.vmem %s42_s17, 6144  ;;  %p5729_p3 = scmp.lt.s32.totalorder %s42_s17, %s42_s17 }
  0x27   :  { %p5725_p2 = scmp.ne.s32.totalorder %s42_s17, %s5724_s19  ;;  %p5730_p4 = scmp.lt.s32.totalorder %s5724_s19, %s5724_s19 }
  0x29   :  { %p5731_p5 = por %p5730_p4, %p5729_p3 }
  0x2b   :  { %p5732_p6 = pnand %p5731_p5, %p5725_p2 }
  0x2d   :  { %5735 = shalt.err (!%p5732_p6)
}
  0x2e   :  { %47 = dma.hbm_to_vmem [thread:$0]  %s7019_s3, 6144, %s42_s17, [#allocation3], %s5813_s0, %s5813_s0, %s5814_s30  }
  0x2f   :  { %s5736_s13 = scalar_lea.hbm %s7023_s7, 6144 }
  0x30   :  { %p5737_p7 = scmp.ne.s32.totalorder %s7023_s7, %s5736_s13  ;;  %p5740_p8 = scmp.lt.u32.totalorder %s5736_s13, %s7023_s7 }
  0x32   :  { %p5742_p9 = pnand %p5740_p8, %p5737_p7 }
  0x34   :  { %5745 = shalt.err (!%p5742_p9)
}
  0x35   :  { %s5746_s22 = scalar_lea.vmem %s5905_s20, 6144  ;;  %p5751_p11 = scmp.lt.s32.totalorder %s5905_s20, %s5905_s20 }
  0x36   :  { %p5747_p10 = scmp.ne.s32.totalorder %s5905_s20, %s5746_s22  ;;  %p5752_p12 = scmp.lt.s32.totalorder %s5746_s22, %s5746_s22 }
  0x38   :  { %p5753_p13 = por %p5752_p12, %p5751_p11 }
  0x3a   :  { %p5754_p0 = pnand %p5753_p13, %p5747_p10 }
  0x3c   :  { %5757 = shalt.err (!%p5754_p0)
}
  0x3d   :  { %75 = dma.hbm_to_vmem [thread:$0]  %s7023_s7, 6144, %s5905_s20, [#allocation8], %s5813_s0, %s5813_s0, %s5814_s30  }
  0x3e   :  { %5802 = dma.done.wait [#allocation5], 16  }
  0x3f   :  { %5803 = vsyncadd [#allocation5], 4294967280 }
  0x40   :  { %5804 = dma.done.wait [#allocation3], 6144  }
  0x41   :  { %5805 = vsyncadd [#allocation3], 4294961152 }
  0x42   :  { %5806 = dma.done.wait [#allocation8], 12288  }
  0x43   :  { %5807 = vsyncadd [#allocation8], 4294955008 }
  0x44   :  { %92 = sfence }
  0x45   :  { %v205_v0 = vld [vmem:[%s7018_s2 + $0x8] sm:$0xff]  ;;  %v208_v1 = vld [vmem:[%s7018_s2 + $0x20] sm:$0xff]  ;;  %s93_s7 = sld [smem:[#allocation2]]  ;;  %v207_v4 = vld [vmem:[%s7018_s2 + $0x18] sm:$0xff]  ;;  %v5818_v5 = vmov 0.0   ;;  %s3587_s20 = sld [smem:[#allocation2 + $0x1]] }
  0x46   :  { %v204_v2 = vld [vmem:[%s7018_s2] sm:$0xff]  ;;  %v4536_v3 = vpack.c.bf16 %v208_v1, %v205_v0  ;;  %347 = vmatprep.mubr.f32.mxu0 %v5818_v5  ;;  %v211_v6 = vld [vmem:[#allocation6 + $0x8] sm:$0xff]  ;;  %s3588_s19 = sld [smem:[#allocation2 + $0x2]]  ;;  %s3589_s27 = sld [smem:[#allocation2 + $0x3]]  ;;  %vm183_vm0 = vcmask 1040384   ;;  %vm185_vm1 = vcmask 1041408  }
  0x47   :  { %v214_v7 = vld [vmem:[#allocation6 + $0x20] sm:$0xff]  ;;  %v4538_v8 = vpack.c.bf16 %v207_v4, %v204_v2  ;;  %s3590_s28 = sld [smem:[#allocation2 + $0x4]]  ;;  %s3591_s29 = sld [smem:[#allocation2 + $0x5]]  ;;  %vm187_vm2 = vcmask 1042432   ;;  %vm189_vm3 = vcmask 1043456   ;;  %vm191_vm4 = vcmask 1044480  }
  0x48   :  { %v5955_v9 = vpack.c.bf16 %v214_v7, %v211_v6  ;;  %4537 = vmatprep.subr.bf16.mxu0 %v4536_v3  ;;  %s3592_s12 = sld [smem:[#allocation2 + $0x6]]  ;;  %s3593_s13 = sld [smem:[#allocation2 + $0x7]]  ;;  %v210_v26 = vld [vmem:[#allocation6] sm:$0xff]  ;;  %v213_v27 = vld [vmem:[#allocation6 + $0x18] sm:$0xff]  ;;  %vm193_vm5 = vcmask 1045504   ;;  %v220_v31 = vld [vmem:[#allocation6 + $0x50] sm:$0xff] }
  0x49   :  { %4539 = vmatpush1.bf16.msra.mxu0 %v4538_v8  ;;  %s5961_s18 = sld [smem:[#allocation2 + $0x8]]  ;;  %s5966_s23 = sld [smem:[#allocation2 + $0x9]]  ;;  %v217_v30 = vld [vmem:[#allocation6 + $0x38] sm:$0xff]  ;;  %vm195_vm6 = vcmask 1046528   ;;  %vm276_vm7 = vcmask 130048   ;;  %v5999_v34 = vpack.c.bf16 %v213_v27, %v210_v26  ;;  %v206_v35 = vld [vmem:[%s7018_s2 + $0x10] sm:$0xff] }
  0x4a   :  { %4545 = vmatprep.subr.bf16.mxu0 %v5955_v9  ;;  %s5996_s21 = sld [smem:[#allocation2 + $0xb]]  ;;  %v209_v36 = vld [vmem:[%s7018_s2 + $0x28] sm:$0xff]  ;;  %v6014_v38 = vpack.c.bf16 %v220_v31, %v217_v30  ;;  %v216_v39 = vld [vmem:[#allocation6 + $0x30] sm:$0xff]  ;;  %s6016_s14 = sld [smem:[#allocation2 + $0xd]]  ;;  %v226_v44 = vld [vmem:[#allocation6 + $0x80] sm:$0xff]  ;;  %v5819_v55 = vmov 0.0|0.0  }
  0x4b   :  { %s94_s16 = scalar_lea.vmem %s7017_s1, %s93_s7  ;;  %s97_s17 = scalar_lea.vmem %s7017_s1, %s3587_s20  ;;  %v219_v40 = vld [vmem:[#allocation6 + $0x48] sm:$0xff]  ;;  %v4540_v41 = vpack.c.bf16 %v209_v36, %v206_v35  ;;  %v222_v50 = vld [vmem:[#allocation6 + $0x60] sm:$0xff]  ;;  %v225_v51 = vld [vmem:[#allocation6 + $0x78] sm:$0xff]  ;;  %vm5820_vm8 = vmmov 0  }
  0x4c   :  { %v95_v10 = vld [vmem:[%s94_s16] sm:$0x1]  ;;  %s100_s24 = scalar_lea.vmem %s7017_s1, %s3588_s19  ;;  %s103_s0 = scalar_lea.vmem %s7017_s1, %s3589_s27  ;;  %v223_v43 = vld [vmem:[#allocation6 + $0x68] sm:$0xff]  ;;  %v6025_v47 = vpack.c.bf16 %v219_v40, %v216_v39  ;;  %v229_v53 = vld [vmem:[#allocation6 + $0x98] sm:$0xff]  ;;  %v6051_v61 = vpack.c.bf16 %v225_v51, %v222_v50 }
  0x4d   :  { %v98_v11 = vld [vmem:[%s97_s17] sm:$0x1]  ;;  %s106_s20 = scalar_lea.vmem %s7017_s1, %s3590_s28  ;;  %s109_s16 = scalar_lea.vmem %s7017_s1, %s3591_s29  ;;  %4541 = vmatprep.subr.bf16.mxu1 %v4540_v41  ;;  %v6032_v49 = vpack.c.bf16 %v226_v44, %v223_v43  ;;  %v232_v54 = vld [vmem:[#allocation6 + $0xb0] sm:$0xff]  ;;  %v215_v2 = vld [vmem:[#allocation6 + $0x28] sm:$0xff] }
  0x4e   :  { %v101_v12 = vld [vmem:[%s100_s24] sm:$0x1]  ;;  %v142_v14 = vrot.slane %v98_v11, 7  ;;  %s112_s27 = scalar_lea.vmem %s7017_s1, %s3592_s12  ;;  %s115_s6 = scalar_lea.vmem %s7017_s1, %s3593_s13  ;;  %4543 = vmatpush3.bf16.msra.mxu1 %v4540_v41  ;;  %v212_v1 = vld [vmem:[#allocation6 + $0x10] sm:$0xff]  ;;  %v6059_v3 = vpack.c.bf16 %v232_v54, %v229_v53  ;;  %v231_v6 = vld [vmem:[#allocation6 + $0xa8] sm:$0xff] }
  0x4f   :  { %v104_v13 = vld [vmem:[%s103_s0] sm:$0x1]  ;;  %v145_v17 = vrot.slane %v101_v12, 6  ;;  %s5989_s28 = sld [smem:[#allocation2 + $0xa]]  ;;  %s118_s13 = scalar_lea.vmem %s7017_s1, %s5961_s18  ;;  %4576 = vmatprep.subr.bf16.mxu1 %v5819_v55  ;;  %v228_v4 = vld [vmem:[#allocation6 + $0x90] sm:$0xff]  ;;  %v235_v11 = vld [vmem:[#allocation6 + $0xc8] sm:$0xff] }
  0x50   :  { %v107_v15 = vld [vmem:[%s106_s20] sm:$0x1]  ;;  %v148_v18 = vrot.slane %v104_v13, 5  ;;  %v184_v23 = vsel %vm183_vm0, %v95_v10, %v142_v14  ;;  %s121_s20 = scalar_lea.vmem %s7017_s1, %s5966_s23  ;;  %s6011_s18 = sld [smem:[#allocation2 + $0xc]]  ;;  %v241_v27 = vld [vmem:[#allocation6 + $0xf8] sm:$0xff]  ;;  %v224_v31 = vld [vmem:[#allocation6 + $0x70] sm:$0xff] }
  0x51   :  { %v110_v16 = vld [vmem:[%s109_s16] sm:$0x1]  ;;  %v151_v21 = vrot.slane %v107_v15, 4  ;;  %v186_v25 = vsel %vm185_vm1, %v184_v23, %v145_v17  ;;  %s6019_s2 = sld [smem:[#allocation2 + $0xe]]  ;;  %s6022_s23 = sld [smem:[#allocation2 + $0xf]]  ;;  %v240_v35 = vld [vmem:[#allocation6 + $0xf0] sm:$0xff] }
  0x52   :  { %v113_v19 = vld [vmem:[%s112_s27] sm:$0x1]  ;;  %v154_v22 = vrot.slane %v110_v16, 3  ;;  %v188_v29 = vsel %vm187_vm2, %v186_v25, %v148_v18  ;;  %s127_s3 = scalar_lea.vmem %s7017_s1, %s5996_s21  ;;  %v6068_v18 = vpack.c.bf16 %v215_v2, %v212_v1  ;;  %v237_v25 = vld [vmem:[#allocation6 + $0xd8] sm:$0xff]  ;;  %v243_v36 = vld [vmem:[#allocation6 + $0x108] sm:$0xff]  ;;  %s5822_s16 = smov [#allocation10]  }
  0x53   :  { %v116_v20 = vld [vmem:[%s115_s6] sm:$0x1]  ;;  %v157_v24 = vrot.slane %v113_v19, 2  ;;  %v190_v32 = vsel %vm189_vm3, %v188_v29, %v151_v21  ;;  %v6071_v19 = vpack.c.bf16 %v231_v6, %v228_v4  ;;  %v6097_v41 = vpack.c.bf16 %v243_v36, %v240_v35  ;;  %v233_v43 = vld [vmem:[#allocation6 + $0xb8] sm:$0xff]  ;;  %v256_v50 = vld [vmem:[#allocation6 + $0x170] sm:$0xff] }
  0x54   :  { %v160_v28 = vrot.slane %v116_v20, 1  ;;  %v192_v33 = vsel %vm191_vm4, %v190_v32, %v154_v22  ;;  %v119_v45 = vld [vmem:[%s118_s13] sm:$0x1]  ;;  %s133_s13 = scalar_lea.vmem %s7017_s1, %s6016_s14  ;;  %v221_v22 = vld [vmem:[#allocation6 + $0x58] sm:$0xff]  ;;  %v227_v32 = vld [vmem:[#allocation6 + $0x88] sm:$0xff] }
  0x55   :  { %v194_v37 = vsel %vm193_vm5, %v192_v33, %v157_v24  ;;  %v122_v46 = vld [vmem:[%s121_s20] sm:$0x1]  ;;  %s124_s19 = scalar_lea.vmem %s7017_s1, %s5989_s28  ;;  %v6094_v40 = vpack.c.bf16 %v227_v32, %v224_v31  ;;  %v236_v53 = vld [vmem:[#allocation6 + $0xd0] sm:$0xff]  ;;  %v239_v54 = vld [vmem:[#allocation6 + $0xe8] sm:$0xff] }
  0x56   :  { %v196_v42 = vsel %vm195_vm6, %v194_v37, %v160_v28  ;;  %v163_v48 = vrot.slane %v122_v46, 7  ;;  %v125_v52 = vld [vmem:[%s124_s19] sm:$0x1]  ;;  %s130_s28 = scalar_lea.vmem %s7017_s1, %s6011_s18  ;;  %v244_v28 = vld [vmem:[#allocation6 + $0x110] sm:$0xff]  ;;  %v247_v37 = vld [vmem:[#allocation6 + $0x128] sm:$0xff]  ;;  %s3541_s19 = sshll.u32 %s5822_s16, 4  ;;  %s6983_s19 = int_to_ptr.vmem [resolvable:$true] %s3541_s19 }
  0x57   :  { %3602 = vmatmul.mubr.msk.f32.vlgmr.msra.gmra.mrb[0].mxu0 %vm276_vm7, %v196_v42  ;;  %3938 = vmatprep.mubr.msk.f32.mxu1 %vm276_vm7, %v196_v42  ;;  %v128_v56 = vld [vmem:[%s127_s3] sm:$0x1]  ;;  %v166_v57 = vrot.slane %v125_v52, 6  ;;  %s136_s25 = scalar_lea.vmem %s7017_s1, %s6019_s2  ;;  %s139_s7 = scalar_lea.vmem %s7017_s1, %s6022_s23  ;;  %v6089_v33 = vpack.c.bf16 %v244_v28, %v241_v27  ;;  %v249_v46 = vld [vmem:[#allocation6 + $0x138] sm:$0xff]  ;;  %v248_v1 = vld [vmem:[#allocation6 + $0x130] sm:$0xff] }
  0x58   :  { %4547 = vmatpush1.bf16.msra.mxu0 %v5999_v34  ;;  %353 = vmatprep.mubr.f32.mxu0 %v5818_v5  ;;  %v197_v58 = vsel %vm183_vm0, %v119_v45, %v163_v48  ;;  %v131_v59 = vld [vmem:[%s130_s28] sm:$0x1]  ;;  %v169_v60 = vrot.slane %v128_v56, 5  ;;  %v253_v48 = vld [vmem:[#allocation6 + $0x158] sm:$0xff]  ;;  %v251_v2 = vld [vmem:[#allocation6 + $0x148] sm:$0xff] }
  0x59   :  { %4549 = vmatprep.subr.bf16.mxu0 %v6014_v38  ;;  %v134_v62 = vld [vmem:[%s133_s13] sm:$0x1]  ;;  %v172_v63 = vrot.slane %v131_v59, 4  ;;  %v198_v0 = vsel %vm185_vm1, %v197_v58, %v166_v57  ;;  %v6111_v56 = vpack.c.bf16 %v256_v50, %v253_v48  ;;  %v252_v57 = vld [vmem:[#allocation6 + $0x150] sm:$0xff]  ;;  %v255_v58 = vld [vmem:[#allocation6 + $0x168] sm:$0xff]  ;;  %v6114_v59 = vpack.c.bf16 %v239_v54, %v236_v53 }
  0x5a   :  { %v137_v7 = vld [vmem:[%s136_s25] sm:$0x1]  ;;  %v175_v8 = vrot.slane %v134_v62, 3  ;;  %v199_v10 = vsel %vm187_vm2, %v198_v0, %v169_v60  ;;  %v6117_v60 = vpack.c.bf16 %v255_v58, %v252_v57  ;;  %v6129_v4 = vpack.c.bf16 %v251_v2, %v248_v1 }
  0x5b   :  { %v238_v12 = vld [vmem:[#allocation6 + $0xe0] sm:$0xff]  ;;  %v178_v14 = vrot.slane %v137_v7, 2  ;;  %v200_v15 = vsel %vm189_vm3, %v199_v10, %v172_v63  ;;  %v245_v63 = vld [vmem:[#allocation6 + $0x118] sm:$0xff]  ;;  %v261_v10 = vlaneseq }
  0x5c   :  { %4551 = vmatpush1.bf16.msra.mxu0 %v6025_v47  ;;  %v140_v13 = vld [vmem:[%s139_s7] sm:$0x1]  ;;  %v201_v17 = vsel %vm191_vm4, %v200_v15, %v175_v8  ;;  %v6075_v23 = vpack.c.bf16 %v238_v12, %v235_v11  ;;  %v257_v7 = vld [vmem:[#allocation6 + $0x178] sm:$0xff] }
  0x5d   :  { %4553 = vmatprep.subr.bf16.mxu0 %v6032_v49  ;;  %v181_v16 = vrot.slane %v140_v13, 1  ;;  %v202_v20 = vsel %vm193_vm5, %v201_v17, %v178_v14  ;;  %v218_v21 = vld [vmem:[#allocation6 + $0x40] sm:$0xff]  ;;  %v6174_v13 = vshrl.u32 %v261_v10, 7 }
  0x5e   :  { %v234_v24 = vld [vmem:[#allocation6 + $0xc0] sm:$0xff]  ;;  %v6081_v29 = vpack.c.bf16 %v221_v22, %v218_v21 }
  0x5f   :  { %v203_v26 = vsel %vm195_vm6, %v202_v20, %v181_v16  ;;  %v6085_v30 = vpack.c.bf16 %v237_v25, %v234_v24  ;;  %v250_v39 = vld [vmem:[#allocation6 + $0x140] sm:$0xff]  ;;  %v271_v14 = vsub.s32 2, %v6174_v13  ;;  %v263_v15 = vsub.s32 0, %v6174_v13 }
  0x60   :  { %4555 = vmatpush1.bf16.msra.mxu0 %v6051_v61  ;;  %3939 = vmatmul.mubr.msk.f32.vlgmr.msra.gmra.mrb[0].mxu1 %vm276_vm7, %v203_v26  ;;  %v230_v42 = vld [vmem:[#allocation6 + $0xa0] sm:$0xff]  ;;  %v6101_v44 = vpack.c.bf16 %v250_v39, %v247_v37  ;;  %v267_v17 = vsub.s32 1, %v6174_v13 }
  0x61   :  { %4557 = vmatprep.subr.bf16.mxu0 %v6059_v3  ;;  %3603 = vmatmul.mubr.msk.f32.gmra.mrb[2].mxu0 %vm276_vm7, %v203_v26  ;;  %v246_v45 = vld [vmem:[#allocation6 + $0x120] sm:$0xff]  ;;  %v6104_v51 = vpack.c.bf16 %v233_v43, %v230_v42 }
  0x62   :  { %4578 = vmatpush3.bf16.msra.mxu1 %v6068_v18  ;;  %505 = vmatprep.mubr.f32.mxu0 %v5818_v5  ;;  %v6107_v52 = vpack.c.bf16 %v249_v46, %v246_v45  ;;  %v242_v62 = vld [vmem:[#allocation6 + $0x100] sm:$0xff] }
  0x63   :  { %4579 = vmatprep.subr.bf16.mxu1 %v5819_v55  ;;  %3973 = vmatprep.mubr.msk.f32.mxu1 %vm5820_vm8, %v5818_v5  ;;  %v6122_v0 = vpack.c.bf16 %v245_v63, %v242_v62  ;;  %v254_v6 = vld [vmem:[#allocation6 + $0x160] sm:$0xff] }
  0x64   :  { %4559 = vmatpush1.bf16.msra.mxu0 %v6071_v19  ;;  %v6136_v8 = vpack.c.bf16 %v257_v7, %v254_v6  ;;  %v258_v16 = vld [vmem:[%s7020_s4] sm:$0x7] }
  0x65   :  { %4561 = vmatprep.subr.bf16.mxu0 %v6075_v23  ;;  %v272_v20 = vrot.slane %v258_v16, %v271_v14  ;;  %v264_v21 = vrot.slane %v258_v16, %v263_v15  ;;  %v268_v22 = vrot.slane %v258_v16, %v267_v17  ;;  %v6203_v58 = vld [vmem:[%s7021_s5] ss:$0 sm:$0xff] }
  0x66   :  { %4581 = vmatpush3.bf16.msra.mxu1 %v6081_v29 }
  0x67   :  { %4582 = vmatprep.subr.bf16.mxu1 %v5819_v55 }
  0x68   :  { %4563 = vmatpush1.bf16.msra.mxu0 %v6085_v30 }
  0x69   :  { %4565 = vmatprep.subr.bf16.mxu0 %v6089_v33 }
  0x6a   :  { %4584 = vmatpush3.bf16.msra.mxu1 %v6094_v40 }
  0x6b   :  { %4585 = vmatprep.subr.bf16.mxu1 %v5819_v55 }
  0x6c   :  { %4567 = vmatpush1.bf16.msra.mxu0 %v6097_v41 }
  0x6d   :  { %4569 = vmatprep.subr.bf16.mxu0 %v6101_v44 }
  0x6e   :  { %4587 = vmatpush3.bf16.msra.mxu1 %v6104_v51 }
  0x6f   :  { %4588 = vmatprep.subr.bf16.mxu1 %v5819_v55 }
  0x70   :  { %4571 = vmatpush1.bf16.msra.mxu0 %v6107_v52 }
  0x71   :  { %4573 = vmatprep.subr.bf16.mxu0 %v6111_v56 }
  0x72   :  { %4590 = vmatpush3.bf16.msra.mxu1 %v6114_v59 }
  0x73   :  { %4591 = vmatprep.subr.bf16.mxu1 %v5819_v55 }
  0x74   :  { %4575 = vmatpush1.bf16.msra.mxu0 %v6117_v60 }
  0x75   :  { %4601 = vmatprep.subr.bf16.mxu0 %v5955_v9 }
  0x76   :  { %4593 = vmatpush3.bf16.msra.mxu1 %v6122_v0 }
  0x77   :  { %506 = vmatmul.mubr.f32.vlgmr.msra.gmra.mrb[4].mxu0 %v5818_v5  ;;  %4594 = vmatprep.subr.bf16.mxu1 %v5819_v55 }
  0x78   :  { %4603 = vmatpush1.bf16.msra.mxu0 %v5999_v34  ;;  %668 = vmatprep.mubr.f32.mxu0 %v5818_v5 }
  0x79   :  { %4605 = vmatprep.subr.bf16.mxu0 %v6014_v38 }
  0x7a   :  { %4596 = vmatpush3.bf16.msra.mxu1 %v6129_v4 }
  0x7b   :  { %4597 = vmatprep.subr.bf16.mxu1 %v5819_v55 }
  0x7c   :  { %4607 = vmatpush1.bf16.msra.mxu0 %v6025_v47 }
  0x7d   :  { %4609 = vmatprep.subr.bf16.mxu0 %v6032_v49 }
  0x7e   :  { %4599 = vmatpush3.bf16.msra.mxu1 %v6136_v8 }
  0x7f   :  { %4632 = vmatprep.subr.bf16.mxu1 %v5819_v55 }
  0x80   :  { %4611 = vmatpush1.bf16.msra.mxu0 %v6051_v61 }
  0x81   :  { %4613 = vmatprep.subr.bf16.mxu0 %v6059_v3  ;;  %3974 = vmatmul.mubr.f32.vlgmr.msra.gmra.mrb[2].mxu1 %v5818_v5 }
  0x82   :  { %4634 = vmatpush3.bf16.msra.mxu1 %v6068_v18  ;;  %4008 = vmatprep.mubr.msk.f32.mxu1 %vm5820_vm8, %v5818_v5 }
  0x83   :  { %4635 = vmatprep.subr.bf16.mxu1 %v5819_v55 }
  0x84   :  { %4615 = vmatpush1.bf16.msra.mxu0 %v6071_v19 }
  0x85   :  { %4617 = vmatprep.subr.bf16.mxu0 %v6075_v23 }
  0x86   :  { %4637 = vmatpush3.bf16.msra.mxu1 %v6081_v29 }
  0x87   :  { %4638 = vmatprep.subr.bf16.mxu1 %v5819_v55 }
  0x88   :  { %4619 = vmatpush1.bf16.msra.mxu0 %v6085_v30 }
  0x89   :  { %4621 = vmatprep.subr.bf16.mxu0 %v6089_v33 }
  0x8a   :  { %4640 = vmatpush3.bf16.msra.mxu1 %v6094_v40 }
  0x8b   :  { %4641 = vmatprep.subr.bf16.mxu1 %v5819_v55 }
  0x8c   :  { %4623 = vmatpush1.bf16.msra.mxu0 %v6097_v41 }
  0x8d   :  { %4625 = vmatprep.subr.bf16.mxu0 %v6101_v44 }
  0x8e   :  { %4643 = vmatpush3.bf16.msra.mxu1 %v6104_v51 }
  0x8f   :  { %4644 = vmatprep.subr.bf16.mxu1 %v5819_v55 }
  0x90   :  { %4627 = vmatpush1.bf16.msra.mxu0 %v6107_v52 }
  0x91   :  { %4629 = vmatprep.subr.bf16.mxu0 %v6111_v56 }
  0x92   :  { %4646 = vmatpush3.bf16.msra.mxu1 %v6114_v59 }
  0x93   :  { %4647 = vmatprep.subr.bf16.mxu1 %v5819_v55 }
  0x94   :  { %4631 = vmatpush1.bf16.msra.mxu0 %v6117_v60 }
  0x95   :  { %4657 = vmatprep.subr.bf16.mxu0 %v5955_v9 }
  0x96   :  { %4649 = vmatpush3.bf16.msra.mxu1 %v6122_v0 }
  0x97   :  { %4650 = vmatprep.subr.bf16.mxu1 %v5819_v55 }
  0x9a   :  { %4652 = vmatpush3.bf16.msra.mxu1 %v6129_v4 }
  0x9b   :  { %4653 = vmatprep.subr.bf16.mxu1 %v5819_v55 }
  0x9e   :  { %4655 = vmatpush3.bf16.msra.mxu1 %v6136_v8 }
  0x9f   :  { %4688 = vmatprep.subr.bf16.mxu1 %v5819_v55 }
 0x12a   :  { %v349_v11 = vpop.f32.mrb[0].mxu0 }
 0x12b   :  { %v351_v12 = vpop.f32.mrb[1].mxu0  ;;  %v6194_v35 = vadd.f32 %v349_v11, %v264_v21 }
 0x12c   :  { %v6197_v42 = vadd.f32 %v351_v12, %v268_v22 }
 0x133   :  { %v3940_v24 = vpop.f32.mrb[0].mxu1 }
 0x134   :  { %v355_v25 = vpop.f32.mrb[2].mxu0  ;;  %v6188_v26 = vadd.f32 %v3940_v24, %v272_v20  ;;  %v426_v28 = vpop.f32.mrb[1].mxu1 }
 0x135   :  { %v6190_v27 = vadd.f32 %v355_v25, %v264_v21  ;;  %v357_v31 = vpop.f32.mrb[3].mxu0  ;;  %v6206_v2 = vadd.f32 %v426_v28, %v272_v20 }
 0x136   :  { %v6192_v32 = vadd.f32 %v357_v31, %v268_v22 }
 0x14a   :  { %v507_v36 = vpop.f32.mrb[4].mxu0 }
 0x14b   :  { %v582_v37 = vadd.f32 %v507_v36, %v6194_v35  ;;  %v509_v39 = vpop.f32.mrb[5].mxu0 }
 0x14c   :  { %v589_v45 = vadd.f32 %v509_v39, %v6197_v42 }
 0x14d   :  { %v3607_v43 = vmul.f32 -1.442695, %v582_v37 }
 0x14e   :  { %v3608_v46 = vmul.f32 -1.442695, %v589_v45 }
 0x14f   :  { %5519 = vpow2.f32 %v3607_v43 }
 0x150   :  { %5521 = vpow2.f32 %v3608_v46 }
 0x154   :  { %v578_v48 = vpop.f32.mrb[2].mxu1 }
 0x155   :  { %v3975_v50 = vpop.f32.mrb[3].mxu1  ;;  %v596_v63 = vadd.f32 %v6203_v58, %v578_v48 }
 0x159   :  { %v5520_v53 = vpop.eup %5519 }
 0x15a   :  { %v586_v54 = vadd.f32 1.0, %v5520_v53  ;;  %v5522_v57 = vpop.eup %5521 }
 0x15b   :  { %v593_v62 = vadd.f32 1.0, %v5522_v57 }
 0x15c   :  { %5523 = vrcp.f32 %v586_v54 }
 0x15d   :  { %5525 = vrcp.f32 %v593_v62 }
 0x166   :  { %v5524_v1 = vpop.eup %5523 }
 0x167   :  { %v597_v6 = vmul.f32 %v5524_v1, %v596_v63  ;;  %v5526_v10 = vpop.eup %5525 }
 0x168   :  { %v600_v11 = vsub.f32 1.0, %v5526_v10  ;;  %v602_v21 = vmul.f32 0.0, %v5526_v10 }
 0x169   :  { %v598_v7 = vadd.f32 %v597_v6, %v6206_v2 }
 0x16b   :  { %5527 = vtanh.f32 %v598_v7 }
 0x175   :  { %v5528_v12 = vpop.eup %5527 }
 0x176   :  { %v601_v16 = vmul.f32 %v5528_v12, %v600_v11 }
 0x178   :  { %v6209_v22 = vadd.f32 %v602_v21, %v601_v16 }
 0x17a   :  { %669 = vmatmul.mubr.f32.vlgmr.msra.gmra.mrb[6].mxu0 %v6209_v22  ;;  %4009 = vmatmul.mubr.f32.vlgmr.msra.gmra.mrb[4].mxu1 %v6209_v22  ;;  %v775_v7 = vrot.slane %v6209_v22, 6 }
 0x17b   :  { %4659 = vmatpush1.bf16.msra.mxu0 %v5999_v34  ;;  %4690 = vmatpush3.bf16.msra.mxu1 %v6068_v18 }
 0x17c   :  { %4661 = vmatprep.subr.bf16.mxu0 %v6014_v38  ;;  %4691 = vmatprep.subr.bf16.mxu1 %v5819_v55 }
 0x17d   :  { %846 = vmatprep.mubr.f32.mxu0 %v5818_v5  ;;  %4043 = vmatprep.mubr.msk.f32.mxu1 %vm5820_vm8, %v5818_v5 }
 0x17f   :  { %4663 = vmatpush1.bf16.msra.mxu0 %v6025_v47  ;;  %4693 = vmatpush3.bf16.msra.mxu1 %v6081_v29 }
 0x180   :  { %4665 = vmatprep.subr.bf16.mxu0 %v6032_v49  ;;  %4694 = vmatprep.subr.bf16.mxu1 %v5819_v55 }
 0x183   :  { %4667 = vmatpush1.bf16.msra.mxu0 %v6051_v61  ;;  %4696 = vmatpush3.bf16.msra.mxu1 %v6094_v40 }
 0x184   :  { %4669 = vmatprep.subr.bf16.mxu0 %v6059_v3  ;;  %4697 = vmatprep.subr.bf16.mxu1 %v5819_v55 }
 0x187   :  { %4671 = vmatpush1.bf16.msra.mxu0 %v6071_v19  ;;  %4699 = vmatpush3.bf16.msra.mxu1 %v6104_v51 }
 0x188   :  { %4673 = vmatprep.subr.bf16.mxu0 %v6075_v23  ;;  %4700 = vmatprep.subr.bf16.mxu1 %v5819_v55 }
 0x18b   :  { %4675 = vmatpush1.bf16.msra.mxu0 %v6085_v30  ;;  %4702 = vmatpush3.bf16.msra.mxu1 %v6114_v59 }
 0x18c   :  { %4677 = vmatprep.subr.bf16.mxu0 %v6089_v33  ;;  %4703 = vmatprep.subr.bf16.mxu1 %v5819_v55 }
 0x18f   :  { %4679 = vmatpush1.bf16.msra.mxu0 %v6097_v41  ;;  %4705 = vmatpush3.bf16.msra.mxu1 %v6122_v0 }
 0x190   :  { %4681 = vmatprep.subr.bf16.mxu0 %v6101_v44  ;;  %4706 = vmatprep.subr.bf16.mxu1 %v5819_v55 }
 0x193   :  { %4683 = vmatpush1.bf16.msra.mxu0 %v6107_v52  ;;  %4708 = vmatpush3.bf16.msra.mxu1 %v6129_v4 }
 0x194   :  { %4685 = vmatprep.subr.bf16.mxu0 %v6111_v56  ;;  %4709 = vmatprep.subr.bf16.mxu1 %v5819_v55 }
 0x197   :  { %4687 = vmatpush1.bf16.msra.mxu0 %v6117_v60  ;;  %4711 = vmatpush3.bf16.msra.mxu1 %v6136_v8 }
 0x198   :  { %4713 = vmatprep.subr.bf16.mxu0 %v5955_v9  ;;  %4744 = vmatprep.subr.bf16.mxu1 %v5819_v55 }
 0x24d   :  { %v670_v20 = vpop.f32.mrb[6].mxu0  ;;  %v741_v24 = vpop.f32.mrb[4].mxu1 }
 0x24e   :  { %v746_v25 = vrot.slane %v670_v20, 6  ;;  %v672_v28 = vpop.f32.mrb[7].mxu0  ;;  %v4010_v31 = vpop.f32.mrb[5].mxu1  ;;  %v765_v53 = vadd.f32 %v6203_v58, %v741_v24 }
 0x24f   :  { %v756_v36 = vrot.slane %v672_v28, 6 }
 0x250   :  { %v748_v37 = vadd.f32 %v746_v25, %v6194_v35  ;;  %v767_v57 = vrot.slane %v765_v53, 6 }
 0x251   :  { %v758_v43 = vadd.f32 %v756_v36, %v6197_v42 }
 0x252   :  { %v3609_v39 = vmul.f32 -1.442695, %v748_v37 }
 0x253   :  { %v3610_v45 = vmul.f32 -1.442695, %v758_v43 }
 0x254   :  { %5529 = vpow2.f32 %v3609_v39 }
 0x255   :  { %5531 = vpow2.f32 %v3610_v45 }
 0x25e   :  { %v5530_v46 = vpop.eup %5529 }
 0x25f   :  { %v752_v48 = vadd.f32 1.0, %v5530_v46  ;;  %v5532_v50 = vpop.eup %5531 }
 0x260   :  { %v762_v54 = vadd.f32 1.0, %v5532_v50 }
 0x261   :  { %5533 = vrcp.f32 %v752_v48 }
 0x262   :  { %5535 = vrcp.f32 %v762_v54 }
 0x26b   :  { %v5534_v62 = vpop.eup %5533 }
 0x26c   :  { %v769_v63 = vmul.f32 %v5534_v62, %v767_v57  ;;  %v5536_v6 = vpop.eup %5535 }
 0x26d   :  { %v772_v10 = vsub.f32 1.0, %v5536_v6  ;;  %v777_v16 = vmul.f32 %v5536_v6, %v775_v7 }
 0x26e   :  { %v770_v1 = vadd.f32 %v769_v63, %v6206_v2 }
 0x270   :  { %5537 = vtanh.f32 %v770_v1 }
 0x27a   :  { %v5538_v11 = vpop.eup %5537 }
 0x27b   :  { %v773_v12 = vmul.f32 %v5538_v11, %v772_v10 }
 0x27d   :  { %v6253_v21 = vadd.f32 %v777_v16, %v773_v12 }
 0x27f   :  { %v780_v20 = vrot.slane %v6253_v21, 2  ;;  %v952_v1 = vrot.slane %v6253_v21, 6 }
 0x281   :  { %847 = vmatmul.mubr.f32.vlgmr.msra.gmra.mrb[8].mxu0 %v780_v20  ;;  %4044 = vmatmul.mubr.f32.vlgmr.msra.gmra.mrb[6].mxu1 %v780_v20 }
 0x282   :  { %4715 = vmatpush1.bf16.msra.mxu0 %v5999_v34  ;;  %4746 = vmatpush3.bf16.msra.mxu1 %v6068_v18 }
 0x283   :  { %4717 = vmatprep.subr.bf16.mxu0 %v6014_v38  ;;  %4747 = vmatprep.subr.bf16.mxu1 %v5819_v55 }
 0x284   :  { %1023 = vmatprep.mubr.f32.mxu0 %v5818_v5  ;;  %4078 = vmatprep.mubr.msk.f32.mxu1 %vm5820_vm8, %v5818_v5 }
 0x286   :  { %4719 = vmatpush1.bf16.msra.mxu0 %v6025_v47  ;;  %4749 = vmatpush3.bf16.msra.mxu1 %v6081_v29 }
 0x287   :  { %4721 = vmatprep.subr.bf16.mxu0 %v6032_v49  ;;  %4750 = vmatprep.subr.bf16.mxu1 %v5819_v55 }
 0x28a   :  { %4723 = vmatpush1.bf16.msra.mxu0 %v6051_v61  ;;  %4752 = vmatpush3.bf16.msra.mxu1 %v6094_v40 }
 0x28b   :  { %4725 = vmatprep.subr.bf16.mxu0 %v6059_v3  ;;  %4753 = vmatprep.subr.bf16.mxu1 %v5819_v55 }
 0x28e   :  { %4727 = vmatpush1.bf16.msra.mxu0 %v6071_v19  ;;  %4755 = vmatpush3.bf16.msra.mxu1 %v6104_v51 }
 0x28f   :  { %4729 = vmatprep.subr.bf16.mxu0 %v6075_v23  ;;  %4756 = vmatprep.subr.bf16.mxu1 %v5819_v55 }
 0x292   :  { %4731 = vmatpush1.bf16.msra.mxu0 %v6085_v30  ;;  %4758 = vmatpush3.bf16.msra.mxu1 %v6114_v59 }
 0x293   :  { %4733 = vmatprep.subr.bf16.mxu0 %v6089_v33  ;;  %4759 = vmatprep.subr.bf16.mxu1 %v5819_v55 }
 0x296   :  { %4735 = vmatpush1.bf16.msra.mxu0 %v6097_v41  ;;  %4761 = vmatpush3.bf16.msra.mxu1 %v6122_v0 }
 0x297   :  { %4737 = vmatprep.subr.bf16.mxu0 %v6101_v44  ;;  %4762 = vmatprep.subr.bf16.mxu1 %v5819_v55 }
 0x29a   :  { %4739 = vmatpush1.bf16.msra.mxu0 %v6107_v52  ;;  %4764 = vmatpush3.bf16.msra.mxu1 %v6129_v4 }
 0x29b   :  { %4741 = vmatprep.subr.bf16.mxu0 %v6111_v56  ;;  %4765 = vmatprep.subr.bf16.mxu1 %v5819_v55 }
 0x29e   :  { %4743 = vmatpush1.bf16.msra.mxu0 %v6117_v60  ;;  %4767 = vmatpush3.bf16.msra.mxu1 %v6136_v8 }
 0x29f   :  { %4769 = vmatprep.subr.bf16.mxu0 %v5955_v9  ;;  %4800 = vmatprep.subr.bf16.mxu1 %v5819_v55 }
 0x354   :  { %v848_v24 = vpop.f32.mrb[8].mxu0  ;;  %v919_v25 = vpop.f32.mrb[6].mxu1 }
 0x355   :  { %v924_v28 = vrot.slane %v848_v24, 4  ;;  %v850_v31 = vpop.f32.mrb[9].mxu0  ;;  %v4045_v36 = vpop.f32.mrb[7].mxu1  ;;  %v943_v57 = vadd.f32 %v6203_v58, %v919_v25 }
 0x356   :  { %v934_v37 = vrot.slane %v850_v31, 4 }
 0x357   :  { %v926_v39 = vadd.f32 %v924_v28, %v6194_v35  ;;  %v945_v62 = vrot.slane %v943_v57, 4  ;;  %v1829_v28 = vsel %vm185_vm1, %v6209_v22, %v6253_v21 }
 0x358   :  { %v936_v43 = vadd.f32 %v934_v37, %v6197_v42 }
 0x359   :  { %v3611_v45 = vmul.f32 -1.442695, %v926_v39 }
 0x35a   :  { %v3612_v46 = vmul.f32 -1.442695, %v936_v43 }
 0x35b   :  { %5539 = vpow2.f32 %v3611_v45 }
 0x35c   :  { %5541 = vpow2.f32 %v3612_v46 }
 0x365   :  { %v5540_v48 = vpop.eup %5539 }
 0x366   :  { %v5542_v50 = vpop.eup %5541  ;;  %v930_v53 = vadd.f32 1.0, %v5540_v48 }
 0x367   :  { %v940_v54 = vadd.f32 1.0, %v5542_v50 }
 0x368   :  { %5543 = vrcp.f32 %v930_v53 }
 0x369   :  { %5545 = vrcp.f32 %v940_v54 }
 0x372   :  { %v5544_v63 = vpop.eup %5543 }
 0x373   :  { %v5546_v6 = vpop.eup %5545  ;;  %v947_v7 = vmul.f32 %v5544_v63, %v945_v62 }
 0x374   :  { %v954_v10 = vmul.f32 %v5546_v6, %v952_v1  ;;  %v950_v12 = vsub.f32 1.0, %v5546_v6 }
 0x375   :  { %v948_v11 = vadd.f32 %v947_v7, %v6206_v2 }
 0x377   :  { %5547 = vtanh.f32 %v948_v11 }
 0x381   :  { %v5548_v16 = vpop.eup %5547 }
 0x382   :  { %v951_v20 = vmul.f32 %v5548_v16, %v950_v12 }
 0x384   :  { %v6296_v24 = vadd.f32 %v954_v10, %v951_v20 }
 0x386   :  { %v957_v25 = vrot.slane %v6296_v24, 4  ;;  %v6304_v31 = vsel %vm189_vm3, %v1829_v28, %v6296_v24  ;;  %v1129_v7 = vrot.slane %v6296_v24, 6 }
 0x388   :  { %1024 = vmatmul.mubr.f32.vlgmr.msra.gmra.mrb[10].mxu0 %v957_v25  ;;  %4079 = vmatmul.mubr.f32.vlgmr.msra.gmra.mrb[8].mxu1 %v957_v25 }
 0x389   :  { %4771 = vmatpush1.bf16.msra.mxu0 %v5999_v34  ;;  %4802 = vmatpush3.bf16.msra.mxu1 %v6068_v18 }
 0x38a   :  { %4773 = vmatprep.subr.bf16.mxu0 %v6014_v38  ;;  %4803 = vmatprep.subr.bf16.mxu1 %v5819_v55 }
 0x38b   :  { %1200 = vmatprep.mubr.f32.mxu0 %v5818_v5  ;;  %4113 = vmatprep.mubr.msk.f32.mxu1 %vm5820_vm8, %v5818_v5 }
 0x38d   :  { %4775 = vmatpush1.bf16.msra.mxu0 %v6025_v47  ;;  %4805 = vmatpush3.bf16.msra.mxu1 %v6081_v29 }
 0x38e   :  { %4777 = vmatprep.subr.bf16.mxu0 %v6032_v49  ;;  %4806 = vmatprep.subr.bf16.mxu1 %v5819_v55 }
 0x391   :  { %4779 = vmatpush1.bf16.msra.mxu0 %v6051_v61  ;;  %4808 = vmatpush3.bf16.msra.mxu1 %v6094_v40 }
 0x392   :  { %4781 = vmatprep.subr.bf16.mxu0 %v6059_v3  ;;  %4809 = vmatprep.subr.bf16.mxu1 %v5819_v55 }
 0x395   :  { %4783 = vmatpush1.bf16.msra.mxu0 %v6071_v19  ;;  %4811 = vmatpush3.bf16.msra.mxu1 %v6104_v51 }
 0x396   :  { %4785 = vmatprep.subr.bf16.mxu0 %v6075_v23  ;;  %4812 = vmatprep.subr.bf16.mxu1 %v5819_v55 }
 0x399   :  { %4787 = vmatpush1.bf16.msra.mxu0 %v6085_v30  ;;  %4814 = vmatpush3.bf16.msra.mxu1 %v6114_v59 }
 0x39a   :  { %4789 = vmatprep.subr.bf16.mxu0 %v6089_v33  ;;  %4815 = vmatprep.subr.bf16.mxu1 %v5819_v55 }
 0x39d   :  { %4791 = vmatpush1.bf16.msra.mxu0 %v6097_v41  ;;  %4817 = vmatpush3.bf16.msra.mxu1 %v6122_v0 }
 0x39e   :  { %4793 = vmatprep.subr.bf16.mxu0 %v6101_v44  ;;  %4818 = vmatprep.subr.bf16.mxu1 %v5819_v55 }
 0x3a1   :  { %4795 = vmatpush1.bf16.msra.mxu0 %v6107_v52  ;;  %4820 = vmatpush3.bf16.msra.mxu1 %v6129_v4 }
 0x3a2   :  { %4797 = vmatprep.subr.bf16.mxu0 %v6111_v56  ;;  %4821 = vmatprep.subr.bf16.mxu1 %v5819_v55 }
 0x3a5   :  { %4799 = vmatpush1.bf16.msra.mxu0 %v6117_v60  ;;  %4823 = vmatpush3.bf16.msra.mxu1 %v6136_v8 }
 0x3a6   :  { %4825 = vmatprep.subr.bf16.mxu0 %v5955_v9  ;;  %4856 = vmatprep.subr.bf16.mxu1 %v5819_v55 }
 0x45b   :  { %v1025_v22 = vpop.f32.mrb[10].mxu0  ;;  %v1096_v21 = vpop.f32.mrb[8].mxu1 }
 0x45c   :  { %v1101_v36 = vrot.slane %v1025_v22, 2  ;;  %v1027_v37 = vpop.f32.mrb[11].mxu0  ;;  %v4080_v39 = vpop.f32.mrb[9].mxu1  ;;  %v1120_v63 = vadd.f32 %v6203_v58, %v1096_v21 }
 0x45d   :  { %v1111_v43 = vrot.slane %v1027_v37, 2 }
 0x45e   :  { %v1103_v45 = vadd.f32 %v1101_v36, %v6194_v35  ;;  %v1122_v1 = vrot.slane %v1120_v63, 2 }
 0x45f   :  { %v1113_v46 = vadd.f32 %v1111_v43, %v6197_v42 }
 0x460   :  { %v3613_v48 = vmul.f32 -1.442695, %v1103_v45 }
 0x461   :  { %v3614_v50 = vmul.f32 -1.442695, %v1113_v46 }
 0x462   :  { %5549 = vpow2.f32 %v3613_v48 }
 0x463   :  { %5551 = vpow2.f32 %v3614_v50 }
 0x46c   :  { %v5550_v53 = vpop.eup %5549 }
 0x46d   :  { %v5552_v54 = vpop.eup %5551  ;;  %v1107_v57 = vadd.f32 1.0, %v5550_v53 }
 0x46e   :  { %v1117_v62 = vadd.f32 1.0, %v5552_v54 }
 0x46f   :  { %5553 = vrcp.f32 %v1107_v57 }
 0x470   :  { %5555 = vrcp.f32 %v1117_v62 }
 0x479   :  { %v5554_v6 = vpop.eup %5553 }
 0x47a   :  { %v5556_v10 = vpop.eup %5555  ;;  %v1124_v35 = vmul.f32 %v5554_v6, %v1122_v1 }
 0x47b   :  { %v1131_v11 = vmul.f32 %v5556_v10, %v1129_v7  ;;  %v1127_v12 = vsub.f32 1.0, %v5556_v10 }
 0x47c   :  { %v1125_v42 = vadd.f32 %v1124_v35, %v6206_v2 }
 0x47e   :  { %5557 = vtanh.f32 %v1125_v42 }
 0x488   :  { %v5558_v16 = vpop.eup %5557 }
 0x489   :  { %v1128_v20 = vmul.f32 %v5558_v16, %v1127_v12 }
 0x48b   :  { %v1132_v28 = vadd.f32 %v1131_v11, %v1128_v20 }
 0x48d   :  { %v6346_v25 = vrot.slane %v1132_v28, 6  ;;  %v6350_v22 = vsel %vm193_vm5, %v6304_v31, %v1132_v28 }
 0x48f   :  { %1201 = vmatmul.mubr.f32.vlgmr.msra.gmra.mrb[12].mxu0 %v6346_v25  ;;  %4114 = vmatmul.mubr.f32.vlgmr.msra.gmra.mrb[10].mxu1 %v6346_v25 }
 0x490   :  { %4827 = vmatpush1.bf16.msra.mxu0 %v5999_v34  ;;  %4858 = vmatpush3.bf16.msra.mxu1 %v6068_v18 }
 0x491   :  { %4829 = vmatprep.subr.bf16.mxu0 %v6014_v38  ;;  %4859 = vmatprep.subr.bf16.mxu1 %v5819_v55 }
 0x492   :  { %1363 = vmatprep.mubr.f32.mxu0 %v5818_v5  ;;  %4148 = vmatprep.mubr.msk.f32.mxu1 %vm5820_vm8, %v5818_v5 }
 0x494   :  { %4831 = vmatpush1.bf16.msra.mxu0 %v6025_v47  ;;  %4861 = vmatpush3.bf16.msra.mxu1 %v6081_v29 }
 0x495   :  { %4833 = vmatprep.subr.bf16.mxu0 %v6032_v49  ;;  %4862 = vmatprep.subr.bf16.mxu1 %v5819_v55 }
 0x498   :  { %4835 = vmatpush1.bf16.msra.mxu0 %v6051_v61  ;;  %4864 = vmatpush3.bf16.msra.mxu1 %v6094_v40 }
 0x499   :  { %4837 = vmatprep.subr.bf16.mxu0 %v6059_v3  ;;  %4865 = vmatprep.subr.bf16.mxu1 %v5819_v55 }
 0x49c   :  { %4839 = vmatpush1.bf16.msra.mxu0 %v6071_v19  ;;  %4867 = vmatpush3.bf16.msra.mxu1 %v6104_v51 }
 0x49d   :  { %4841 = vmatprep.subr.bf16.mxu0 %v6075_v23  ;;  %4868 = vmatprep.subr.bf16.mxu1 %v5819_v55 }
 0x4a0   :  { %4843 = vmatpush1.bf16.msra.mxu0 %v6085_v30  ;;  %4870 = vmatpush3.bf16.msra.mxu1 %v6114_v59 }
 0x4a1   :  { %4845 = vmatprep.subr.bf16.mxu0 %v6089_v33  ;;  %4871 = vmatprep.subr.bf16.mxu1 %v5819_v55 }
 0x4a4   :  { %4847 = vmatpush1.bf16.msra.mxu0 %v6097_v41  ;;  %4873 = vmatpush3.bf16.msra.mxu1 %v6122_v0 }
 0x4a5   :  { %4849 = vmatprep.subr.bf16.mxu0 %v6101_v44  ;;  %4874 = vmatprep.subr.bf16.mxu1 %v5819_v55 }
 0x4a8   :  { %4851 = vmatpush1.bf16.msra.mxu0 %v6107_v52  ;;  %4876 = vmatpush3.bf16.msra.mxu1 %v6129_v4 }
 0x4a9   :  { %4853 = vmatprep.subr.bf16.mxu0 %v6111_v56  ;;  %4877 = vmatprep.subr.bf16.mxu1 %v5819_v55 }
 0x4ac   :  { %4855 = vmatpush1.bf16.msra.mxu0 %v6117_v60  ;;  %4879 = vmatpush3.bf16.msra.mxu1 %v6136_v8 }
 0x4ad   :  { %4881 = vmatprep.subr.bf16.mxu0 %v5955_v9  ;;  %4912 = vmatprep.subr.bf16.mxu1 %v5819_v55 }
 0x562   :  { %v1202_v2 = vpop.f32.mrb[12].mxu0  ;;  %v1273_v24 = vpop.f32.mrb[10].mxu1 }
 0x563   :  { %v1277_v31 = vadd.f32 %v1202_v2, %v6190_v27  ;;  %v1204_v21 = vpop.f32.mrb[13].mxu0  ;;  %v4115_v36 = vpop.f32.mrb[11].mxu1  ;;  %v1291_v53 = vadd.f32 %v6203_v58, %v1273_v24 }
 0x564   :  { %v1284_v39 = vadd.f32 %v1204_v21, %v6192_v32 }
 0x565   :  { %v3615_v37 = vmul.f32 -1.442695, %v1277_v31 }
 0x566   :  { %v3616_v43 = vmul.f32 -1.442695, %v1284_v39 }
 0x567   :  { %5559 = vpow2.f32 %v3615_v37 }
 0x568   :  { %5561 = vpow2.f32 %v3616_v43 }
 0x571   :  { %v5560_v45 = vpop.eup %5559 }
 0x572   :  { %v1281_v46 = vadd.f32 1.0, %v5560_v45  ;;  %v5562_v48 = vpop.eup %5561 }
 0x573   :  { %v1288_v50 = vadd.f32 1.0, %v5562_v48 }
 0x574   :  { %5563 = vrcp.f32 %v1281_v46 }
 0x575   :  { %5565 = vrcp.f32 %v1288_v50 }
 0x57e   :  { %v5564_v54 = vpop.eup %5563 }
 0x57f   :  { %v1292_v57 = vmul.f32 %v5564_v54, %v1291_v53  ;;  %v5566_v63 = vpop.eup %5565 }
 0x580   :  { %v1295_v1 = vsub.f32 1.0, %v5566_v63  ;;  %v1297_v10 = vmul.f32 %v5566_v63, %v6346_v25 }
 0x581   :  { %v1293_v62 = vadd.f32 %v1292_v57, %v6188_v26 }
 0x583   :  { %5567 = vtanh.f32 %v1293_v62 }
 0x58d   :  { %v5568_v6 = vpop.eup %5567 }
 0x58e   :  { %v1296_v7 = vmul.f32 %v5568_v6, %v1295_v1 }
 0x590   :  { %v6394_v35 = vadd.f32 %v1297_v10, %v1296_v7 }
 0x592   :  { %1364 = vmatmul.mubr.f32.vlgmr.msra.gmra.mrb[14].mxu0 %v6394_v35  ;;  %4149 = vmatmul.mubr.f32.vlgmr.msra.gmra.mrb[12].mxu1 %v6394_v35  ;;  %v1470_v53 = vrot.slane %v6394_v35, 6 }
 0x593   :  { %4883 = vmatpush1.bf16.msra.mxu0 %v5999_v34  ;;  %4914 = vmatpush3.bf16.msra.mxu1 %v6068_v18 }
 0x594   :  { %4885 = vmatprep.subr.bf16.mxu0 %v6014_v38  ;;  %4915 = vmatprep.subr.bf16.mxu1 %v5819_v55 }
 0x595   :  { %1541 = vmatprep.mubr.f32.mxu0 %v5818_v5  ;;  %4183 = vmatprep.mubr.msk.f32.mxu1 %vm5820_vm8, %v5818_v5 }
 0x597   :  { %4887 = vmatpush1.bf16.msra.mxu0 %v6025_v47  ;;  %4917 = vmatpush3.bf16.msra.mxu1 %v6081_v29 }
 0x598   :  { %4889 = vmatprep.subr.bf16.mxu0 %v6032_v49  ;;  %4918 = vmatprep.subr.bf16.mxu1 %v5819_v55 }
 0x59b   :  { %4891 = vmatpush1.bf16.msra.mxu0 %v6051_v61  ;;  %4920 = vmatpush3.bf16.msra.mxu1 %v6094_v40 }
 0x59c   :  { %4893 = vmatprep.subr.bf16.mxu0 %v6059_v3  ;;  %4921 = vmatprep.subr.bf16.mxu1 %v5819_v55 }
 0x59f   :  { %4895 = vmatpush1.bf16.msra.mxu0 %v6071_v19  ;;  %4923 = vmatpush3.bf16.msra.mxu1 %v6104_v51 }
 0x5a0   :  { %4897 = vmatprep.subr.bf16.mxu0 %v6075_v23  ;;  %4924 = vmatprep.subr.bf16.mxu1 %v5819_v55 }
 0x5a3   :  { %4899 = vmatpush1.bf16.msra.mxu0 %v6085_v30  ;;  %4926 = vmatpush3.bf16.msra.mxu1 %v6114_v59 }
 0x5a4   :  { %4901 = vmatprep.subr.bf16.mxu0 %v6089_v33  ;;  %4927 = vmatprep.subr.bf16.mxu1 %v5819_v55 }
 0x5a7   :  { %4903 = vmatpush1.bf16.msra.mxu0 %v6097_v41  ;;  %4929 = vmatpush3.bf16.msra.mxu1 %v6122_v0 }
 0x5a8   :  { %4905 = vmatprep.subr.bf16.mxu0 %v6101_v44  ;;  %4930 = vmatprep.subr.bf16.mxu1 %v5819_v55 }
 0x5ab   :  { %4907 = vmatpush1.bf16.msra.mxu0 %v6107_v52  ;;  %4932 = vmatpush3.bf16.msra.mxu1 %v6129_v4 }
 0x5ac   :  { %4909 = vmatprep.subr.bf16.mxu0 %v6111_v56  ;;  %4933 = vmatprep.subr.bf16.mxu1 %v5819_v55 }
 0x5af   :  { %4911 = vmatpush1.bf16.msra.mxu0 %v6117_v60  ;;  %4935 = vmatpush3.bf16.msra.mxu1 %v6136_v8 }
 0x5b0   :  { %4937 = vmatprep.subr.bf16.mxu0 %v5955_v9  ;;  %4968 = vmatprep.subr.bf16.mxu1 %v5819_v55 }
 0x665   :  { %v1365_v11 = vpop.f32.mrb[14].mxu0  ;;  %v1436_v42 = vpop.f32.mrb[12].mxu1 }
 0x666   :  { %v1441_v12 = vrot.slane %v1365_v11, 6  ;;  %v1367_v16 = vpop.f32.mrb[15].mxu0  ;;  %v4150_v20 = vpop.f32.mrb[13].mxu1  ;;  %v1460_v37 = vadd.f32 %v6203_v58, %v1436_v42 }
 0x667   :  { %v1451_v28 = vrot.slane %v1367_v16, 6  ;;  %v1835_v16 = vld [vmem:[#allocation7] sm:$0xff]  ;;  %v1838_v20 = vld [vmem:[#allocation7 + $0x18] sm:$0xff] }
 0x668   :  { %v1443_v25 = vadd.f32 %v1441_v12, %v6190_v27  ;;  %v1462_v43 = vrot.slane %v1460_v37, 6 }
 0x669   :  { %v1453_v24 = vadd.f32 %v1451_v28, %v6192_v32  ;;  %v1842_v28 = vld [vmem:[#allocation7 + $0x38] sm:$0xff] }
 0x66a   :  { %v3617_v2 = vmul.f32 -1.442695, %v1443_v25  ;;  %v1845_v25 = vld [vmem:[#allocation7 + $0x50] sm:$0xff] }
 0x66b   :  { %v3618_v31 = vmul.f32 -1.442695, %v1453_v24 }
 0x66c   :  { %5569 = vpow2.f32 %v3617_v2 }
 0x66d   :  { %5571 = vpow2.f32 %v3618_v31 }
 0x676   :  { %v5570_v21 = vpop.eup %5569 }
 0x677   :  { %v1447_v36 = vadd.f32 1.0, %v5570_v21  ;;  %v5572_v9 = vpop.eup %5571  ;;  %v4996_v21 = vpack.c.bf16 %v1845_v25, %v1842_v28  ;;  %v1887_v28 = vld [vmem:[#allocation9 + $0x20] sm:$0xff] }
 0x678   :  { %v1457_v39 = vadd.f32 1.0, %v5572_v9  ;;  %v1844_v9 = vld [vmem:[#allocation7 + $0x48] sm:$0xff] }
 0x679   :  { %5573 = vrcp.f32 %v1447_v36  ;;  %v1841_v36 = vld [vmem:[#allocation7 + $0x30] sm:$0xff] }
 0x67a   :  { %5575 = vrcp.f32 %v1457_v39  ;;  %v1848_v39 = vld [vmem:[#allocation7 + $0x68] sm:$0xff] }
 0x683   :  { %v5574_v45 = vpop.eup %5573 }
 0x684   :  { %v1464_v46 = vmul.f32 %v5574_v45, %v1462_v43  ;;  %v5576_v50 = vpop.eup %5575  ;;  %v1851_v43 = vld [vmem:[#allocation7 + $0x80] sm:$0xff]  ;;  %v4998_v45 = vpack.c.bf16 %v1844_v9, %v1841_v36  ;;  %v1890_v9 = vld [vmem:[#allocation9 + $0x38] sm:$0xff] }
 0x685   :  { %v1467_v54 = vsub.f32 1.0, %v5576_v50  ;;  %v1472_v63 = vmul.f32 %v5576_v50, %v1470_v53  ;;  %v1854_v50 = vld [vmem:[#allocation7 + $0x98] sm:$0xff]  ;;  %v1857_v53 = vld [vmem:[#allocation7 + $0xb0] sm:$0xff] }
 0x686   :  { %v1465_v48 = vadd.f32 %v1464_v46, %v6188_v26  ;;  %v5000_v46 = vpack.c.bf16 %v1851_v43, %v1848_v39  ;;  %v1893_v39 = vld [vmem:[#allocation9 + $0x50] sm:$0xff] }
 0x687   :  { %v6499_v43 = vpack.c.bf16 %v1893_v39, %v1890_v9  ;;  %v1926_v9 = vld [vmem:[#allocation9 + $0x158] sm:$0xff]  ;;  %v1929_v39 = vld [vmem:[#allocation9 + $0x170] sm:$0xff] }
 0x688   :  { %5577 = vtanh.f32 %v1465_v48  ;;  %v1850_v48 = vld [vmem:[#allocation7 + $0x78] sm:$0xff] }
 0x692   :  { %v5578_v57 = vpop.eup %5577 }
 0x693   :  { %v1468_v62 = vmul.f32 %v5578_v57, %v1467_v54  ;;  %v5004_v57 = vpack.c.bf16 %v1857_v53, %v1854_v50  ;;  %v1858_v50 = vld [vmem:[#allocation7 + $0xb8] sm:$0xff] }
 0x695   :  { %v6438_v1 = vadd.f32 %v1472_v63, %v1468_v62  ;;  %v1853_v62 = vld [vmem:[#allocation7 + $0x90] sm:$0xff]  ;;  %v1856_v63 = vld [vmem:[#allocation7 + $0xa8] sm:$0xff] }
 0x697   :  { %v1475_v6 = vrot.slane %v6438_v1, 2  ;;  %v1832_v24 = vsel %vm185_vm1, %v6394_v35, %v6438_v1  ;;  %v1847_v35 = vld [vmem:[#allocation7 + $0x60] sm:$0xff] }
 0x698   :  { %v5002_v54 = vpack.c.bf16 %v1850_v48, %v1847_v35  ;;  %v1855_v48 = vld [vmem:[#allocation7 + $0xa0] sm:$0xff] }
 0x699   :  { %1542 = vmatmul.mubr.f32.vlgmr.msra.gmra.mrb[16].mxu0 %v1475_v6  ;;  %4184 = vmatmul.mubr.f32.vlgmr.msra.gmra.mrb[14].mxu1 %v1475_v6  ;;  %v1863_v6 = vld [vmem:[#allocation7 + $0xe0] sm:$0xff]  ;;  %v5036_v53 = vpack.c.bf16 %v1858_v50, %v1855_v48  ;;  %v1928_v48 = vld [vmem:[#allocation9 + $0x168] sm:$0xff] }
 0x69a   :  { %4939 = vmatpush1.bf16.msra.mxu0 %v5999_v34  ;;  %4970 = vmatpush3.bf16.msra.mxu1 %v6068_v18  ;;  %v1836_v34 = vld [vmem:[#allocation7 + $0x8] sm:$0xff] }
 0x69b   :  { %4941 = vmatprep.subr.bf16.mxu0 %v6014_v38  ;;  %4971 = vmatprep.subr.bf16.mxu1 %v5819_v55  ;;  %v1839_v38 = vld [vmem:[#allocation7 + $0x20] sm:$0xff] }
 0x69c   :  { %1718 = vmatprep.mubr.f32.mxu0 %v5818_v5  ;;  %4218 = vmatprep.mubr.msk.f32.mxu1 %vm5820_vm8, %v5818_v5 }
 0x69e   :  { %4943 = vmatpush1.bf16.msra.mxu0 %v6025_v47  ;;  %4973 = vmatpush3.bf16.msra.mxu1 %v6081_v29  ;;  %v4992_v47 = vpack.c.bf16 %v1839_v38, %v1836_v34  ;;  %v5006_v34 = vpack.c.bf16 %v1856_v63, %v1853_v62  ;;  %v1895_v63 = vld [vmem:[#allocation9 + $0x60] sm:$0xff] }
 0x69f   :  { %4945 = vmatprep.subr.bf16.mxu0 %v6032_v49  ;;  %4974 = vmatprep.subr.bf16.mxu1 %v5819_v55 }
 0x6a2   :  { %4947 = vmatpush1.bf16.msra.mxu0 %v6051_v61  ;;  %4976 = vmatpush3.bf16.msra.mxu1 %v6094_v40 }
 0x6a3   :  { %4949 = vmatprep.subr.bf16.mxu0 %v6059_v3  ;;  %4977 = vmatprep.subr.bf16.mxu1 %v5819_v55 }
 0x6a6   :  { %4951 = vmatpush1.bf16.msra.mxu0 %v6071_v19  ;;  %4979 = vmatpush3.bf16.msra.mxu1 %v6104_v51 }
 0x6a7   :  { %4953 = vmatprep.subr.bf16.mxu0 %v6075_v23  ;;  %4980 = vmatprep.subr.bf16.mxu1 %v5819_v55 }
 0x6aa   :  { %4955 = vmatpush1.bf16.msra.mxu0 %v6085_v30  ;;  %4982 = vmatpush3.bf16.msra.mxu1 %v6114_v59 }
 0x6ab   :  { %4957 = vmatprep.subr.bf16.mxu0 %v6089_v33  ;;  %4983 = vmatprep.subr.bf16.mxu1 %v5819_v55 }
 0x6ae   :  { %4959 = vmatpush1.bf16.msra.mxu0 %v6097_v41  ;;  %4985 = vmatpush3.bf16.msra.mxu1 %v6122_v0  ;;  %v1647_v0 = vrot.slane %v6438_v1, 6  ;;  %v1860_v1 = vld [vmem:[#allocation7 + $0xc8] sm:$0xff] }
 0x6af   :  { %4961 = vmatprep.subr.bf16.mxu0 %v6101_v44  ;;  %4986 = vmatprep.subr.bf16.mxu1 %v5819_v55  ;;  %v5008_v38 = vpack.c.bf16 %v1863_v6, %v1860_v1  ;;  %v1898_v1 = vld [vmem:[#allocation9 + $0x78] sm:$0xff] }
 0x6b0   :  { %v6507_v6 = vpack.c.bf16 %v1898_v1, %v1895_v63 }
 0x6b2   :  { %4963 = vmatpush1.bf16.msra.mxu0 %v6107_v52  ;;  %4988 = vmatpush3.bf16.msra.mxu1 %v6129_v4 }
 0x6b3   :  { %4965 = vmatprep.subr.bf16.mxu0 %v6111_v56  ;;  %4989 = vmatprep.subr.bf16.mxu1 %v5819_v55 }
 0x6b6   :  { %4967 = vmatpush1.bf16.msra.mxu0 %v6117_v60  ;;  %4991 = vmatpush3.bf16.msra.mxu1 %v6136_v8 }
 0x6b7   :  { %4993 = vmatprep.subr.bf16.mxu0 %v4992_v47  ;;  %v1859_v47 = vld [vmem:[#allocation7 + $0xc0] sm:$0xff] }
 0x76c   :  { %v1543_v49 = vpop.f32.mrb[16].mxu0  ;;  %v1614_v61 = vpop.f32.mrb[14].mxu1 }
 0x76d   :  { %v1619_v3 = vrot.slane %v1543_v49, 4  ;;  %v1545_v18 = vpop.f32.mrb[17].mxu0  ;;  %v4185_v19 = vpop.f32.mrb[15].mxu1  ;;  %v1638_v56 = vadd.f32 %v6203_v58, %v1614_v61  ;;  %v4994_v58 = vpack.c.bf16 %v1838_v20, %v1835_v16  ;;  %v1862_v49 = vld [vmem:[#allocation7 + $0xd8] sm:$0xff]  ;;  %v1884_v20 = vld [vmem:[#allocation9 + $0x8] sm:$0xff] }
 0x76e   :  { %v1629_v23 = vrot.slane %v1545_v18, 4  ;;  %v1866_v61 = vld [vmem:[#allocation7 + $0xf8] sm:$0xff]  ;;  %v5010_v18 = vpack.c.bf16 %v1862_v49, %v1859_v47  ;;  %v6493_v25 = vpack.c.bf16 %v1887_v28, %v1884_v20  ;;  %v1923_v20 = vld [vmem:[#allocation9 + $0x140] sm:$0xff] }
 0x76f   :  { %v1621_v29 = vadd.f32 %v1619_v3, %v6190_v27  ;;  %v1640_v59 = vrot.slane %v1638_v56, 4  ;;  %v1869_v3 = vld [vmem:[#allocation7 + $0x110] sm:$0xff]  ;;  %v1902_v49 = vld [vmem:[#allocation9 + $0x98] sm:$0xff] }
 0x770   :  { %v1631_v30 = vadd.f32 %v1629_v23, %v6192_v32  ;;  %v5012_v19 = vpack.c.bf16 %v1869_v3, %v1866_v61  ;;  %v1865_v23 = vld [vmem:[#allocation7 + $0xf0] sm:$0xff] }
 0x771   :  { %v3619_v33 = vmul.f32 -1.442695, %v1621_v29  ;;  %v1868_v29 = vld [vmem:[#allocation7 + $0x108] sm:$0xff]  ;;  %v1881_v56 = vld [vmem:[#allocation7 + $0x170] sm:$0xff] }
 0x772   :  { %v3620_v40 = vmul.f32 -1.442695, %v1631_v30  ;;  %v1872_v30 = vld [vmem:[#allocation7 + $0x128] sm:$0xff]  ;;  %v1905_v61 = vld [vmem:[#allocation9 + $0xb0] sm:$0xff] }
 0x773   :  { %5579 = vpow2.f32 %v3619_v33  ;;  %v1875_v33 = vld [vmem:[#allocation7 + $0x140] sm:$0xff]  ;;  %v6511_v3 = vpack.c.bf16 %v1905_v61, %v1902_v49 }
 0x774   :  { %5581 = vpow2.f32 %v3620_v40  ;;  %v5014_v40 = vpack.c.bf16 %v1868_v29, %v1865_v23  ;;  %v1867_v29 = vld [vmem:[#allocation7 + $0x100] sm:$0xff] }
 0x77d   :  { %v5580_v41 = vpop.eup %5579 }
 0x77e   :  { %v5582_v44 = vpop.eup %5581  ;;  %v1625_v51 = vadd.f32 1.0, %v5580_v41  ;;  %v5016_v41 = vpack.c.bf16 %v1875_v33, %v1872_v30  ;;  %v1870_v30 = vld [vmem:[#allocation7 + $0x118] sm:$0xff]  ;;  %v1908_v33 = vld [vmem:[#allocation9 + $0xc8] sm:$0xff] }
 0x77f   :  { %v1635_v52 = vadd.f32 1.0, %v5582_v44  ;;  %v1871_v44 = vld [vmem:[#allocation7 + $0x120] sm:$0xff] }
 0x780   :  { %5583 = vrcp.f32 %v1625_v51  ;;  %v1874_v51 = vld [vmem:[#allocation7 + $0x138] sm:$0xff] }
 0x781   :  { %5585 = vrcp.f32 %v1635_v52  ;;  %v1878_v52 = vld [vmem:[#allocation7 + $0x158] sm:$0xff] }
 0x78a   :  { %v5584_v60 = vpop.eup %5583 }
 0x78b   :  { %v5586_v4 = vpop.eup %5585  ;;  %v1642_v8 = vmul.f32 %v5584_v60, %v1640_v59  ;;  %v5018_v59 = vpack.c.bf16 %v1874_v51, %v1871_v44  ;;  %v5020_v60 = vpack.c.bf16 %v1881_v56, %v1878_v52  ;;  %v1907_v44 = vld [vmem:[#allocation9 + $0xc0] sm:$0xff]  ;;  %v1910_v51 = vld [vmem:[#allocation9 + $0xd8] sm:$0xff] }
 0x78c   :  { %v1649_v7 = vmul.f32 %v5586_v4, %v1647_v0  ;;  %v1645_v11 = vsub.f32 1.0, %v5586_v4  ;;  %v1877_v0 = vld [vmem:[#allocation7 + $0x150] sm:$0xff]  ;;  %v1880_v4 = vld [vmem:[#allocation7 + $0x168] sm:$0xff]  ;;  %v6519_v56 = vpack.c.bf16 %v1910_v51, %v1907_v44 }
 0x78d   :  { %v1643_v10 = vadd.f32 %v1642_v8, %v6188_v26  ;;  %v5022_v8 = vpack.c.bf16 %v1880_v4, %v1877_v0  ;;  %v1914_v0 = vld [vmem:[#allocation9 + $0xf8] sm:$0xff] }
 0x78f   :  { %5587 = vtanh.f32 %v1643_v10  ;;  %v1840_v10 = vld [vmem:[#allocation7 + $0x28] sm:$0xff] }
 0x799   :  { %v5588_v42 = vpop.eup %5587 }
 0x79a   :  { %v1646_v12 = vmul.f32 %v5588_v42, %v1645_v11  ;;  %v1843_v42 = vld [vmem:[#allocation7 + $0x40] sm:$0xff] }
 0x79c   :  { %v6479_v2 = vadd.f32 %v1649_v7, %v1646_v12  ;;  %v1837_v7 = vld [vmem:[#allocation7 + $0x10] sm:$0xff]  ;;  %v1846_v12 = vld [vmem:[#allocation7 + $0x58] sm:$0xff] }
 0x79d   :  { %v5024_v11 = vpack.c.bf16 %v1840_v10, %v1837_v7  ;;  %v5028_v16 = vpack.c.bf16 %v1846_v12, %v1843_v42  ;;  %v1913_v7 = vld [vmem:[#allocation9 + $0xf0] sm:$0xff]  ;;  %v1916_v10 = vld [vmem:[#allocation9 + $0x108] sm:$0xff]  ;;  %v1879_v42 = vld [vmem:[#allocation7 + $0x160] sm:$0xff] }
 0x79e   :  { %v1652_v31 = vrot.slane %v6479_v2, 4  ;;  %v6487_v37 = vsel %vm189_vm3, %v1832_v24, %v6479_v2  ;;  %v1886_v24 = vld [vmem:[#allocation9 + $0x18] sm:$0xff]  ;;  %v6525_v28 = vpack.c.bf16 %v1916_v10, %v1913_v7  ;;  %v1885_v10 = vld [vmem:[#allocation9 + $0x10] sm:$0xff] }
 0x79f   :  { %5025 = vmatprep.subr.bf16.mxu1 %v5024_v11  ;;  %v1882_v12 = vld [vmem:[#allocation7 + $0x178] sm:$0xff] }
 0x7a0   :  { %1719 = vmatmul.mubr.f32.vlgmr.msra.gmra.mrb[18].mxu0 %v1652_v31  ;;  %4219 = vmatmul.mubr.f32.vlgmr.msra.gmra.mrb[16].mxu1 %v1652_v31 }
 0x7a1   :  { %4995 = vmatpush1.bf16.msra.mxu0 %v4994_v58  ;;  %4253 = vmatprep.mubr.f32.mxu1 %v6350_v22  ;;  %v1883_v58 = vld [vmem:[#allocation9] sm:$0xff] }
 0x7a2   :  { %4997 = vmatprep.subr.bf16.mxu0 %v4996_v21  ;;  %2013 = vmatprep.mubr.f32.mxu0 %v5818_v5  ;;  %v6495_v31 = vpack.c.bf16 %v1886_v24, %v1883_v58  ;;  %v1852_v21 = vld [vmem:[#allocation7 + $0x88] sm:$0xff]  ;;  %v5052_v58 = vpack.c.bf16 %v1882_v12, %v1879_v42 }
 0x7a3   :  { %5027 = vmatpush3.bf16.msra.mxu1 %v5024_v11  ;;  %v1888_v42 = vld [vmem:[#allocation9 + $0x28] sm:$0xff] }
 0x7a4   :  { %5029 = vmatprep.subr.bf16.mxu1 %v5028_v16 }
 0x7a5   :  { %4999 = vmatpush1.bf16.msra.mxu0 %v4998_v45  ;;  %v1889_v45 = vld [vmem:[#allocation9 + $0x30] sm:$0xff] }
 0x7a6   :  { %5001 = vmatprep.subr.bf16.mxu0 %v5000_v46  ;;  %v1892_v46 = vld [vmem:[#allocation9 + $0x48] sm:$0xff] }
 0x7a7   :  { %5031 = vmatpush3.bf16.msra.mxu1 %v5028_v16  ;;  %v6501_v35 = vpack.c.bf16 %v1892_v46, %v1889_v45  ;;  %v1920_v16 = vld [vmem:[#allocation9 + $0x128] sm:$0xff]  ;;  %v6536_v45 = vpack.c.bf16 %v1929_v39, %v1926_v9  ;;  %v1925_v46 = vld [vmem:[#allocation9 + $0x150] sm:$0xff]  ;;  %v1903_v39 = vld [vmem:[#allocation9 + $0xa0] sm:$0xff] }
 0x7a8   :  { %v6528_v24 = vpack.c.bf16 %v1923_v20, %v1920_v16  ;;  %v6538_v50 = vpack.c.bf16 %v1928_v48, %v1925_v46  ;;  %v6554_v20 = vpack.c.bf16 %v1888_v42, %v1885_v10  ;;  %v1900_v9 = vld [vmem:[#allocation9 + $0x88] sm:$0xff]  ;;  %v1906_v46 = vld [vmem:[#allocation9 + $0xb8] sm:$0xff] }
 0x7a9   :  { %5003 = vmatpush1.bf16.msra.mxu0 %v5002_v54  ;;  %v1896_v54 = vld [vmem:[#allocation9 + $0x68] sm:$0xff]  ;;  %v6574_v48 = vpack.c.bf16 %v1906_v46, %v1903_v39 }
 0x7aa   :  { %5005 = vmatprep.subr.bf16.mxu0 %v5004_v57  ;;  %v1899_v57 = vld [vmem:[#allocation9 + $0x80] sm:$0xff] }
 0x7ab   :  { %v6505_v62 = vpack.c.bf16 %v1899_v57, %v1896_v54 }
 0x7ad   :  { %5007 = vmatpush1.bf16.msra.mxu0 %v5006_v34  ;;  %v1861_v34 = vld [vmem:[#allocation7 + $0xd0] sm:$0xff] }
 0x7ae   :  { %5009 = vmatprep.subr.bf16.mxu0 %v5008_v38  ;;  %v1864_v38 = vld [vmem:[#allocation7 + $0xe8] sm:$0xff] }
 0x7af   :  { %v5040_v47 = vpack.c.bf16 %v1864_v38, %v1861_v34 }
 0x7b1   :  { %5011 = vmatpush1.bf16.msra.mxu0 %v5010_v18  ;;  %v1901_v18 = vld [vmem:[#allocation9 + $0x90] sm:$0xff] }
 0x7b2   :  { %5013 = vmatprep.subr.bf16.mxu0 %v5012_v19  ;;  %v1904_v19 = vld [vmem:[#allocation9 + $0xa8] sm:$0xff] }
 0x7b3   :  { %v6513_v23 = vpack.c.bf16 %v1904_v19, %v1901_v18 }
 0x7b5   :  { %5015 = vmatpush1.bf16.msra.mxu0 %v5014_v40  ;;  %v5044_v40 = vpack.c.bf16 %v1870_v30, %v1867_v29 }
 0x7b6   :  { %5017 = vmatprep.subr.bf16.mxu0 %v5016_v41  ;;  %v1911_v41 = vld [vmem:[#allocation9 + $0xe0] sm:$0xff] }
 0x7b7   :  { %v6517_v52 = vpack.c.bf16 %v1911_v41, %v1908_v33  ;;  %v5679_v33 = vld [vmem:[%s7021_s5] ss:$0 sm:$0xff] }
 0x7b9   :  { %5019 = vmatpush1.bf16.msra.mxu0 %v5018_v59  ;;  %v1873_v59 = vld [vmem:[#allocation7 + $0x130] sm:$0xff] }
 0x7ba   :  { %5021 = vmatprep.subr.bf16.mxu0 %v5020_v60  ;;  %v1876_v60 = vld [vmem:[#allocation7 + $0x148] sm:$0xff] }
 0x7bb   :  { %v5048_v4 = vpack.c.bf16 %v1876_v60, %v1873_v59 }
 0x7bd   :  { %5023 = vmatpush1.bf16.msra.mxu0 %v5022_v8  ;;  %v1917_v8 = vld [vmem:[#allocation9 + $0x110] sm:$0xff] }
 0x7be   :  { %5057 = vmatprep.subr.bf16.mxu0 %v6493_v25  ;;  %v6522_v11 = vpack.c.bf16 %v1917_v8, %v1914_v0 }
 0x7c0   :  { %2014 = vmatmul.mubr.f32.vlgmr.msra.gmra.mrb[20].mxu0 %v6350_v22  ;;  %v1849_v22 = vld [vmem:[#allocation7 + $0x70] sm:$0xff] }
 0x7c1   :  { %2019 = vmatprep.mubr.f32.mxu0 %v5818_v5  ;;  %5059 = vmatpush1.bf16.msra.mxu0 %v6495_v31  ;;  %v5032_v36 = vpack.c.bf16 %v1852_v21, %v1849_v22  ;;  %v1919_v22 = vld [vmem:[#allocation9 + $0x120] sm:$0xff]  ;;  %v1922_v21 = vld [vmem:[#allocation9 + $0x138] sm:$0xff] }
 0x7c2   :  { %5061 = vmatprep.subr.bf16.mxu0 %v6499_v43 }
 0x7c3   :  { %5033 = vmatprep.subr.bf16.mxu1 %v5032_v36 }
 0x7c4   :  { %5035 = vmatpush3.bf16.msra.mxu1 %v5032_v36  ;;  %v6531_v36 = vpack.c.bf16 %v1922_v21, %v1919_v22  ;;  %v1897_v21 = vld [vmem:[#allocation9 + $0x70] sm:$0xff] }
 0x7c5   :  { %5063 = vmatpush1.bf16.msra.mxu0 %v6501_v35  ;;  %5037 = vmatprep.subr.bf16.mxu1 %v5036_v53 }
 0x7c6   :  { %5065 = vmatprep.subr.bf16.mxu0 %v6505_v62 }
 0x7c8   :  { %5039 = vmatpush3.bf16.msra.mxu1 %v5036_v53 }
 0x7c9   :  { %5067 = vmatpush1.bf16.msra.mxu0 %v6507_v6  ;;  %5041 = vmatprep.subr.bf16.mxu1 %v5040_v47 }
 0x7ca   :  { %5069 = vmatprep.subr.bf16.mxu0 %v6511_v3 }
 0x7cc   :  { %5043 = vmatpush3.bf16.msra.mxu1 %v5040_v47 }
 0x7cd   :  { %5071 = vmatpush1.bf16.msra.mxu0 %v6513_v23  ;;  %5045 = vmatprep.subr.bf16.mxu1 %v5044_v40 }
 0x7ce   :  { %5073 = vmatprep.subr.bf16.mxu0 %v6517_v52 }
 0x7d0   :  { %5047 = vmatpush3.bf16.msra.mxu1 %v5044_v40 }
 0x7d1   :  { %5075 = vmatpush1.bf16.msra.mxu0 %v6519_v56  ;;  %5049 = vmatprep.subr.bf16.mxu1 %v5048_v4 }
 0x7d2   :  { %5077 = vmatprep.subr.bf16.mxu0 %v6522_v11 }
 0x7d4   :  { %5051 = vmatpush3.bf16.msra.mxu1 %v5048_v4 }
 0x7d5   :  { %5079 = vmatpush1.bf16.msra.mxu0 %v6525_v28  ;;  %5053 = vmatprep.subr.bf16.mxu1 %v5052_v58 }
 0x7d6   :  { %5081 = vmatprep.subr.bf16.mxu0 %v6528_v24 }
 0x7d8   :  { %5055 = vmatpush3.bf16.msra.mxu1 %v5052_v58  ;;  %v1891_v58 = vld [vmem:[#allocation9 + $0x40] sm:$0xff] }
 0x7d9   :  { %5083 = vmatpush1.bf16.msra.mxu0 %v6531_v36  ;;  %5088 = vmatprep.subr.bf16.mxu1 %v5819_v55 }
 0x7da   :  { %5085 = vmatprep.subr.bf16.mxu0 %v6536_v45 }
 0x7dd   :  { %5087 = vmatpush1.bf16.msra.mxu0 %v6538_v50 }
 0x7de   :  { %5113 = vmatprep.subr.bf16.mxu0 %v6493_v25 }
 0x873   :  { %v1720_v53 = vpop.f32.mrb[18].mxu0  ;;  %v1791_v54 = vpop.f32.mrb[16].mxu1 }
 0x874   :  { %v1796_v57 = vrot.slane %v1720_v53, 2  ;;  %v1722_v63 = vpop.f32.mrb[19].mxu0  ;;  %v4220_v1 = vpop.f32.mrb[17].mxu1  ;;  %v1815_v40 = vadd.f32 %v5679_v33, %v1791_v54  ;;  %v1909_v53 = vld [vmem:[#allocation9 + $0xd0] sm:$0xff]  ;;  %v1912_v54 = vld [vmem:[#allocation9 + $0xe8] sm:$0xff] }
 0x875   :  { %v1806_v34 = vrot.slane %v1722_v63, 2  ;;  %v1915_v63 = vld [vmem:[#allocation9 + $0x100] sm:$0xff]  ;;  %v1918_v1 = vld [vmem:[#allocation9 + $0x118] sm:$0xff] }
 0x876   :  { %v1798_v38 = vadd.f32 %v1796_v57, %v6190_v27  ;;  %v1817_v41 = vrot.slane %v1815_v40, 2  ;;  %v1824_v27 = vrot.slane %v6479_v2, 6  ;;  %v1894_v2 = vld [vmem:[#allocation9 + $0x58] sm:$0xff]  ;;  %v6580_v57 = vpack.c.bf16 %v1912_v54, %v1909_v53 }
 0x877   :  { %v1808_v47 = vadd.f32 %v1806_v34, %v6192_v32  ;;  %v6586_v34 = vpack.c.bf16 %v1918_v1, %v1915_v63 }
 0x878   :  { %v3621_v49 = vmul.f32 -1.442695, %v1798_v38  ;;  %v1921_v38 = vld [vmem:[#allocation9 + $0x130] sm:$0xff] }
 0x879   :  { %v3622_v61 = vmul.f32 -1.442695, %v1808_v47  ;;  %v1924_v47 = vld [vmem:[#allocation9 + $0x148] sm:$0xff] }
 0x87a   :  { %5589 = vpow2.f32 %v3621_v49  ;;  %v6592_v49 = vpack.c.bf16 %v1924_v47, %v1921_v38 }
 0x87b   :  { %5591 = vpow2.f32 %v3622_v61  ;;  %v1927_v61 = vld [vmem:[#allocation9 + $0x160] sm:$0xff] }
 0x884   :  { %v5590_v18 = vpop.eup %5589 }
 0x885   :  { %v5592_v19 = vpop.eup %5591  ;;  %v1802_v29 = vadd.f32 1.0, %v5590_v18  ;;  %v1930_v18 = vld [vmem:[#allocation9 + $0x178] sm:$0xff] }
 0x886   :  { %v1812_v30 = vadd.f32 1.0, %v5592_v19  ;;  %v6598_v19 = vpack.c.bf16 %v1930_v18, %v1927_v61 }
 0x887   :  { %5593 = vrcp.f32 %v1802_v29  ;;  %v1931_v29 = vld [vmem:[%s7024_s8] sm:$0x7] }
 0x888   :  { %5595 = vrcp.f32 %v1812_v30  ;;  %v1945_v30 = vrot.slane %v1931_v29, %v271_v14  ;;  %v6635_v33 = vrot.slane %v1931_v29, %v263_v15 }
 0x891   :  { %v5594_v44 = vpop.eup %5593 }
 0x892   :  { %v5596_v32 = vpop.eup %5595  ;;  %v1819_v51 = vmul.f32 %v5594_v44, %v1817_v41 }
 0x893   :  { %v6549_v59 = vpop.f32.mrb[20].mxu0  ;;  %v1826_v60 = vmul.f32 %v5596_v32, %v1824_v27  ;;  %v1822_v8 = vsub.f32 1.0, %v5596_v32 }
 0x894   :  { %v1820_v0 = vadd.f32 %v1819_v51, %v6188_v26  ;;  %v6552_v4 = vpop.f32.mrb[21].mxu0  ;;  %v6560_v26 = vpack.c.bf16 %v1894_v2, %v1891_v58  ;;  %v6645_v51 = vadd.f32 %v6549_v59, %v6635_v33 }
 0x896   :  { %5597 = vtanh.f32 %v1820_v0 }
 0x8a0   :  { %v5598_v7 = vpop.eup %5597 }
 0x8a1   :  { %v1823_v12 = vmul.f32 %v5598_v7, %v1822_v8 }
 0x8a3   :  { %v1827_v16 = vadd.f32 %v1826_v60, %v1823_v12  ;;  %v6649_v60 = vrot.slane %v1931_v29, %v267_v17  ;;  %v6660_v17 = vld [vmem:[%s7025_s9] ss:$0 sm:$0xff]  ;;  %s5821_s9 = smov [#allocation11]  }
 0x8a4   :  { %s3553_s15 = sshll.u32 %s5821_s9, 4  ;;  %s3554_s15 = int_to_ptr.vmem [resolvable:$true] %s3553_s15 }
 0x8a5   :  { %v1834_v22 = vsel %vm193_vm5, %v6487_v37, %v1827_v16  ;;  %1828 = vst [vmem:[#allocation11 - $0x6] sm:$0xc0] %v1827_v16  ;;  %v6567_v37 = vpack.c.bf16 %v1900_v9, %v1897_v21  ;;  %v6654_v7 = vadd.f32 %v6552_v4, %v6649_v60  ;;  %s5758_s22 = scalar_lea.vmem %s3554_s15, 64  ;;  %p5763_p2 = scmp.lt.s32.totalorder %s3554_s15, %s3554_s15 }
 0x8a6   :  { %2020 = vmatmul.mubr.f32.gmra.mrb[22].mxu0 %v1834_v22  ;;  %4254 = vmatmul.mubr.f32.vlgmr.msra.gmra.mrb[18].mxu1 %v1834_v22  ;;  %p5759_p1 = scmp.ne.s32.totalorder %s3554_s15, %s5758_s22  ;;  %p5764_p3 = scmp.lt.s32.totalorder %s5758_s22, %s5758_s22 }
 0x8a7   :  { %5090 = vmatpush3.bf16.msra.mxu1 %v6554_v20  ;;  %2171 = vmatprep.mubr.f32.mxu0 %v5818_v5 }
 0x8a8   :  { %5091 = vmatprep.subr.bf16.mxu1 %v5819_v55  ;;  %4288 = vmatprep.mubr.msk.f32.mxu1 %vm5820_vm8, %v5818_v5  ;;  %p5765_p4 = por %p5764_p3, %p5763_p2 }
 0x8aa   :  { %2172 = vmatmul.mubr.f32.vlgmr.msra.gmra.mrb[24].mxu0 %v5818_v5  ;;  %p5766_p5 = pnand %p5765_p4, %p5759_p1 }
 0x8ab   :  { %5093 = vmatpush3.bf16.msra.mxu1 %v6560_v26  ;;  %5115 = vmatpush1.bf16.msra.mxu0 %v6495_v31 }
 0x8ac   :  { %5094 = vmatprep.subr.bf16.mxu1 %v5819_v55  ;;  %5117 = vmatprep.subr.bf16.mxu0 %v6499_v43 }
 0x8ad   :  { %2334 = vmatprep.mubr.f32.mxu0 %v5818_v5 }
 0x8af   :  { %5096 = vmatpush3.bf16.msra.mxu1 %v6567_v37  ;;  %5119 = vmatpush1.bf16.msra.mxu0 %v6501_v35 }
 0x8b0   :  { %5097 = vmatprep.subr.bf16.mxu1 %v5819_v55  ;;  %5121 = vmatprep.subr.bf16.mxu0 %v6505_v62 }
 0x8b3   :  { %5099 = vmatpush3.bf16.msra.mxu1 %v6574_v48  ;;  %5123 = vmatpush1.bf16.msra.mxu0 %v6507_v6 }
 0x8b4   :  { %5100 = vmatprep.subr.bf16.mxu1 %v5819_v55  ;;  %5125 = vmatprep.subr.bf16.mxu0 %v6511_v3 }
 0x8b7   :  { %5102 = vmatpush3.bf16.msra.mxu1 %v6580_v57  ;;  %5127 = vmatpush1.bf16.msra.mxu0 %v6513_v23 }
 0x8b8   :  { %5103 = vmatprep.subr.bf16.mxu1 %v5819_v55  ;;  %5129 = vmatprep.subr.bf16.mxu0 %v6517_v52 }
 0x8bb   :  { %5105 = vmatpush3.bf16.msra.mxu1 %v6586_v34  ;;  %5131 = vmatpush1.bf16.msra.mxu0 %v6519_v56 }
 0x8bc   :  { %5106 = vmatprep.subr.bf16.mxu1 %v5819_v55  ;;  %5133 = vmatprep.subr.bf16.mxu0 %v6522_v11 }
 0x8bf   :  { %5108 = vmatpush3.bf16.msra.mxu1 %v6592_v49  ;;  %5135 = vmatpush1.bf16.msra.mxu0 %v6525_v28 }
 0x8c0   :  { %5109 = vmatprep.subr.bf16.mxu1 %v5819_v55  ;;  %5137 = vmatprep.subr.bf16.mxu0 %v6528_v24 }
 0x8c3   :  { %5111 = vmatpush3.bf16.msra.mxu1 %v6598_v19  ;;  %5139 = vmatpush1.bf16.msra.mxu0 %v6531_v36 }
 0x8c4   :  { %5144 = vmatprep.subr.bf16.mxu1 %v5819_v55  ;;  %5141 = vmatprep.subr.bf16.mxu0 %v6536_v45 }
 0x8c6   :  { %4289 = vmatmul.mubr.f32.vlgmr.msra.gmra.mrb[20].mxu1 %v5818_v5 }
 0x8c7   :  { %5146 = vmatpush3.bf16.msra.mxu1 %v6554_v20  ;;  %5143 = vmatpush1.bf16.msra.mxu0 %v6538_v50 }
 0x8c8   :  { %5147 = vmatprep.subr.bf16.mxu1 %v5819_v55  ;;  %4323 = vmatprep.mubr.msk.f32.mxu1 %vm5820_vm8, %v5818_v5 }
 0x8c9   :  { %5169 = vmatprep.subr.bf16.mxu0 %v6493_v25 }
 0x8cb   :  { %5149 = vmatpush3.bf16.msra.mxu1 %v6560_v26 }
 0x8cc   :  { %5150 = vmatprep.subr.bf16.mxu1 %v5819_v55 }
 0x8cf   :  { %5152 = vmatpush3.bf16.msra.mxu1 %v6567_v37 }
 0x8d0   :  { %5153 = vmatprep.subr.bf16.mxu1 %v5819_v55 }
 0x8d3   :  { %5155 = vmatpush3.bf16.msra.mxu1 %v6574_v48 }
 0x8d4   :  { %5156 = vmatprep.subr.bf16.mxu1 %v5819_v55 }
 0x8d7   :  { %5158 = vmatpush3.bf16.msra.mxu1 %v6580_v57 }
 0x8d8   :  { %5159 = vmatprep.subr.bf16.mxu1 %v5819_v55 }
 0x8db   :  { %5161 = vmatpush3.bf16.msra.mxu1 %v6586_v34 }
 0x8dc   :  { %5162 = vmatprep.subr.bf16.mxu1 %v5819_v55 }
 0x8df   :  { %5164 = vmatpush3.bf16.msra.mxu1 %v6592_v49 }
 0x8e0   :  { %5165 = vmatprep.subr.bf16.mxu1 %v5819_v55 }
 0x8e3   :  { %5167 = vmatpush3.bf16.msra.mxu1 %v6598_v19 }
 0x8e4   :  { %5200 = vmatprep.subr.bf16.mxu1 %v5819_v55 }
 0x979   :  { %v6637_v40 = vpop.f32.mrb[22].mxu0  ;;  %v4255_v41 = vpop.f32.mrb[18].mxu1 }
 0x97a   :  { %v6639_v44 = vadd.f32 %v4255_v41, %v1945_v30  ;;  %v6641_v27 = vpop.f32.mrb[23].mxu0  ;;  %v2092_v32 = vpop.f32.mrb[19].mxu1 }
 0x97b   :  { %v6663_v21 = vadd.f32 %v2092_v32, %v1945_v30 }
 0x97d   :  { %v2173_v14 = vpop.f32.mrb[24].mxu0 }
 0x97e   :  { %v2248_v15 = vadd.f32 %v2173_v14, %v6645_v51  ;;  %v2175_v0 = vpop.f32.mrb[25].mxu0 }
 0x97f   :  { %v2255_v10 = vadd.f32 %v2175_v0, %v6654_v7 }
 0x980   :  { %v3624_v8 = vmul.f32 -1.442695, %v2248_v15 }
 0x981   :  { %v3625_v42 = vmul.f32 -1.442695, %v2255_v10 }
 0x982   :  { %5599 = vpow2.f32 %v3624_v8 }
 0x983   :  { %5601 = vpow2.f32 %v3625_v42 }
 0x98c   :  { %v5600_v59 = vpop.eup %5599 }
 0x98d   :  { %v2252_v12 = vadd.f32 1.0, %v5600_v59  ;;  %v5602_v13 = vpop.eup %5601 }
 0x98e   :  { %v2259_v16 = vadd.f32 1.0, %v5602_v13 }
 0x98f   :  { %5603 = vrcp.f32 %v2252_v12 }
 0x990   :  { %5605 = vrcp.f32 %v2259_v16 }
 0x999   :  { %v5604_v58 = vpop.eup %5603  ;;  %v2244_v2 = vpop.f32.mrb[20].mxu1 }
 0x99a   :  { %v2262_v4 = vadd.f32 %v6660_v17, %v2244_v2  ;;  %v4290_v22 = vpop.f32.mrb[21].mxu1  ;;  %v5606_v46 = vpop.eup %5605 }
 0x99b   :  { %v2266_v53 = vsub.f32 1.0, %v5606_v46  ;;  %v2268_v1 = vmul.f32 0.0, %v5606_v46 }
 0x99c   :  { %v2263_v9 = vmul.f32 %v5604_v58, %v2262_v4 }
 0x99e   :  { %v2264_v39 = vadd.f32 %v2263_v9, %v6663_v21 }
 0x9a0   :  { %5607 = vtanh.f32 %v2264_v39 }
 0x9aa   :  { %v5608_v54 = vpop.eup %5607 }
 0x9ab   :  { %v2267_v63 = vmul.f32 %v5608_v54, %v2266_v53 }
 0x9ad   :  { %v6666_v38 = vadd.f32 %v2268_v1, %v2267_v63 }
 0x9af   :  { %2335 = vmatmul.mubr.f32.vlgmr.msra.gmra.mrb[26].mxu0 %v6666_v38  ;;  %4324 = vmatmul.mubr.f32.vlgmr.msra.gmra.mrb[22].mxu1 %v6666_v38  ;;  %v2441_v9 = vrot.slane %v6666_v38, 6 }
 0x9b0   :  { %5171 = vmatpush1.bf16.msra.mxu0 %v6495_v31  ;;  %5202 = vmatpush3.bf16.msra.mxu1 %v6554_v20 }
 0x9b1   :  { %5173 = vmatprep.subr.bf16.mxu0 %v6499_v43  ;;  %5203 = vmatprep.subr.bf16.mxu1 %v5819_v55 }
 0x9b2   :  { %2512 = vmatprep.mubr.f32.mxu0 %v5818_v5  ;;  %4358 = vmatprep.mubr.msk.f32.mxu1 %vm5820_vm8, %v5818_v5 }
 0x9b4   :  { %5175 = vmatpush1.bf16.msra.mxu0 %v6501_v35  ;;  %5205 = vmatpush3.bf16.msra.mxu1 %v6560_v26 }
 0x9b5   :  { %5177 = vmatprep.subr.bf16.mxu0 %v6505_v62  ;;  %5206 = vmatprep.subr.bf16.mxu1 %v5819_v55 }
 0x9b8   :  { %5179 = vmatpush1.bf16.msra.mxu0 %v6507_v6  ;;  %5208 = vmatpush3.bf16.msra.mxu1 %v6567_v37 }
 0x9b9   :  { %5181 = vmatprep.subr.bf16.mxu0 %v6511_v3  ;;  %5209 = vmatprep.subr.bf16.mxu1 %v5819_v55 }
 0x9bc   :  { %5183 = vmatpush1.bf16.msra.mxu0 %v6513_v23  ;;  %5211 = vmatpush3.bf16.msra.mxu1 %v6574_v48 }
 0x9bd   :  { %5185 = vmatprep.subr.bf16.mxu0 %v6517_v52  ;;  %5212 = vmatprep.subr.bf16.mxu1 %v5819_v55 }
 0x9c0   :  { %5187 = vmatpush1.bf16.msra.mxu0 %v6519_v56  ;;  %5214 = vmatpush3.bf16.msra.mxu1 %v6580_v57 }
 0x9c1   :  { %5189 = vmatprep.subr.bf16.mxu0 %v6522_v11  ;;  %5215 = vmatprep.subr.bf16.mxu1 %v5819_v55 }
 0x9c4   :  { %5191 = vmatpush1.bf16.msra.mxu0 %v6525_v28  ;;  %5217 = vmatpush3.bf16.msra.mxu1 %v6586_v34 }
 0x9c5   :  { %5193 = vmatprep.subr.bf16.mxu0 %v6528_v24  ;;  %5218 = vmatprep.subr.bf16.mxu1 %v5819_v55 }
 0x9c8   :  { %5195 = vmatpush1.bf16.msra.mxu0 %v6531_v36  ;;  %5220 = vmatpush3.bf16.msra.mxu1 %v6592_v49 }
 0x9c9   :  { %5197 = vmatprep.subr.bf16.mxu0 %v6536_v45  ;;  %5221 = vmatprep.subr.bf16.mxu1 %v5819_v55 }
 0x9cc   :  { %5199 = vmatpush1.bf16.msra.mxu0 %v6538_v50  ;;  %5223 = vmatpush3.bf16.msra.mxu1 %v6598_v19 }
 0x9cd   :  { %5225 = vmatprep.subr.bf16.mxu0 %v6493_v25  ;;  %5256 = vmatprep.subr.bf16.mxu1 %v5819_v55 }
 0xa82   :  { %v2336_v47 = vpop.f32.mrb[26].mxu0  ;;  %v2407_v61 = vpop.f32.mrb[22].mxu1 }
 0xa83   :  { %v2412_v18 = vrot.slane %v2336_v47, 6  ;;  %v2338_v29 = vpop.f32.mrb[27].mxu0  ;;  %v4325_v30 = vpop.f32.mrb[23].mxu1  ;;  %v2431_v59 = vadd.f32 %v6660_v17, %v2407_v61 }
 0xa84   :  { %v2422_v41 = vrot.slane %v2338_v29, 6 }
 0xa85   :  { %v2414_v32 = vadd.f32 %v2412_v18, %v6645_v51  ;;  %v2433_v13 = vrot.slane %v2431_v59, 6 }
 0xa86   :  { %v2424_v15 = vadd.f32 %v2422_v41, %v6654_v7 }
 0xa87   :  { %v3626_v14 = vmul.f32 -1.442695, %v2414_v32 }
 0xa88   :  { %v3627_v0 = vmul.f32 -1.442695, %v2424_v15 }
 0xa89   :  { %5609 = vpow2.f32 %v3626_v14 }
 0xa8a   :  { %5611 = vpow2.f32 %v3627_v0 }
 0xa93   :  { %v5610_v8 = vpop.eup %5609 }
 0xa94   :  { %v2418_v10 = vadd.f32 1.0, %v5610_v8  ;;  %v5612_v42 = vpop.eup %5611 }
 0xa95   :  { %v2428_v12 = vadd.f32 1.0, %v5612_v42 }
 0xa96   :  { %5613 = vrcp.f32 %v2418_v10 }
 0xa97   :  { %5615 = vrcp.f32 %v2428_v12 }
 0xaa0   :  { %v5614_v16 = vpop.eup %5613 }
 0xaa1   :  { %v2435_v58 = vmul.f32 %v5614_v16, %v2433_v13  ;;  %v5616_v4 = vpop.eup %5615 }
 0xaa2   :  { %v2438_v22 = vsub.f32 1.0, %v5616_v4  ;;  %v2443_v53 = vmul.f32 %v5616_v4, %v2441_v9 }
 0xaa3   :  { %v2436_v2 = vadd.f32 %v2435_v58, %v6663_v21 }
 0xaa5   :  { %5617 = vtanh.f32 %v2436_v2 }
 0xaaf   :  { %v5618_v39 = vpop.eup %5617 }
 0xab0   :  { %v2439_v46 = vmul.f32 %v5618_v39, %v2438_v22 }
 0xab2   :  { %v6710_v54 = vadd.f32 %v2443_v53, %v2439_v46 }
 0xab4   :  { %v6713_v63 = vrot.slane %v6710_v54, 2  ;;  %v2618_v16 = vrot.slane %v6710_v54, 6  ;;  %v3496_v53 = vrot.slane %v6710_v54, 1 }
 0xab6   :  { %2513 = vmatmul.mubr.f32.vlgmr.msra.gmra.mrb[28].mxu0 %v6713_v63  ;;  %4359 = vmatmul.mubr.f32.vlgmr.msra.gmra.mrb[24].mxu1 %v6713_v63 }
 0xab7   :  { %5227 = vmatpush1.bf16.msra.mxu0 %v6495_v31  ;;  %5258 = vmatpush3.bf16.msra.mxu1 %v6554_v20 }
 0xab8   :  { %5229 = vmatprep.subr.bf16.mxu0 %v6499_v43  ;;  %5259 = vmatprep.subr.bf16.mxu1 %v5819_v55 }
 0xab9   :  { %2689 = vmatprep.mubr.f32.mxu0 %v5818_v5  ;;  %4393 = vmatprep.mubr.msk.f32.mxu1 %vm5820_vm8, %v5818_v5 }
 0xabb   :  { %5231 = vmatpush1.bf16.msra.mxu0 %v6501_v35  ;;  %5261 = vmatpush3.bf16.msra.mxu1 %v6560_v26 }
 0xabc   :  { %5233 = vmatprep.subr.bf16.mxu0 %v6505_v62  ;;  %5262 = vmatprep.subr.bf16.mxu1 %v5819_v55 }
 0xabf   :  { %5235 = vmatpush1.bf16.msra.mxu0 %v6507_v6  ;;  %5264 = vmatpush3.bf16.msra.mxu1 %v6567_v37 }
 0xac0   :  { %5237 = vmatprep.subr.bf16.mxu0 %v6511_v3  ;;  %5265 = vmatprep.subr.bf16.mxu1 %v5819_v55 }
 0xac3   :  { %5239 = vmatpush1.bf16.msra.mxu0 %v6513_v23  ;;  %5267 = vmatpush3.bf16.msra.mxu1 %v6574_v48 }
 0xac4   :  { %5241 = vmatprep.subr.bf16.mxu0 %v6517_v52  ;;  %5268 = vmatprep.subr.bf16.mxu1 %v5819_v55 }
 0xac7   :  { %5243 = vmatpush1.bf16.msra.mxu0 %v6519_v56  ;;  %5270 = vmatpush3.bf16.msra.mxu1 %v6580_v57 }
 0xac8   :  { %5245 = vmatprep.subr.bf16.mxu0 %v6522_v11  ;;  %5271 = vmatprep.subr.bf16.mxu1 %v5819_v55 }
 0xacb   :  { %5247 = vmatpush1.bf16.msra.mxu0 %v6525_v28  ;;  %5273 = vmatpush3.bf16.msra.mxu1 %v6586_v34 }
 0xacc   :  { %5249 = vmatprep.subr.bf16.mxu0 %v6528_v24  ;;  %5274 = vmatprep.subr.bf16.mxu1 %v5819_v55 }
 0xacf   :  { %5251 = vmatpush1.bf16.msra.mxu0 %v6531_v36  ;;  %5276 = vmatpush3.bf16.msra.mxu1 %v6592_v49 }
 0xad0   :  { %5253 = vmatprep.subr.bf16.mxu0 %v6536_v45  ;;  %5277 = vmatprep.subr.bf16.mxu1 %v5819_v55 }
 0xad3   :  { %5255 = vmatpush1.bf16.msra.mxu0 %v6538_v50  ;;  %5279 = vmatpush3.bf16.msra.mxu1 %v6598_v19 }
 0xad4   :  { %5281 = vmatprep.subr.bf16.mxu0 %v6493_v25  ;;  %5312 = vmatprep.subr.bf16.mxu1 %v5819_v55 }
 0xb89   :  { %v2514_v1 = vpop.f32.mrb[28].mxu0  ;;  %v2585_v47 = vpop.f32.mrb[24].mxu1 }
 0xb8a   :  { %v2590_v61 = vrot.slane %v2514_v1, 4  ;;  %v2516_v18 = vpop.f32.mrb[29].mxu0  ;;  %v4360_v29 = vpop.f32.mrb[25].mxu1  ;;  %v2609_v59 = vadd.f32 %v6660_v17, %v2585_v47 }
 0xb8b   :  { %v2600_v30 = vrot.slane %v2516_v18, 4 }
 0xb8c   :  { %v2592_v41 = vadd.f32 %v2590_v61, %v6645_v51  ;;  %v2611_v12 = vrot.slane %v2609_v59, 4  ;;  %v3517_v61 = vrot.slane %v6666_v38, 1 }
 0xb8d   :  { %v2602_v32 = vadd.f32 %v2600_v30, %v6654_v7 }
 0xb8e   :  { %v3628_v14 = vmul.f32 -1.442695, %v2592_v41  ;;  %v3527_v30 = vsel %vm183_vm0, %v3517_v61, %v6713_v63  ;;  %v3509_v41 = vsel %vm183_vm0, %v6666_v38, %v3496_v53 }
 0xb8f   :  { %v3629_v15 = vmul.f32 -1.442695, %v2602_v32 }
 0xb90   :  { %5619 = vpow2.f32 %v3628_v14 }
 0xb91   :  { %5621 = vpow2.f32 %v3629_v15 }
 0xb9a   :  { %v5620_v0 = vpop.eup %5619 }
 0xb9b   :  { %v5622_v8 = vpop.eup %5621  ;;  %v2596_v10 = vadd.f32 1.0, %v5620_v0 }
 0xb9c   :  { %v2606_v42 = vadd.f32 1.0, %v5622_v8 }
 0xb9d   :  { %5623 = vrcp.f32 %v2596_v10 }
 0xb9e   :  { %5625 = vrcp.f32 %v2606_v42 }
 0xba7   :  { %v5624_v13 = vpop.eup %5623 }
 0xba8   :  { %v5626_v58 = vpop.eup %5625  ;;  %v2613_v2 = vmul.f32 %v5624_v13, %v2611_v12 }
 0xba9   :  { %v2620_v4 = vmul.f32 %v5626_v58, %v2618_v16  ;;  %v2616_v9 = vsub.f32 1.0, %v5626_v58 }
 0xbaa   :  { %v2614_v22 = vadd.f32 %v2613_v2, %v6663_v21 }
 0xbac   :  { %5627 = vtanh.f32 %v2614_v22 }
 0xbb6   :  { %v5628_v39 = vpop.eup %5627 }
 0xbb7   :  { %v2617_v46 = vmul.f32 %v5628_v39, %v2616_v9 }
 0xbb9   :  { %v6758_v1 = vadd.f32 %v2620_v4, %v2617_v46 }
 0xbbb   :  { %v2623_v47 = vrot.slane %v6758_v1, 4  ;;  %v3498_v18 = vrot.slane %v6758_v1, 2  ;;  %v3519_v29 = vrot.slane %v6758_v1, 3  ;;  %v2795_v39 = vrot.slane %v6758_v1, 6 }
 0xbbd   :  { %2690 = vmatmul.mubr.f32.vlgmr.msra.gmra.mrb[30].mxu0 %v2623_v47  ;;  %4394 = vmatmul.mubr.f32.vlgmr.msra.gmra.mrb[26].mxu1 %v2623_v47  ;;  %v6769_v54 = vsel %vm185_vm1, %v3509_v41, %v3498_v18  ;;  %v6772_v32 = vsel %vm185_vm1, %v3527_v30, %v3519_v29 }
 0xbbe   :  { %5283 = vmatpush1.bf16.msra.mxu0 %v6495_v31  ;;  %5314 = vmatpush3.bf16.msra.mxu1 %v6554_v20 }
 0xbbf   :  { %5285 = vmatprep.subr.bf16.mxu0 %v6499_v43  ;;  %5315 = vmatprep.subr.bf16.mxu1 %v5819_v55 }
 0xbc0   :  { %2866 = vmatprep.mubr.f32.mxu0 %v5818_v5  ;;  %4428 = vmatprep.mubr.msk.f32.mxu1 %vm5820_vm8, %v5818_v5 }
 0xbc2   :  { %5287 = vmatpush1.bf16.msra.mxu0 %v6501_v35  ;;  %5317 = vmatpush3.bf16.msra.mxu1 %v6560_v26 }
 0xbc3   :  { %5289 = vmatprep.subr.bf16.mxu0 %v6505_v62  ;;  %5318 = vmatprep.subr.bf16.mxu1 %v5819_v55 }
 0xbc6   :  { %5291 = vmatpush1.bf16.msra.mxu0 %v6507_v6  ;;  %5320 = vmatpush3.bf16.msra.mxu1 %v6567_v37 }
 0xbc7   :  { %5293 = vmatprep.subr.bf16.mxu0 %v6511_v3  ;;  %5321 = vmatprep.subr.bf16.mxu1 %v5819_v55 }
 0xbca   :  { %5295 = vmatpush1.bf16.msra.mxu0 %v6513_v23  ;;  %5323 = vmatpush3.bf16.msra.mxu1 %v6574_v48 }
 0xbcb   :  { %5297 = vmatprep.subr.bf16.mxu0 %v6517_v52  ;;  %5324 = vmatprep.subr.bf16.mxu1 %v5819_v55 }
 0xbce   :  { %5299 = vmatpush1.bf16.msra.mxu0 %v6519_v56  ;;  %5326 = vmatpush3.bf16.msra.mxu1 %v6580_v57 }
 0xbcf   :  { %5301 = vmatprep.subr.bf16.mxu0 %v6522_v11  ;;  %5327 = vmatprep.subr.bf16.mxu1 %v5819_v55 }
 0xbd2   :  { %5303 = vmatpush1.bf16.msra.mxu0 %v6525_v28  ;;  %5329 = vmatpush3.bf16.msra.mxu1 %v6586_v34 }
 0xbd3   :  { %5305 = vmatprep.subr.bf16.mxu0 %v6528_v24  ;;  %5330 = vmatprep.subr.bf16.mxu1 %v5819_v55 }
 0xbd6   :  { %5307 = vmatpush1.bf16.msra.mxu0 %v6531_v36  ;;  %5332 = vmatpush3.bf16.msra.mxu1 %v6592_v49 }
 0xbd7   :  { %5309 = vmatprep.subr.bf16.mxu0 %v6536_v45  ;;  %5333 = vmatprep.subr.bf16.mxu1 %v5819_v55 }
 0xbda   :  { %5311 = vmatpush1.bf16.msra.mxu0 %v6538_v50  ;;  %5335 = vmatpush3.bf16.msra.mxu1 %v6598_v19 }
 0xbdb   :  { %5337 = vmatprep.subr.bf16.mxu0 %v6493_v25  ;;  %5368 = vmatprep.subr.bf16.mxu1 %v5819_v55 }
 0xc90   :  { %v2691_v38 = vpop.f32.mrb[30].mxu0  ;;  %v2762_v63 = vpop.f32.mrb[26].mxu1 }
 0xc91   :  { %v2767_v14 = vrot.slane %v2691_v38, 2  ;;  %v2693_v15 = vpop.f32.mrb[31].mxu0  ;;  %v4395_v0 = vpop.f32.mrb[27].mxu1  ;;  %v2786_v4 = vadd.f32 %v6660_v17, %v2762_v63 }
 0xc92   :  { %v2777_v8 = vrot.slane %v2693_v15, 2 }
 0xc93   :  { %v2769_v10 = vadd.f32 %v2767_v14, %v6645_v51  ;;  %v2788_v22 = vrot.slane %v2786_v4, 2 }
 0xc94   :  { %v2779_v42 = vadd.f32 %v2777_v8, %v6654_v7  ;;  %v6868_v8 = vadd.f32 %v6641_v27, %v6649_v60 }
 0xc95   :  { %v3630_v59 = vmul.f32 -1.442695, %v2769_v10 }
 0xc96   :  { %v3631_v12 = vmul.f32 -1.442695, %v2779_v42 }
 0xc97   :  { %5629 = vpow2.f32 %v3630_v59 }
 0xc98   :  { %5631 = vpow2.f32 %v3631_v12 }
 0xca1   :  { %v5630_v13 = vpop.eup %5629 }
 0xca2   :  { %v5632_v16 = vpop.eup %5631  ;;  %v2773_v58 = vadd.f32 1.0, %v5630_v13 }
 0xca3   :  { %v2783_v2 = vadd.f32 1.0, %v5632_v16 }
 0xca4   :  { %5633 = vrcp.f32 %v2773_v58 }
 0xca5   :  { %5635 = vrcp.f32 %v2783_v2 }
 0xcae   :  { %v5634_v9 = vpop.eup %5633 }
 0xcaf   :  { %v5636_v46 = vpop.eup %5635  ;;  %v2790_v51 = vmul.f32 %v5634_v9, %v2788_v22 }
 0xcb0   :  { %v2797_v53 = vmul.f32 %v5636_v46, %v2795_v39  ;;  %v2793_v61 = vsub.f32 1.0, %v5636_v46 }
 0xcb1   :  { %v2791_v7 = vadd.f32 %v2790_v51, %v6663_v21 }
 0xcb3   :  { %5637 = vtanh.f32 %v2791_v7 }
 0xcbd   :  { %v5638_v47 = vpop.eup %5637 }
 0xcbe   :  { %v2794_v18 = vmul.f32 %v5638_v47, %v2793_v61 }
 0xcc0   :  { %v2798_v29 = vadd.f32 %v2797_v53, %v2794_v18 }
 0xcc2   :  { %v6814_v30 = vrot.slane %v2798_v29, 6  ;;  %v3500_v41 = vrot.slane %v2798_v29, 3  ;;  %v3521_v38 = vrot.slane %v2798_v29, 4 }
 0xcc4   :  { %2867 = vmatmul.mubr.f32.vlgmr.msra.gmra.mrb[32].mxu0 %v6814_v30  ;;  %4429 = vmatmul.mubr.f32.vlgmr.msra.gmra.mrb[28].mxu1 %v6814_v30  ;;  %v6820_v1 = vsel %vm187_vm2, %v6769_v54, %v3500_v41  ;;  %v6824_v21 = vsel %vm187_vm2, %v6772_v32, %v3521_v38  ;;  %v6863_v54 = vadd.f32 %v6637_v40, %v6635_v33 }
 0xcc5   :  { %5339 = vmatpush1.bf16.msra.mxu0 %v6495_v31  ;;  %5370 = vmatpush3.bf16.msra.mxu1 %v6554_v20 }
 0xcc6   :  { %5341 = vmatprep.subr.bf16.mxu0 %v6499_v43  ;;  %5371 = vmatprep.subr.bf16.mxu1 %v5819_v55 }
 0xcc7   :  { %3029 = vmatprep.mubr.f32.mxu0 %v5818_v5  ;;  %4463 = vmatprep.mubr.msk.f32.mxu1 %vm5820_vm8, %v5818_v5 }
 0xcc9   :  { %5343 = vmatpush1.bf16.msra.mxu0 %v6501_v35  ;;  %5373 = vmatpush3.bf16.msra.mxu1 %v6560_v26 }
 0xcca   :  { %5345 = vmatprep.subr.bf16.mxu0 %v6505_v62  ;;  %5374 = vmatprep.subr.bf16.mxu1 %v5819_v55 }
 0xccd   :  { %5347 = vmatpush1.bf16.msra.mxu0 %v6507_v6  ;;  %5376 = vmatpush3.bf16.msra.mxu1 %v6567_v37 }
 0xcce   :  { %5349 = vmatprep.subr.bf16.mxu0 %v6511_v3  ;;  %5377 = vmatprep.subr.bf16.mxu1 %v5819_v55 }
 0xcd1   :  { %5351 = vmatpush1.bf16.msra.mxu0 %v6513_v23  ;;  %5379 = vmatpush3.bf16.msra.mxu1 %v6574_v48 }
 0xcd2   :  { %5353 = vmatprep.subr.bf16.mxu0 %v6517_v52  ;;  %5380 = vmatprep.subr.bf16.mxu1 %v5819_v55 }
 0xcd5   :  { %5355 = vmatpush1.bf16.msra.mxu0 %v6519_v56  ;;  %5382 = vmatpush3.bf16.msra.mxu1 %v6580_v57 }
 0xcd6   :  { %5357 = vmatprep.subr.bf16.mxu0 %v6522_v11  ;;  %5383 = vmatprep.subr.bf16.mxu1 %v5819_v55 }
 0xcd9   :  { %5359 = vmatpush1.bf16.msra.mxu0 %v6525_v28  ;;  %5385 = vmatpush3.bf16.msra.mxu1 %v6586_v34 }
 0xcda   :  { %5361 = vmatprep.subr.bf16.mxu0 %v6528_v24  ;;  %5386 = vmatprep.subr.bf16.mxu1 %v5819_v55 }
 0xcdd   :  { %5363 = vmatpush1.bf16.msra.mxu0 %v6531_v36  ;;  %5388 = vmatpush3.bf16.msra.mxu1 %v6592_v49 }
 0xcde   :  { %5365 = vmatprep.subr.bf16.mxu0 %v6536_v45  ;;  %5389 = vmatprep.subr.bf16.mxu1 %v5819_v55 }
 0xce1   :  { %5367 = vmatpush1.bf16.msra.mxu0 %v6538_v50  ;;  %5391 = vmatpush3.bf16.msra.mxu1 %v6598_v19 }
 0xce2   :  { %5393 = vmatprep.subr.bf16.mxu0 %v6493_v25  ;;  %5424 = vmatprep.subr.bf16.mxu1 %v5819_v55 }
 0xd97   :  { %v2868_v32 = vpop.f32.mrb[32].mxu0  ;;  %v2939_v63 = vpop.f32.mrb[28].mxu1 }
 0xd98   :  { %v2943_v14 = vadd.f32 %v2868_v32, %v6863_v54  ;;  %v2870_v15 = vpop.f32.mrb[33].mxu0  ;;  %v4430_v0 = vpop.f32.mrb[29].mxu1  ;;  %v2957_v16 = vadd.f32 %v6660_v17, %v2939_v63 }
 0xd99   :  { %v2950_v42 = vadd.f32 %v2870_v15, %v6868_v8 }
 0xd9a   :  { %v3632_v10 = vmul.f32 -1.442695, %v2943_v14 }
 0xd9b   :  { %v3633_v59 = vmul.f32 -1.442695, %v2950_v42 }
 0xd9c   :  { %5639 = vpow2.f32 %v3632_v10 }
 0xd9d   :  { %5641 = vpow2.f32 %v3633_v59 }
 0xda6   :  { %v5640_v12 = vpop.eup %5639 }
 0xda7   :  { %v2947_v13 = vadd.f32 1.0, %v5640_v12  ;;  %v5642_v33 = vpop.eup %5641 }
 0xda8   :  { %v2954_v40 = vadd.f32 1.0, %v5642_v33 }
 0xda9   :  { %5643 = vrcp.f32 %v2947_v13 }
 0xdaa   :  { %5645 = vrcp.f32 %v2954_v40 }
 0xdb3   :  { %v5644_v58 = vpop.eup %5643 }
 0xdb4   :  { %v2958_v2 = vmul.f32 %v5644_v58, %v2957_v16  ;;  %v5646_v27 = vpop.eup %5645 }
 0xdb5   :  { %v2961_v60 = vsub.f32 1.0, %v5646_v27  ;;  %v2963_v39 = vmul.f32 %v5646_v27, %v6814_v30 }
 0xdb6   :  { %v2959_v4 = vadd.f32 %v2958_v2, %v6639_v44 }
 0xdb8   :  { %5647 = vtanh.f32 %v2959_v4 }
 0xdc2   :  { %v5648_v22 = vpop.eup %5647 }
 0xdc3   :  { %v2962_v9 = vmul.f32 %v5648_v22, %v2961_v60 }
 0xdc5   :  { %v6874_v46 = vadd.f32 %v2963_v39, %v2962_v9 }
 0xdc7   :  { %3030 = vmatmul.mubr.f32.vlgmr.msra.gmra.mrb[34].mxu0 %v6874_v46  ;;  %4464 = vmatmul.mubr.f32.vlgmr.msra.gmra.mrb[30].mxu1 %v6874_v46  ;;  %v3502_v51 = vrot.slane %v6874_v46, 4  ;;  %v3523_v53 = vrot.slane %v6874_v46, 5  ;;  %v3136_v12 = vrot.slane %v6874_v46, 6 }
 0xdc8   :  { %5395 = vmatpush1.bf16.msra.mxu0 %v6495_v31  ;;  %5426 = vmatpush3.bf16.msra.mxu1 %v6554_v20 }
 0xdc9   :  { %5397 = vmatprep.subr.bf16.mxu0 %v6499_v43  ;;  %5427 = vmatprep.subr.bf16.mxu1 %v5819_v55  ;;  %v6886_v7 = vsel %vm189_vm3, %v6820_v1, %v3502_v51  ;;  %v6890_v61 = vsel %vm189_vm3, %v6824_v21, %v3523_v53 }
 0xdca   :  { %3207 = vmatprep.mubr.f32.mxu0 %v5818_v5  ;;  %4498 = vmatprep.mubr.msk.f32.mxu1 %vm5820_vm8, %v5818_v5 }
 0xdcc   :  { %5399 = vmatpush1.bf16.msra.mxu0 %v6501_v35  ;;  %5429 = vmatpush3.bf16.msra.mxu1 %v6560_v26 }
 0xdcd   :  { %5401 = vmatprep.subr.bf16.mxu0 %v6505_v62  ;;  %5430 = vmatprep.subr.bf16.mxu1 %v5819_v55 }
 0xdd0   :  { %5403 = vmatpush1.bf16.msra.mxu0 %v6507_v6  ;;  %5432 = vmatpush3.bf16.msra.mxu1 %v6567_v37 }
 0xdd1   :  { %5405 = vmatprep.subr.bf16.mxu0 %v6511_v3  ;;  %5433 = vmatprep.subr.bf16.mxu1 %v5819_v55 }
 0xdd4   :  { %5407 = vmatpush1.bf16.msra.mxu0 %v6513_v23  ;;  %5435 = vmatpush3.bf16.msra.mxu1 %v6574_v48 }
 0xdd5   :  { %5409 = vmatprep.subr.bf16.mxu0 %v6517_v52  ;;  %5436 = vmatprep.subr.bf16.mxu1 %v5819_v55 }
 0xdd8   :  { %5411 = vmatpush1.bf16.msra.mxu0 %v6519_v56  ;;  %5438 = vmatpush3.bf16.msra.mxu1 %v6580_v57 }
 0xdd9   :  { %5413 = vmatprep.subr.bf16.mxu0 %v6522_v11  ;;  %5439 = vmatprep.subr.bf16.mxu1 %v5819_v55 }
 0xddc   :  { %5415 = vmatpush1.bf16.msra.mxu0 %v6525_v28  ;;  %5441 = vmatpush3.bf16.msra.mxu1 %v6586_v34 }
 0xddd   :  { %5417 = vmatprep.subr.bf16.mxu0 %v6528_v24  ;;  %5442 = vmatprep.subr.bf16.mxu1 %v5819_v55 }
 0xde0   :  { %5419 = vmatpush1.bf16.msra.mxu0 %v6531_v36  ;;  %5444 = vmatpush3.bf16.msra.mxu1 %v6592_v49 }
 0xde1   :  { %5421 = vmatprep.subr.bf16.mxu0 %v6536_v45  ;;  %5445 = vmatprep.subr.bf16.mxu1 %v5819_v55 }
 0xde4   :  { %5423 = vmatpush1.bf16.msra.mxu0 %v6538_v50  ;;  %5447 = vmatpush3.bf16.msra.mxu1 %v6598_v19 }
 0xde5   :  { %5449 = vmatprep.subr.bf16.mxu0 %v6493_v25  ;;  %5480 = vmatprep.subr.bf16.mxu1 %v5819_v55 }
 0xe9a   :  { %v3031_v47 = vpop.f32.mrb[34].mxu0  ;;  %v3102_v18 = vpop.f32.mrb[30].mxu1 }
 0xe9b   :  { %v3107_v29 = vrot.slane %v3031_v47, 6  ;;  %v3033_v30 = vpop.f32.mrb[35].mxu0  ;;  %v4465_v41 = vpop.f32.mrb[31].mxu1  ;;  %v3126_v10 = vadd.f32 %v6660_v17, %v3102_v18 }
 0xe9c   :  { %v3117_v38 = vrot.slane %v3033_v30, 6 }
 0xe9d   :  { %v3109_v1 = vadd.f32 %v3107_v29, %v6863_v54  ;;  %v3128_v42 = vrot.slane %v3126_v10, 6 }
 0xe9e   :  { %v3119_v21 = vadd.f32 %v3117_v38, %v6868_v8 }
 0xe9f   :  { %v3634_v32 = vmul.f32 -1.442695, %v3109_v1 }
 0xea0   :  { %v3635_v63 = vmul.f32 -1.442695, %v3119_v21 }
 0xea1   :  { %5649 = vpow2.f32 %v3634_v32 }
 0xea2   :  { %5651 = vpow2.f32 %v3635_v63 }
 0xeab   :  { %v5650_v14 = vpop.eup %5649 }
 0xeac   :  { %v5652_v15 = vpop.eup %5651  ;;  %v3113_v0 = vadd.f32 1.0, %v5650_v14 }
 0xead   :  { %v3123_v25 = vadd.f32 1.0, %v5652_v15 }
 0xeae   :  { %5653 = vrcp.f32 %v3113_v0 }
 0xeaf   :  { %5655 = vrcp.f32 %v3123_v25 }
 0xeb8   :  { %v5654_v59 = vpop.eup %5653 }
 0xeb9   :  { %v5656_v13 = vpop.eup %5655  ;;  %v3130_v33 = vmul.f32 %v5654_v59, %v3128_v42 }
 0xeba   :  { %v3138_v40 = vmul.f32 %v5656_v13, %v3136_v12  ;;  %v3133_v58 = vsub.f32 1.0, %v5656_v13 }
 0xebb   :  { %v3131_v16 = vadd.f32 %v3130_v33, %v6639_v44 }
 0xebd   :  { %5657 = vtanh.f32 %v3131_v16 }
 0xec7   :  { %v5658_v2 = vpop.eup %5657 }
 0xec8   :  { %v3134_v4 = vmul.f32 %v5658_v2, %v3133_v58 }
 0xeca   :  { %v6928_v27 = vadd.f32 %v3138_v40, %v3134_v4 }
 0xecc   :  { %v3141_v60 = vrot.slane %v6928_v27, 2  ;;  %v3504_v22 = vrot.slane %v6928_v27, 5 }
 0xece   :  { %3208 = vmatmul.mubr.f32.vlgmr.msra.gmra.mrb[36].mxu0 %v3141_v60  ;;  %4499 = vmatmul.mubr.f32.vlgmr.msra.gmra.mrb[32].mxu1 %v3141_v60  ;;  %v6934_v9 = vsel %vm191_vm4, %v6886_v7, %v3504_v22 }
 0xecf   :  { %5451 = vmatpush1.bf16.msra.mxu0 %v6495_v31  ;;  %5482 = vmatpush3.bf16.msra.mxu1 %v6554_v20 }
 0xed0   :  { %5453 = vmatprep.subr.bf16.mxu0 %v6499_v43  ;;  %5483 = vmatprep.subr.bf16.mxu1 %v5819_v55 }
 0xed1   :  { %3384 = vmatprep.mubr.f32.mxu0 %v5818_v5  ;;  %4533 = vmatprep.mubr.msk.f32.mxu1 %vm5820_vm8, %v5818_v5 }
 0xed3   :  { %5455 = vmatpush1.bf16.msra.mxu0 %v6501_v35  ;;  %5485 = vmatpush3.bf16.msra.mxu1 %v6560_v26 }
 0xed4   :  { %5457 = vmatprep.subr.bf16.mxu0 %v6505_v62  ;;  %5486 = vmatprep.subr.bf16.mxu1 %v5819_v55 }
 0xed7   :  { %5459 = vmatpush1.bf16.msra.mxu0 %v6507_v6  ;;  %5488 = vmatpush3.bf16.msra.mxu1 %v6567_v37 }
 0xed8   :  { %5461 = vmatprep.subr.bf16.mxu0 %v6511_v3  ;;  %5489 = vmatprep.subr.bf16.mxu1 %v5819_v55 }
 0xedb   :  { %5463 = vmatpush1.bf16.msra.mxu0 %v6513_v23  ;;  %5491 = vmatpush3.bf16.msra.mxu1 %v6574_v48 }
 0xedc   :  { %5465 = vmatprep.subr.bf16.mxu0 %v6517_v52  ;;  %5492 = vmatprep.subr.bf16.mxu1 %v5819_v55 }
 0xedf   :  { %5467 = vmatpush1.bf16.msra.mxu0 %v6519_v56  ;;  %5494 = vmatpush3.bf16.msra.mxu1 %v6580_v57  ;;  %v3313_v57 = vrot.slane %v6928_v27, 6 }
 0xee0   :  { %5469 = vmatprep.subr.bf16.mxu0 %v6522_v11  ;;  %5495 = vmatprep.subr.bf16.mxu1 %v5819_v55 }
 0xee1   :  { %v3531_v7 = vsel %vm191_vm4, %v6890_v61, %v3313_v57 }
 0xee3   :  { %5471 = vmatpush1.bf16.msra.mxu0 %v6525_v28  ;;  %5497 = vmatpush3.bf16.msra.mxu1 %v6586_v34 }
 0xee4   :  { %5473 = vmatprep.subr.bf16.mxu0 %v6528_v24  ;;  %5498 = vmatprep.subr.bf16.mxu1 %v5819_v55 }
 0xee7   :  { %5475 = vmatpush1.bf16.msra.mxu0 %v6531_v36  ;;  %5500 = vmatpush3.bf16.msra.mxu1 %v6592_v49 }
 0xee8   :  { %5477 = vmatprep.subr.bf16.mxu0 %v6536_v45  ;;  %5501 = vmatprep.subr.bf16.mxu1 %v5819_v55 }
 0xeeb   :  { %5479 = vmatpush1.bf16.msra.mxu0 %v6538_v50  ;;  %5503 = vmatpush3.bf16.msra.mxu1 %v6598_v19 }
 0xfa1   :  { %v3209_v5 = vpop.f32.mrb[36].mxu0  ;;  %v3280_v31 = vpop.f32.mrb[32].mxu1 }
 0xfa2   :  { %v3285_v43 = vrot.slane %v3209_v5, 4  ;;  %v3211_v35 = vpop.f32.mrb[37].mxu0  ;;  %v4500_v62 = vpop.f32.mrb[33].mxu1  ;;  %v3304_v24 = vadd.f32 %v6660_v17, %v3280_v31 }
 0xfa3   :  { %v3295_v6 = vrot.slane %v3211_v35, 4 }
 0xfa4   :  { %v3287_v3 = vadd.f32 %v3285_v43, %v6863_v54  ;;  %v3306_v45 = vrot.slane %v3304_v24, 4 }
 0xfa5   :  { %v3297_v52 = vadd.f32 %v3295_v6, %v6868_v8 }
 0xfa6   :  { %v3636_v23 = vmul.f32 -1.442695, %v3287_v3 }
 0xfa7   :  { %v3637_v56 = vmul.f32 -1.442695, %v3297_v52 }
 0xfa8   :  { %5659 = vpow2.f32 %v3636_v23 }
 0xfa9   :  { %5661 = vpow2.f32 %v3637_v56 }
 0xfb2   :  { %v5660_v11 = vpop.eup %5659 }
 0xfb3   :  { %v3291_v55 = vadd.f32 1.0, %v5660_v11  ;;  %v5662_v28 = vpop.eup %5661 }
 0xfb4   :  { %v3301_v36 = vadd.f32 1.0, %v5662_v28 }
 0xfb5   :  { %5663 = vrcp.f32 %v3291_v55 }
 0xfb6   :  { %5665 = vrcp.f32 %v3301_v36 }
 0xfbf   :  { %v5664_v50 = vpop.eup %5663 }
 0xfc0   :  { %v3308_v20 = vmul.f32 %v5664_v50, %v3306_v45  ;;  %v5666_v37 = vpop.eup %5665 }
 0xfc1   :  { %v3311_v48 = vsub.f32 1.0, %v5666_v37  ;;  %v3315_v19 = vmul.f32 %v5666_v37, %v3313_v57 }
 0xfc2   :  { %v3309_v26 = vadd.f32 %v3308_v20, %v6639_v44 }
 0xfc4   :  { %5667 = vtanh.f32 %v3309_v26 }
 0xfce   :  { %v5668_v34 = vpop.eup %5667 }
 0xfcf   :  { %v3312_v49 = vmul.f32 %v5668_v34, %v3311_v48 }
 0xfd1   :  { %v3316_v39 = vadd.f32 %v3315_v19, %v3312_v49 }
 0xfd3   :  { %v3318_v46 = vrot.slane %v3316_v39, 4  ;;  %v3490_v51 = vrot.slane %v3316_v39, 6  ;;  %v3525_v53 = vrot.slane %v3316_v39, 7 }
 0xfd5   :  { %3385 = vmatmul.mubr.f32.vlgmr.msra.gmra.mrb[38].mxu0 %v3318_v46  ;;  %4534 = vmatmul.mubr.f32.vlgmr.msra.gmra.mrb[34].mxu1 %v3318_v46  ;;  %v3514_v47 = vsel %vm193_vm5, %v6934_v9, %v3490_v51  ;;  %v3532_v18 = vsel %vm193_vm5, %v3531_v7, %v3525_v53 }
0x10a8   :  { %v3386_v29 = vpop.f32.mrb[38].mxu0  ;;  %v3457_v30 = vpop.f32.mrb[34].mxu1 }
0x10a9   :  { %v3462_v41 = vrot.slane %v3386_v29, 2  ;;  %v3388_v38 = vpop.f32.mrb[39].mxu0  ;;  %v4535_v1 = vpop.f32.mrb[35].mxu1  ;;  %v3481_v42 = vadd.f32 %v6660_v17, %v3457_v30 }
0x10aa   :  { %v3472_v21 = vrot.slane %v3388_v38, 2 }
0x10ab   :  { %v3464_v32 = vadd.f32 %v3462_v41, %v6863_v54  ;;  %v3483_v59 = vrot.slane %v3481_v42, 2 }
0x10ac   :  { %v3474_v63 = vadd.f32 %v3472_v21, %v6868_v8 }
0x10ad   :  { %v3638_v14 = vmul.f32 -1.442695, %v3464_v32 }
0x10ae   :  { %v3639_v15 = vmul.f32 -1.442695, %v3474_v63 }
0x10af   :  { %5669 = vpow2.f32 %v3638_v14 }
0x10b0   :  { %5671 = vpow2.f32 %v3639_v15 }
0x10b9   :  { %v5670_v61 = vpop.eup %5669 }
0x10ba   :  { %v5672_v0 = vpop.eup %5671  ;;  %v3468_v25 = vadd.f32 1.0, %v5670_v61 }
0x10bb   :  { %v3478_v10 = vadd.f32 1.0, %v5672_v0 }
0x10bc   :  { %5673 = vrcp.f32 %v3468_v25 }
0x10bd   :  { %5675 = vrcp.f32 %v3478_v10 }
0x10c6   :  { %v5674_v12 = vpop.eup %5673 }
0x10c7   :  { %v5676_v13 = vpop.eup %5675  ;;  %v3485_v33 = vmul.f32 %v5674_v12, %v3483_v59 }
0x10c8   :  { %v3492_v40 = vmul.f32 %v5676_v13, %v3490_v51  ;;  %v3488_v8 = vsub.f32 1.0, %v5676_v13 }
0x10c9   :  { %v3486_v54 = vadd.f32 %v3485_v33, %v6639_v44 }
0x10cb   :  { %5677 = vtanh.f32 %v3486_v54 }
0x10d5   :  { %v5678_v16 = vpop.eup %5677 }
0x10d6   :  { %v3489_v58 = vmul.f32 %v5678_v16, %v3488_v8 }
0x10d8   :  { %v3493_v2 = vadd.f32 %v3492_v40, %v3489_v58 }
0x10da   :  { %v3507_v17 = vrot.slane %v3493_v2, 7  ;;  %v3533_v4 = vsel %vm195_vm6, %v3532_v18, %v3493_v2  ;;  %3495 = vst [vmem:[#allocation11 - $0x4] sm:$0xc0] %v3493_v2 }
0x10db   :  { %3535 = vst [vmem:[#allocation10 + $0x8] sm:$0xff] %v3533_v4 }
0x10dc   :  { %5769 = shalt.err (!%p5766_p5)
}
0x10dd   :  { %s5770_s17 = scalar_lea.hbm %s7027_s11, 64 }
0x10de   :  { %p5771_p6 = scmp.ne.s32.totalorder %s7027_s11, %s5770_s17  ;;  %p5774_p7 = scmp.lt.u32.totalorder %s5770_s17, %s7027_s11 }
0x10e0   :  { %p5776_p8 = pnand %p5774_p7, %p5771_p6 }
0x10e2   :  { %5779 = shalt.err (!%p5776_p8)
}
0x10e3   :  { %s5823_s13 = smov 32   ;;  %s5824_s21 = smov 2   ;;  %v3515_v44 = vsel %vm195_vm6, %v3514_v47, %v3507_v17 }
0x10e4   :  { %3559 = dma.vmem_to_hbm [thread:$0]  %s3554_s15, 64, %s7027_s11, [#allocation12], %s5823_s13, %s5823_s13, %s5824_s21   ;;  %3516 = vst [vmem:[#allocation10] sm:$0xff] %v3515_v44 }
0x10e5   :  { %s5780_s26 = scalar_lea.vmem %s6983_s19, 256  ;;  %p5785_p10 = scmp.lt.s32.totalorder %s6983_s19, %s6983_s19 }
0x10e6   :  { %p5781_p9 = scmp.ne.s32.totalorder %s6983_s19, %s5780_s26  ;;  %p5786_p11 = scmp.lt.s32.totalorder %s5780_s26, %s5780_s26 }
0x10e8   :  { %p5787_p12 = por %p5786_p11, %p5785_p10 }
0x10ea   :  { %p5788_p13 = pnand %p5787_p12, %p5781_p9 }
0x10ec   :  { %5791 = shalt.err (!%p5788_p13)
}
0x10ed   :  { %s5792_s1 = scalar_lea.hbm %s7026_s10, 256 }
0x10ee   :  { %p5793_p0 = scmp.ne.s32.totalorder %s7026_s10, %s5792_s1  ;;  %p5796_p1 = scmp.lt.u32.totalorder %s5792_s1, %s7026_s10 }
0x10f0   :  { %p5798_p2 = pnand %p5796_p1, %p5793_p0 }
0x10f2   :  { %5801 = shalt.err (!%p5798_p2)
}
0x10f3   :  { %s5825_s18 = smov 128   ;;  %s5826_s14 = smov 8  }
0x10f4   :  { %3547 = dma.vmem_to_hbm [thread:$0]  %s6983_s19, 256, %s7026_s10, [#allocation4], %s5825_s18, %s5825_s18, %s5826_s14  }
0x10f5   :  { %5808 = dma.done.wait [#allocation4], 256  }
0x10f6   :  { %5809 = vsyncadd [#allocation4], 4294967040 }
0x10f7   :  { %5810 = dma.done.wait [#allocation12], 64  }
0x10f8   :  { %5811 = vsyncadd [#allocation12], 4294967232 }
0x10f9   :  { %3566 = vsyncpa [#allocation3], 1 }
0x10fa   :  { %3567 = vsyncpa [#allocation8], 1 }
0x10fb   :  { %3568 = vsyncpa [#allocation4], 1 }
0x10fc   :  { %3569 = vsyncpa [#allocation12], 1 }
0x10fd   :  { %3570 = vsyncpa [#allocation5], 1 }

</bundles_post_ra>
